<compile_context>
chip_gen: v6e
topology: v6e:2x2x1
jax: 0.10.0
libtpu: 0.0.40
codegen_flags: <defaults>
</compile_context>

<pallas_src>
import jax
import jax.numpy as jnp
from jax import lax
from jax.experimental import pallas as pl
from jax.experimental.pallas import tpu as pltpu

# ----------------------------- small model dims -----------------------------------
B = 2            # batch
L = 16           # seq_len
C_IN = 128       # embeddings dim (module default 1280; small demo size)
F = 32           # n_filters
K1 = 3           # conv1 kernel (padding 1)
P1 = K1 // 2
H = 64           # lstm hidden_size (module default)
K2 = 5           # conv2 kernel (padding 2)
P2 = K2 // 2

F32 = jnp.float32
BF16 = jnp.bfloat16


# ============================ fused forward kernel =================================
def lstm_cnn_kernel(x_ref, w1_ref, b1_ref, wih_ref, bih_ref, whh_ref, sel_ref,
                    w2_ref, b2_ref,
                    o_ref,
                    xi_ref, bi_ref):
    # -------- conv1 + ReLU : in-kernel NCL->NLC, value-based im2col, one matmul ----
    zrow = jnp.zeros((P1, C_IN), F32)
    cols = []
    for b in range(B):
        xb = jnp.transpose(x_ref[b], (1, 0))                       # (L, C_IN), XLU
        xpad = jnp.concatenate([zrow, xb, zrow], axis=0)           # (L+2, C_IN)
        # lane offsets are multiples of C_IN=128 -> aligned lane concat
        cols.append(jnp.concatenate([xpad[k:k + L, :] for k in range(K1)], axis=-1))
    col1 = jnp.concatenate(cols, axis=0).astype(BF16)              # (B*L, K1*C_IN)
    c1 = jnp.dot(col1, w1_ref[...], preferred_element_type=F32)    # (B*L, F)
    c1 = jnp.maximum(c1 + b1_ref[...], 0.0)

    # -------- BiLSTM input projections: both directions fused into ONE matmul ------
    xi = jnp.dot(c1.astype(BF16), wih_ref[...],
                 preferred_element_type=F32) + bih_ref[...]        # (B*L, 8H)
    xi_ref[...] = xi        # scratch-backed so per-step reads don't bloat live ranges

    # -------- BiLSTM recurrence, forward/backward fused per step -------------------
    whh = whh_ref[...]                                             # (2H, 4H) bf16
    sel = sel_ref[...]                                             # (2B, 2H) f32 const

    # bi_ref holds the conv2 input already zero-padded along time: (B, L+2*P2, 2H)
    bi_ref[...] = jnp.zeros((B, L + 2 * P2, 2 * H), F32)

    h_cat = jnp.zeros((2 * B, 2 * H), BF16)  # rows 0..B-1: [h_f|0]; rows B..: [0|h_b]
    c_st = jnp.zeros((2 * B, H), F32)

    for s in range(L):                       # static unroll: serial chain fully visible
        rt = L - 1 - s
        # loop-invariant gate inputs: static slices of scratch, off the recurrent chain
        gx = jnp.concatenate(
            [xi_ref[b * L + s:b * L + s + 1, 0:4 * H] for b in range(B)]
            + [xi_ref[b * L + rt:b * L + rt + 1, 4 * H:8 * H] for b in range(B)],
            axis=0)                                                # (2B, 4H)
        gates = gx + jnp.dot(h_cat, whh, preferred_element_type=F32)
        # gate columns pre-ordered host-side as [i, f, o | g]
        sig = jax.nn.sigmoid(gates[:, 0:3 * H])                    # one EUP block
        i_g = sig[:, 0:H]
        f_g = sig[:, H:2 * H]
        o_g = sig[:, 2 * H:3 * H]
        g_g = jnp.tanh(gates[:, 3 * H:4 * H])
        c_st = f_g * c_st + i_g * g_g                              # (2B, H)
        h_new = o_g * jnp.tanh(c_st)                               # (2B, H)
        # store straight into the padded conv2-input layout (no post-loop repack)
        bi_ref[:, P2 + s, 0:H] = h_new[0:B, :]          # forward h for time s
        bi_ref[:, P2 + rt, H:2 * H] = h_new[B:2 * B, :]  # backward h for time L-1-s
        # block-diagonal recurrent state: fwd rows keep lanes [0,H), bwd rows [H,2H)
        h_cat = (jnp.concatenate([h_new, h_new], axis=-1) * sel).astype(BF16)

    # -------- conv2 + ReLU : value-based im2col over the padded BiLSTM output ------
    bp = bi_ref[...]                                               # (B, L+4, 2H)
    col2 = jnp.concatenate(
        [jnp.concatenate([bp[b, k:k + L, :] for k in range(K2)], axis=-1)
         for b in range(B)], axis=0).astype(BF16)                  # (B*L, K2*2H)
    y = jnp.dot(col2, w2_ref[...], preferred_element_type=F32) + b2_ref[...]
    o_ref[...] = jnp.maximum(y, 0.0)                               # (B*L, 2F)


def lstm_cnn_forward_call(x, p):
    # x: (B, C_IN, L) exactly as PyTorch provides it.  Whole problem (<1 MiB) fits in
    # VMEM on every generation, so no grid / BlockSpec tiling is needed.
    return pl.pallas_call(
        lstm_cnn_kernel,
        out_shape=jax.ShapeDtypeStruct((B * L, 2 * F), jnp.float32),
        scratch_shapes=[
            pltpu.VMEM((B * L, 8 * H), jnp.float32),          # hoisted gate inputs
            pltpu.VMEM((B, L + 2 * P2, 2 * H), jnp.float32),  # padded BiLSTM out (conv2 in)
        ],
    )(x, p["w1"], p["b1"], p["wih"], p["bih"], p["whh"], p["sel"], p["w2"], p["b2"])


# ============================ params & forward wrapper =============================
def make_params(key):
    # Layouts a converter from the torch module would produce:
    #   w1[k*C_IN + c, f]  = conv1.weight[f, c, k]                              (bf16)
    #   wih[:, 0:4H]       = weight_ih_l0.T,         cols ordered [i, f, o, g]  (bf16)
    #   wih[:, 4H:8H]      = weight_ih_l0_reverse.T, cols ordered [i, f, o, g]
    #   bih                = (b_ih + b_hh), fwd | bwd, cols ordered [i, f, o, g] (f32)
    #   whh[0:H]  = weight_hh_l0.T ; whh[H:2H] = weight_hh_l0_reverse.T, [i,f,o,g] (bf16)
    #   w2[k*2H + c, o]    = conv2.weight[o, c, k], c ordered [fwd H | bwd H]   (bf16)
    ks = jax.random.split(key, 7)
    u = lambda k, shape: jax.random.uniform(k, shape, jnp.float32, -0.1, 0.1)
    row = lax.broadcasted_iota(jnp.int32, (2 * B, 2 * H), 0)
    lane = lax.broadcasted_iota(jnp.int32, (2 * B, 2 * H), 1)
    sel = ((row < B) == (lane < H)).astype(jnp.float32)   # block-diag selector constant
    return dict(
        w1=u(ks[0], (K1 * C_IN, F)).astype(jnp.bfloat16),
        b1=u(ks[1], (1, F)),
        wih=u(ks[2], (F, 8 * H)).astype(jnp.bfloat16),
        bih=u(ks[3], (1, 8 * H)),
        whh=u(ks[4], (2 * H, 4 * H)).astype(jnp.bfloat16),
        w2=u(ks[5], (K2 * 2 * H, 2 * F)).astype(jnp.bfloat16),
        b2=u(ks[6], (1, 2 * F)),
        sel=sel,
    )


@jax.jit
def forward(embeddings, mask, params):
    # embeddings: (B, C_IN, L) (PyTorch NCL); mask: (B, L) int — mask only feeds a
    # shape assert in the torch module (no packing), so it does not change the output.
    del mask
    y = lstm_cnn_forward_call(embeddings.astype(jnp.float32), params)  # (B*L, 2F)
    return y.reshape(B, L, 2 * F)


if __name__ == "__main__":
    key = jax.random.PRNGKey(0)
    k_param, k_x = jax.random.split(key)
    params = make_params(k_param)
    embeddings = jax.random.normal(k_x, (B, C_IN, L), jnp.float32)  # (B, embed_dim, seq_len)
    mask = jnp.ones((B, L), jnp.int32)
    out = forward(embeddings, mask, params)
    out = jax.block_until_ready(out)
    assert out.shape == (B, L, 2 * F)
    assert bool(jnp.all(jnp.isfinite(out)))
    print("KERNEL_OK")
</pallas_src>

<mosaic_0001>
module attributes {stable_mosaic.version = 11 : i64} {
  func.func @lstm_cnn_kernel(%arg0: memref<2x128x16xf32, #tpu.memory_space<vmem>>, %arg1: memref<384x32xbf16, #tpu.memory_space<vmem>>, %arg2: memref<1x32xf32, #tpu.memory_space<vmem>>, %arg3: memref<32x512xbf16, #tpu.memory_space<vmem>>, %arg4: memref<1x512xf32, #tpu.memory_space<vmem>>, %arg5: memref<128x256xbf16, #tpu.memory_space<vmem>>, %arg6: memref<4x128xf32, #tpu.memory_space<vmem>>, %arg7: memref<640x64xbf16, #tpu.memory_space<vmem>>, %arg8: memref<1x64xf32, #tpu.memory_space<vmem>>, %arg9: memref<32x64xf32, #tpu.memory_space<vmem>>, %arg10: memref<32x512xf32, #tpu.memory_space<vmem>>, %arg11: memref<2x20x128xf32, #tpu.memory_space<vmem>>) attributes {dimension_semantics = [], scalar_prefetch = 0 : i64, scratch_operands = 2 : i64, tpu.core_type = #tpu.core_type<tc>} {
    %cst = arith.constant 0.000000e+00 : f32
    %0 = vector.broadcast %cst : f32 to vector<1x128xf32>
    %c0 = arith.constant 0 : index
    %c0_0 = arith.constant 0 : index
    %c0_1 = arith.constant 0 : index
    %1 = vector.load %arg0[%c0, %c0_0, %c0_1] : memref<2x128x16xf32, #tpu.memory_space<vmem>>, vector<1x128x16xf32>
    %2 = vector.shape_cast %1 : vector<1x128x16xf32> to vector<128x16xf32>
    %3 = tpu.transpose %2, [1, 0] : vector<128x16xf32> -> vector<16x128xf32>
    %4 = tpu.concatenate %0, %3, %0 in 0 : vector<1x128xf32>, vector<16x128xf32>, vector<1x128xf32> -> vector<18x128xf32>
    %5 = vector.extract_strided_slice %4 {offsets = [0, 0], sizes = [16, 128], strides = [1, 1]} : vector<18x128xf32> to vector<16x128xf32>
    %6 = vector.extract_strided_slice %4 {offsets = [1, 0], sizes = [16, 128], strides = [1, 1]} : vector<18x128xf32> to vector<16x128xf32>
    %7 = vector.extract_strided_slice %4 {offsets = [2, 0], sizes = [16, 128], strides = [1, 1]} : vector<18x128xf32> to vector<16x128xf32>
    %8 = tpu.concatenate %5, %6, %7 in 1 : vector<16x128xf32>, vector<16x128xf32>, vector<16x128xf32> -> vector<16x384xf32>
    %c1 = arith.constant 1 : index
    %c0_2 = arith.constant 0 : index
    %c0_3 = arith.constant 0 : index
    %9 = vector.load %arg0[%c1, %c0_2, %c0_3] : memref<2x128x16xf32, #tpu.memory_space<vmem>>, vector<1x128x16xf32>
    %10 = vector.shape_cast %9 : vector<1x128x16xf32> to vector<128x16xf32>
    %11 = tpu.transpose %10, [1, 0] : vector<128x16xf32> -> vector<16x128xf32>
    %12 = tpu.concatenate %0, %11, %0 in 0 : vector<1x128xf32>, vector<16x128xf32>, vector<1x128xf32> -> vector<18x128xf32>
    %13 = vector.extract_strided_slice %12 {offsets = [0, 0], sizes = [16, 128], strides = [1, 1]} : vector<18x128xf32> to vector<16x128xf32>
    %14 = vector.extract_strided_slice %12 {offsets = [1, 0], sizes = [16, 128], strides = [1, 1]} : vector<18x128xf32> to vector<16x128xf32>
    %15 = vector.extract_strided_slice %12 {offsets = [2, 0], sizes = [16, 128], strides = [1, 1]} : vector<18x128xf32> to vector<16x128xf32>
    %16 = tpu.concatenate %13, %14, %15 in 1 : vector<16x128xf32>, vector<16x128xf32>, vector<16x128xf32> -> vector<16x384xf32>
    %17 = tpu.concatenate %8, %16 in 0 : vector<16x384xf32>, vector<16x384xf32> -> vector<32x384xf32>
    %18 = arith.truncf %17 : vector<32x384xf32> to vector<32x384xbf16>
    %c0_4 = arith.constant 0 : index
    %c0_5 = arith.constant 0 : index
    %19 = vector.load %arg1[%c0_4, %c0_5] : memref<384x32xbf16, #tpu.memory_space<vmem>>, vector<384x32xbf16>
    %cst_6 = arith.constant dense<0.000000e+00> : vector<32x32xf32>
    %20 = tpu.matmul %18, %19, %cst_6 {dimension_numbers = #tpu.dot_dimension_numbers<[1], [0], [0], [1], [0, 0, 1, 1], [], []>} : vector<32x384xbf16>, vector<384x32xbf16>, vector<32x32xf32> -> vector<32x32xf32>
    %c0_7 = arith.constant 0 : index
    %c0_8 = arith.constant 0 : index
    %21 = vector.load %arg2[%c0_7, %c0_8] : memref<1x32xf32, #tpu.memory_space<vmem>>, vector<1x32xf32>
    %22 = vector.broadcast %21 : vector<1x32xf32> to vector<32x32xf32>
    %23 = arith.addf %20, %22 : vector<32x32xf32>
    %cst_9 = arith.constant 0.000000e+00 : f32
    %24 = vector.broadcast %cst_9 : f32 to vector<32x32xf32>
    %25 = arith.maximumf %23, %24 : vector<32x32xf32>
    %26 = arith.truncf %25 : vector<32x32xf32> to vector<32x32xbf16>
    %c0_10 = arith.constant 0 : index
    %c0_11 = arith.constant 0 : index
    %27 = vector.load %arg3[%c0_10, %c0_11] : memref<32x512xbf16, #tpu.memory_space<vmem>>, vector<32x512xbf16>
    %cst_12 = arith.constant dense<0.000000e+00> : vector<32x512xf32>
    %28 = tpu.matmul %26, %27, %cst_12 {dimension_numbers = #tpu.dot_dimension_numbers<[1], [0], [0], [1], [0, 0, 1, 1], [], []>} : vector<32x32xbf16>, vector<32x512xbf16>, vector<32x512xf32> -> vector<32x512xf32>
    %c0_13 = arith.constant 0 : index
    %c0_14 = arith.constant 0 : index
    %29 = vector.load %arg4[%c0_13, %c0_14] : memref<1x512xf32, #tpu.memory_space<vmem>>, vector<1x512xf32>
    %30 = vector.broadcast %29 : vector<1x512xf32> to vector<32x512xf32>
    %31 = arith.addf %28, %30 : vector<32x512xf32>
    %c0_15 = arith.constant 0 : index
    %c0_16 = arith.constant 0 : index
    %32 = vector.load %arg10[%c0_15, %c0_16] : memref<32x512xf32, #tpu.memory_space<vmem>>, vector<32x512xf32>
    tpu.vector_store %arg10[%c0_15, %c0_16], %31 {strides = array<i32>} : memref<32x512xf32, #tpu.memory_space<vmem>>, vector<32x512xf32>,
    %c0_17 = arith.constant 0 : index
    %c0_18 = arith.constant 0 : index
    %33 = vector.load %arg5[%c0_17, %c0_18] : memref<128x256xbf16, #tpu.memory_space<vmem>>, vector<128x256xbf16>
    %c0_19 = arith.constant 0 : index
    %c0_20 = arith.constant 0 : index
    %34 = vector.load %arg6[%c0_19, %c0_20] : memref<4x128xf32, #tpu.memory_space<vmem>>, vector<4x128xf32>
    %cst_21 = arith.constant 0.000000e+00 : f32
    %35 = vector.broadcast %cst_21 : f32 to vector<2x20x128xf32>
    %c0_22 = arith.constant 0 : index
    %c0_23 = arith.constant 0 : index
    %c0_24 = arith.constant 0 : index
    %36 = vector.load %arg11[%c0_22, %c0_23, %c0_24] : memref<2x20x128xf32, #tpu.memory_space<vmem>>, vector<2x20x128xf32>
    tpu.vector_store %arg11[%c0_22, %c0_23, %c0_24], %35 {strides = array<i32>} : memref<2x20x128xf32, #tpu.memory_space<vmem>>, vector<2x20x128xf32>,
    %cst_25 = arith.constant 0.000000e+00 : bf16
    %37 = vector.broadcast %cst_25 : bf16 to vector<4x128xbf16>
    %cst_26 = arith.constant 0.000000e+00 : f32
    %38 = vector.broadcast %cst_26 : f32 to vector<4x64xf32>
    %c0_27 = arith.constant 0 : index
    %c0_28 = arith.constant 0 : index
    %39 = vector.load %arg10[%c0_27, %c0_28] : memref<32x512xf32, #tpu.memory_space<vmem>>, vector<1x256xf32>
    %c16 = arith.constant 16 : index
    %c0_29 = arith.constant 0 : index
    %40 = vector.load %arg10[%c16, %c0_29] : memref<32x512xf32, #tpu.memory_space<vmem>>, vector<1x256xf32>
    %c15 = arith.constant 15 : index
    %c256 = arith.constant 256 : index
    %41 = vector.load %arg10[%c15, %c256] : memref<32x512xf32, #tpu.memory_space<vmem>>, vector<1x256xf32>
    %c31 = arith.constant 31 : index
    %c256_30 = arith.constant 256 : index
    %42 = vector.load %arg10[%c31, %c256_30] : memref<32x512xf32, #tpu.memory_space<vmem>>, vector<1x256xf32>
    %43 = tpu.concatenate %39, %40, %41, %42 in 0 : vector<1x256xf32>, vector<1x256xf32>, vector<1x256xf32>, vector<1x256xf32> -> vector<4x256xf32>
    %cst_31 = arith.constant dense<0.000000e+00> : vector<4x256xf32>
    %44 = tpu.matmul %37, %33, %cst_31 {dimension_numbers = #tpu.dot_dimension_numbers<[1], [0], [0], [1], [0, 0, 1, 1], [], []>} : vector<4x128xbf16>, vector<128x256xbf16>, vector<4x256xf32> -> vector<4x256xf32>
    %45 = arith.addf %43, %44 : vector<4x256xf32>
    %46 = vector.extract_strided_slice %45 {offsets = [0, 0], sizes = [4, 192], strides = [1, 1]} : vector<4x256xf32> to vector<4x192xf32>
    %47 = arith.negf %46 : vector<4x192xf32>
    %48 = math.exp %47 : vector<4x192xf32>
    %cst_32 = arith.constant 1.000000e+00 : f32
    %49 = vector.broadcast %cst_32 : f32 to vector<4x192xf32>
    %50 = arith.addf %49, %48 : vector<4x192xf32>
    %51 = arith.divf %49, %50 : vector<4x192xf32>
    %52 = vector.extract_strided_slice %51 {offsets = [0, 0], sizes = [4, 64], strides = [1, 1]} : vector<4x192xf32> to vector<4x64xf32>
    %53 = vector.extract_strided_slice %51 {offsets = [0, 64], sizes = [4, 64], strides = [1, 1]} : vector<4x192xf32> to vector<4x64xf32>
    %54 = vector.extract_strided_slice %51 {offsets = [0, 128], sizes = [4, 64], strides = [1, 1]} : vector<4x192xf32> to vector<4x64xf32>
    %55 = vector.extract_strided_slice %45 {offsets = [0, 192], sizes = [4, 64], strides = [1, 1]} : vector<4x256xf32> to vector<4x64xf32>
    %56 = math.tanh %55 : vector<4x64xf32>
    %57 = arith.mulf %53, %38 : vector<4x64xf32>
    %58 = arith.mulf %52, %56 : vector<4x64xf32>
    %59 = arith.addf %57, %58 : vector<4x64xf32>
    %60 = math.tanh %59 : vector<4x64xf32>
    %61 = arith.mulf %54, %60 : vector<4x64xf32>
    %62 = vector.extract_strided_slice %61 {offsets = [0, 0], sizes = [2, 64], strides = [1, 1]} : vector<4x64xf32> to vector<2x64xf32>
    %c0_33 = arith.constant 0 : index
    %c2 = arith.constant 2 : index
    %c0_34 = arith.constant 0 : index
    %63 = vector.load %arg11[%c0_33, %c2, %c0_34] : memref<2x20x128xf32, #tpu.memory_space<vmem>>, vector<2x1x64xf32>
    %64 = vector.shape_cast %63 : vector<2x1x64xf32> to vector<2x64xf32>
    %65 = vector.shape_cast %62 : vector<2x64xf32> to vector<2x1x64xf32>
    tpu.vector_store %arg11[%c0_33, %c2, %c0_34], %65 {strides = array<i32>} : memref<2x20x128xf32, #tpu.memory_space<vmem>>, vector<2x1x64xf32>,
    %66 = vector.extract_strided_slice %61 {offsets = [2, 0], sizes = [2, 64], strides = [1, 1]} : vector<4x64xf32> to vector<2x64xf32>
    %c0_35 = arith.constant 0 : index
    %c17 = arith.constant 17 : index
    %c64 = arith.constant 64 : index
    %67 = vector.load %arg11[%c0_35, %c17, %c64] : memref<2x20x128xf32, #tpu.memory_space<vmem>>, vector<2x1x64xf32>
    %68 = vector.shape_cast %67 : vector<2x1x64xf32> to vector<2x64xf32>
    %69 = vector.shape_cast %66 : vector<2x64xf32> to vector<2x1x64xf32>
    tpu.vector_store %arg11[%c0_35, %c17, %c64], %69 {strides = array<i32>} : memref<2x20x128xf32, #tpu.memory_space<vmem>>, vector<2x1x64xf32>,
    %70 = tpu.concatenate %61, %61 in 1 : vector<4x64xf32>, vector<4x64xf32> -> vector<4x128xf32>
    %71 = arith.mulf %70, %34 : vector<4x128xf32>
    %72 = arith.truncf %71 : vector<4x128xf32> to vector<4x128xbf16>
    %c1_36 = arith.constant 1 : index
    %c0_37 = arith.constant 0 : index
    %73 = vector.load %arg10[%c1_36, %c0_37] : memref<32x512xf32, #tpu.memory_space<vmem>>, vector<1x256xf32>
    %c17_38 = arith.constant 17 : index
    %c0_39 = arith.constant 0 : index
    %74 = vector.load %arg10[%c17_38, %c0_39] : memref<32x512xf32, #tpu.memory_space<vmem>>, vector<1x256xf32>
    %c14 = arith.constant 14 : index
    %c256_40 = arith.constant 256 : index
    %75 = vector.load %arg10[%c14, %c256_40] : memref<32x512xf32, #tpu.memory_space<vmem>>, vector<1x256xf32>
    %c30 = arith.constant 30 : index
    %c256_41 = arith.constant 256 : index
    %76 = vector.load %arg10[%c30, %c256_41] : memref<32x512xf32, #tpu.memory_space<vmem>>, vector<1x256xf32>
    %77 = tpu.concatenate %73, %74, %75, %76 in 0 : vector<1x256xf32>, vector<1x256xf32>, vector<1x256xf32>, vector<1x256xf32> -> vector<4x256xf32>
    %cst_42 = arith.constant dense<0.000000e+00> : vector<4x256xf32>
    %78 = tpu.matmul %72, %33, %cst_42 {dimension_numbers = #tpu.dot_dimension_numbers<[1], [0], [0], [1], [0, 0, 1, 1], [], []>} : vector<4x128xbf16>, vector<128x256xbf16>, vector<4x256xf32> -> vector<4x256xf32>
    %79 = arith.addf %77, %78 : vector<4x256xf32>
    %80 = vector.extract_strided_slice %79 {offsets = [0, 0], sizes = [4, 192], strides = [1, 1]} : vector<4x256xf32> to vector<4x192xf32>
    %81 = arith.negf %80 : vector<4x192xf32>
    %82 = math.exp %81 : vector<4x192xf32>
    %cst_43 = arith.constant 1.000000e+00 : f32
    %83 = vector.broadcast %cst_43 : f32 to vector<4x192xf32>
    %84 = arith.addf %83, %82 : vector<4x192xf32>
    %85 = arith.divf %83, %84 : vector<4x192xf32>
    %86 = vector.extract_strided_slice %85 {offsets = [0, 0], sizes = [4, 64], strides = [1, 1]} : vector<4x192xf32> to vector<4x64xf32>
    %87 = vector.extract_strided_slice %85 {offsets = [0, 64], sizes = [4, 64], strides = [1, 1]} : vector<4x192xf32> to vector<4x64xf32>
    %88 = vector.extract_strided_slice %85 {offsets = [0, 128], sizes = [4, 64], strides = [1, 1]} : vector<4x192xf32> to vector<4x64xf32>
    %89 = vector.extract_strided_slice %79 {offsets = [0, 192], sizes = [4, 64], strides = [1, 1]} : vector<4x256xf32> to vector<4x64xf32>
    %90 = math.tanh %89 : vector<4x64xf32>
    %91 = arith.mulf %87, %59 : vector<4x64xf32>
    %92 = arith.mulf %86, %90 : vector<4x64xf32>
    %93 = arith.addf %91, %92 : vector<4x64xf32>
    %94 = math.tanh %93 : vector<4x64xf32>
    %95 = arith.mulf %88, %94 : vector<4x64xf32>
    %96 = vector.extract_strided_slice %95 {offsets = [0, 0], sizes = [2, 64], strides = [1, 1]} : vector<4x64xf32> to vector<2x64xf32>
    %c0_44 = arith.constant 0 : index
    %c3 = arith.constant 3 : index
    %c0_45 = arith.constant 0 : index
    %97 = vector.load %arg11[%c0_44, %c3, %c0_45] : memref<2x20x128xf32, #tpu.memory_space<vmem>>, vector<2x1x64xf32>
    %98 = vector.shape_cast %97 : vector<2x1x64xf32> to vector<2x64xf32>
    %99 = vector.shape_cast %96 : vector<2x64xf32> to vector<2x1x64xf32>
    tpu.vector_store %arg11[%c0_44, %c3, %c0_45], %99 {strides = array<i32>} : memref<2x20x128xf32, #tpu.memory_space<vmem>>, vector<2x1x64xf32>,
    %100 = vector.extract_strided_slice %95 {offsets = [2, 0], sizes = [2, 64], strides = [1, 1]} : vector<4x64xf32> to vector<2x64xf32>
    %c0_46 = arith.constant 0 : index
    %c16_47 = arith.constant 16 : index
    %c64_48 = arith.constant 64 : index
    %101 = vector.load %arg11[%c0_46, %c16_47, %c64_48] : memref<2x20x128xf32, #tpu.memory_space<vmem>>, vector<2x1x64xf32>
    %102 = vector.shape_cast %101 : vector<2x1x64xf32> to vector<2x64xf32>
    %103 = vector.shape_cast %100 : vector<2x64xf32> to vector<2x1x64xf32>
    tpu.vector_store %arg11[%c0_46, %c16_47, %c64_48], %103 {strides = array<i32>} : memref<2x20x128xf32, #tpu.memory_space<vmem>>, vector<2x1x64xf32>,
    %104 = tpu.concatenate %95, %95 in 1 : vector<4x64xf32>, vector<4x64xf32> -> vector<4x128xf32>
    %105 = arith.mulf %104, %34 : vector<4x128xf32>
    %106 = arith.truncf %105 : vector<4x128xf32> to vector<4x128xbf16>
    %c2_49 = arith.constant 2 : index
    %c0_50 = arith.constant 0 : index
    %107 = vector.load %arg10[%c2_49, %c0_50] : memref<32x512xf32, #tpu.memory_space<vmem>>, vector<1x256xf32>
    %c18 = arith.constant 18 : index
    %c0_51 = arith.constant 0 : index
    %108 = vector.load %arg10[%c18, %c0_51] : memref<32x512xf32, #tpu.memory_space<vmem>>, vector<1x256xf32>
    %c13 = arith.constant 13 : index
    %c256_52 = arith.constant 256 : index
    %109 = vector.load %arg10[%c13, %c256_52] : memref<32x512xf32, #tpu.memory_space<vmem>>, vector<1x256xf32>
    %c29 = arith.constant 29 : index
    %c256_53 = arith.constant 256 : index
    %110 = vector.load %arg10[%c29, %c256_53] : memref<32x512xf32, #tpu.memory_space<vmem>>, vector<1x256xf32>
    %111 = tpu.concatenate %107, %108, %109, %110 in 0 : vector<1x256xf32>, vector<1x256xf32>, vector<1x256xf32>, vector<1x256xf32> -> vector<4x256xf32>
    %cst_54 = arith.constant dense<0.000000e+00> : vector<4x256xf32>
    %112 = tpu.matmul %106, %33, %cst_54 {dimension_numbers = #tpu.dot_dimension_numbers<[1], [0], [0], [1], [0, 0, 1, 1], [], []>} : vector<4x128xbf16>, vector<128x256xbf16>, vector<4x256xf32> -> vector<4x256xf32>
    %113 = arith.addf %111, %112 : vector<4x256xf32>
    %114 = vector.extract_strided_slice %113 {offsets = [0, 0], sizes = [4, 192], strides = [1, 1]} : vector<4x256xf32> to vector<4x192xf32>
    %115 = arith.negf %114 : vector<4x192xf32>
    %116 = math.exp %115 : vector<4x192xf32>
    %cst_55 = arith.constant 1.000000e+00 : f32
    %117 = vector.broadcast %cst_55 : f32 to vector<4x192xf32>
    %118 = arith.addf %117, %116 : vector<4x192xf32>
    %119 = arith.divf %117, %118 : vector<4x192xf32>
    %120 = vector.extract_strided_slice %119 {offsets = [0, 0], sizes = [4, 64], strides = [1, 1]} : vector<4x192xf32> to vector<4x64xf32>
    %121 = vector.extract_strided_slice %119 {offsets = [0, 64], sizes = [4, 64], strides = [1, 1]} : vector<4x192xf32> to vector<4x64xf32>
    %122 = vector.extract_strided_slice %119 {offsets = [0, 128], sizes = [4, 64], strides = [1, 1]} : vector<4x192xf32> to vector<4x64xf32>
    %123 = vector.extract_strided_slice %113 {offsets = [0, 192], sizes = [4, 64], strides = [1, 1]} : vector<4x256xf32> to vector<4x64xf32>
    %124 = math.tanh %123 : vector<4x64xf32>
    %125 = arith.mulf %121, %93 : vector<4x64xf32>
    %126 = arith.mulf %120, %124 : vector<4x64xf32>
    %127 = arith.addf %125, %126 : vector<4x64xf32>
    %128 = math.tanh %127 : vector<4x64xf32>
    %129 = arith.mulf %122, %128 : vector<4x64xf32>
    %130 = vector.extract_strided_slice %129 {offsets = [0, 0], sizes = [2, 64], strides = [1, 1]} : vector<4x64xf32> to vector<2x64xf32>
    %c0_56 = arith.constant 0 : index
    %c4 = arith.constant 4 : index
    %c0_57 = arith.constant 0 : index
    %131 = vector.load %arg11[%c0_56, %c4, %c0_57] : memref<2x20x128xf32, #tpu.memory_space<vmem>>, vector<2x1x64xf32>
    %132 = vector.shape_cast %131 : vector<2x1x64xf32> to vector<2x64xf32>
    %133 = vector.shape_cast %130 : vector<2x64xf32> to vector<2x1x64xf32>
    tpu.vector_store %arg11[%c0_56, %c4, %c0_57], %133 {strides = array<i32>} : memref<2x20x128xf32, #tpu.memory_space<vmem>>, vector<2x1x64xf32>,
    %134 = vector.extract_strided_slice %129 {offsets = [2, 0], sizes = [2, 64], strides = [1, 1]} : vector<4x64xf32> to vector<2x64xf32>
    %c0_58 = arith.constant 0 : index
    %c15_59 = arith.constant 15 : index
    %c64_60 = arith.constant 64 : index
    %135 = vector.load %arg11[%c0_58, %c15_59, %c64_60] : memref<2x20x128xf32, #tpu.memory_space<vmem>>, vector<2x1x64xf32>
    %136 = vector.shape_cast %135 : vector<2x1x64xf32> to vector<2x64xf32>
    %137 = vector.shape_cast %134 : vector<2x64xf32> to vector<2x1x64xf32>
    tpu.vector_store %arg11[%c0_58, %c15_59, %c64_60], %137 {strides = array<i32>} : memref<2x20x128xf32, #tpu.memory_space<vmem>>, vector<2x1x64xf32>,
    %138 = tpu.concatenate %129, %129 in 1 : vector<4x64xf32>, vector<4x64xf32> -> vector<4x128xf32>
    %139 = arith.mulf %138, %34 : vector<4x128xf32>
    %140 = arith.truncf %139 : vector<4x128xf32> to vector<4x128xbf16>
    %c3_61 = arith.constant 3 : index
    %c0_62 = arith.constant 0 : index
    %141 = vector.load %arg10[%c3_61, %c0_62] : memref<32x512xf32, #tpu.memory_space<vmem>>, vector<1x256xf32>
    %c19 = arith.constant 19 : index
    %c0_63 = arith.constant 0 : index
    %142 = vector.load %arg10[%c19, %c0_63] : memref<32x512xf32, #tpu.memory_space<vmem>>, vector<1x256xf32>
    %c12 = arith.constant 12 : index
    %c256_64 = arith.constant 256 : index
    %143 = vector.load %arg10[%c12, %c256_64] : memref<32x512xf32, #tpu.memory_space<vmem>>, vector<1x256xf32>
    %c28 = arith.constant 28 : index
    %c256_65 = arith.constant 256 : index
    %144 = vector.load %arg10[%c28, %c256_65] : memref<32x512xf32, #tpu.memory_space<vmem>>, vector<1x256xf32>
    %145 = tpu.concatenate %141, %142, %143, %144 in 0 : vector<1x256xf32>, vector<1x256xf32>, vector<1x256xf32>, vector<1x256xf32> -> vector<4x256xf32>
    %cst_66 = arith.constant dense<0.000000e+00> : vector<4x256xf32>
    %146 = tpu.matmul %140, %33, %cst_66 {dimension_numbers = #tpu.dot_dimension_numbers<[1], [0], [0], [1], [0, 0, 1, 1], [], []>} : vector<4x128xbf16>, vector<128x256xbf16>, vector<4x256xf32> -> vector<4x256xf32>
    %147 = arith.addf %145, %146 : vector<4x256xf32>
    %148 = vector.extract_strided_slice %147 {offsets = [0, 0], sizes = [4, 192], strides = [1, 1]} : vector<4x256xf32> to vector<4x192xf32>
    %149 = arith.negf %148 : vector<4x192xf32>
    %150 = math.exp %149 : vector<4x192xf32>
    %cst_67 = arith.constant 1.000000e+00 : f32
    %151 = vector.broadcast %cst_67 : f32 to vector<4x192xf32>
    %152 = arith.addf %151, %150 : vector<4x192xf32>
    %153 = arith.divf %151, %152 : vector<4x192xf32>
    %154 = vector.extract_strided_slice %153 {offsets = [0, 0], sizes = [4, 64], strides = [1, 1]} : vector<4x192xf32> to vector<4x64xf32>
    %155 = vector.extract_strided_slice %153 {offsets = [0, 64], sizes = [4, 64], strides = [1, 1]} : vector<4x192xf32> to vector<4x64xf32>
    %156 = vector.extract_strided_slice %153 {offsets = [0, 128], sizes = [4, 64], strides = [1, 1]} : vector<4x192xf32> to vector<4x64xf32>
    %157 = vector.extract_strided_slice %147 {offsets = [0, 192], sizes = [4, 64], strides = [1, 1]} : vector<4x256xf32> to vector<4x64xf32>
    %158 = math.tanh %157 : vector<4x64xf32>
    %159 = arith.mulf %155, %127 : vector<4x64xf32>
    %160 = arith.mulf %154, %158 : vector<4x64xf32>
    %161 = arith.addf %159, %160 : vector<4x64xf32>
    %162 = math.tanh %161 : vector<4x64xf32>
    %163 = arith.mulf %156, %162 : vector<4x64xf32>
    %164 = vector.extract_strided_slice %163 {offsets = [0, 0], sizes = [2, 64], strides = [1, 1]} : vector<4x64xf32> to vector<2x64xf32>
    %c0_68 = arith.constant 0 : index
    %c5 = arith.constant 5 : index
    %c0_69 = arith.constant 0 : index
    %165 = vector.load %arg11[%c0_68, %c5, %c0_69] : memref<2x20x128xf32, #tpu.memory_space<vmem>>, vector<2x1x64xf32>
    %166 = vector.shape_cast %165 : vector<2x1x64xf32> to vector<2x64xf32>
    %167 = vector.shape_cast %164 : vector<2x64xf32> to vector<2x1x64xf32>
    tpu.vector_store %arg11[%c0_68, %c5, %c0_69], %167 {strides = array<i32>} : memref<2x20x128xf32, #tpu.memory_space<vmem>>, vector<2x1x64xf32>,
    %168 = vector.extract_strided_slice %163 {offsets = [2, 0], sizes = [2, 64], strides = [1, 1]} : vector<4x64xf32> to vector<2x64xf32>
    %c0_70 = arith.constant 0 : index
    %c14_71 = arith.constant 14 : index
    %c64_72 = arith.constant 64 : index
    %169 = vector.load %arg11[%c0_70, %c14_71, %c64_72] : memref<2x20x128xf32, #tpu.memory_space<vmem>>, vector<2x1x64xf32>
    %170 = vector.shape_cast %169 : vector<2x1x64xf32> to vector<2x64xf32>
    %171 = vector.shape_cast %168 : vector<2x64xf32> to vector<2x1x64xf32>
    tpu.vector_store %arg11[%c0_70, %c14_71, %c64_72], %171 {strides = array<i32>} : memref<2x20x128xf32, #tpu.memory_space<vmem>>, vector<2x1x64xf32>,
    %172 = tpu.concatenate %163, %163 in 1 : vector<4x64xf32>, vector<4x64xf32> -> vector<4x128xf32>
    %173 = arith.mulf %172, %34 : vector<4x128xf32>
    %174 = arith.truncf %173 : vector<4x128xf32> to vector<4x128xbf16>
    %c4_73 = arith.constant 4 : index
    %c0_74 = arith.constant 0 : index
    %175 = vector.load %arg10[%c4_73, %c0_74] : memref<32x512xf32, #tpu.memory_space<vmem>>, vector<1x256xf32>
    %c20 = arith.constant 20 : index
    %c0_75 = arith.constant 0 : index
    %176 = vector.load %arg10[%c20, %c0_75] : memref<32x512xf32, #tpu.memory_space<vmem>>, vector<1x256xf32>
    %c11 = arith.constant 11 : index
    %c256_76 = arith.constant 256 : index
    %177 = vector.load %arg10[%c11, %c256_76] : memref<32x512xf32, #tpu.memory_space<vmem>>, vector<1x256xf32>
    %c27 = arith.constant 27 : index
    %c256_77 = arith.constant 256 : index
    %178 = vector.load %arg10[%c27, %c256_77] : memref<32x512xf32, #tpu.memory_space<vmem>>, vector<1x256xf32>
    %179 = tpu.concatenate %175, %176, %177, %178 in 0 : vector<1x256xf32>, vector<1x256xf32>, vector<1x256xf32>, vector<1x256xf32> -> vector<4x256xf32>
    %cst_78 = arith.constant dense<0.000000e+00> : vector<4x256xf32>
    %180 = tpu.matmul %174, %33, %cst_78 {dimension_numbers = #tpu.dot_dimension_numbers<[1], [0], [0], [1], [0, 0, 1, 1], [], []>} : vector<4x128xbf16>, vector<128x256xbf16>, vector<4x256xf32> -> vector<4x256xf32>
    %181 = arith.addf %179, %180 : vector<4x256xf32>
    %182 = vector.extract_strided_slice %181 {offsets = [0, 0], sizes = [4, 192], strides = [1, 1]} : vector<4x256xf32> to vector<4x192xf32>
    %183 = arith.negf %182 : vector<4x192xf32>
    %184 = math.exp %183 : vector<4x192xf32>
    %cst_79 = arith.constant 1.000000e+00 : f32
    %185 = vector.broadcast %cst_79 : f32 to vector<4x192xf32>
    %186 = arith.addf %185, %184 : vector<4x192xf32>
    %187 = arith.divf %185, %186 : vector<4x192xf32>
    %188 = vector.extract_strided_slice %187 {offsets = [0, 0], sizes = [4, 64], strides = [1, 1]} : vector<4x192xf32> to vector<4x64xf32>
    %189 = vector.extract_strided_slice %187 {offsets = [0, 64], sizes = [4, 64], strides = [1, 1]} : vector<4x192xf32> to vector<4x64xf32>
    %190 = vector.extract_strided_slice %187 {offsets = [0, 128], sizes = [4, 64], strides = [1, 1]} : vector<4x192xf32> to vector<4x64xf32>
    %191 = vector.extract_strided_slice %181 {offsets = [0, 192], sizes = [4, 64], strides = [1, 1]} : vector<4x256xf32> to vector<4x64xf32>
    %192 = math.tanh %191 : vector<4x64xf32>
    %193 = arith.mulf %189, %161 : vector<4x64xf32>
    %194 = arith.mulf %188, %192 : vector<4x64xf32>
    %195 = arith.addf %193, %194 : vector<4x64xf32>
    %196 = math.tanh %195 : vector<4x64xf32>
    %197 = arith.mulf %190, %196 : vector<4x64xf32>
    %198 = vector.extract_strided_slice %197 {offsets = [0, 0], sizes = [2, 64], strides = [1, 1]} : vector<4x64xf32> to vector<2x64xf32>
    %c0_80 = arith.constant 0 : index
    %c6 = arith.constant 6 : index
    %c0_81 = arith.constant 0 : index
    %199 = vector.load %arg11[%c0_80, %c6, %c0_81] : memref<2x20x128xf32, #tpu.memory_space<vmem>>, vector<2x1x64xf32>
    %200 = vector.shape_cast %199 : vector<2x1x64xf32> to vector<2x64xf32>
    %201 = vector.shape_cast %198 : vector<2x64xf32> to vector<2x1x64xf32>
    tpu.vector_store %arg11[%c0_80, %c6, %c0_81], %201 {strides = array<i32>} : memref<2x20x128xf32, #tpu.memory_space<vmem>>, vector<2x1x64xf32>,
    %202 = vector.extract_strided_slice %197 {offsets = [2, 0], sizes = [2, 64], strides = [1, 1]} : vector<4x64xf32> to vector<2x64xf32>
    %c0_82 = arith.constant 0 : index
    %c13_83 = arith.constant 13 : index
    %c64_84 = arith.constant 64 : index
    %203 = vector.load %arg11[%c0_82, %c13_83, %c64_84] : memref<2x20x128xf32, #tpu.memory_space<vmem>>, vector<2x1x64xf32>
    %204 = vector.shape_cast %203 : vector<2x1x64xf32> to vector<2x64xf32>
    %205 = vector.shape_cast %202 : vector<2x64xf32> to vector<2x1x64xf32>
    tpu.vector_store %arg11[%c0_82, %c13_83, %c64_84], %205 {strides = array<i32>} : memref<2x20x128xf32, #tpu.memory_space<vmem>>, vector<2x1x64xf32>,
    %206 = tpu.concatenate %197, %197 in 1 : vector<4x64xf32>, vector<4x64xf32> -> vector<4x128xf32>
    %207 = arith.mulf %206, %34 : vector<4x128xf32>
    %208 = arith.truncf %207 : vector<4x128xf32> to vector<4x128xbf16>
    %c5_85 = arith.constant 5 : index
    %c0_86 = arith.constant 0 : index
    %209 = vector.load %arg10[%c5_85, %c0_86] : memref<32x512xf32, #tpu.memory_space<vmem>>, vector<1x256xf32>
    %c21 = arith.constant 21 : index
    %c0_87 = arith.constant 0 : index
    %210 = vector.load %arg10[%c21, %c0_87] : memref<32x512xf32, #tpu.memory_space<vmem>>, vector<1x256xf32>
    %c10 = arith.constant 10 : index
    %c256_88 = arith.constant 256 : index
    %211 = vector.load %arg10[%c10, %c256_88] : memref<32x512xf32, #tpu.memory_space<vmem>>, vector<1x256xf32>
    %c26 = arith.constant 26 : index
    %c256_89 = arith.constant 256 : index
    %212 = vector.load %arg10[%c26, %c256_89] : memref<32x512xf32, #tpu.memory_space<vmem>>, vector<1x256xf32>
    %213 = tpu.concatenate %209, %210, %211, %212 in 0 : vector<1x256xf32>, vector<1x256xf32>, vector<1x256xf32>, vector<1x256xf32> -> vector<4x256xf32>
    %cst_90 = arith.constant dense<0.000000e+00> : vector<4x256xf32>
    %214 = tpu.matmul %208, %33, %cst_90 {dimension_numbers = #tpu.dot_dimension_numbers<[1], [0], [0], [1], [0, 0, 1, 1], [], []>} : vector<4x128xbf16>, vector<128x256xbf16>, vector<4x256xf32> -> vector<4x256xf32>
    %215 = arith.addf %213, %214 : vector<4x256xf32>
    %216 = vector.extract_strided_slice %215 {offsets = [0, 0], sizes = [4, 192], strides = [1, 1]} : vector<4x256xf32> to vector<4x192xf32>
    %217 = arith.negf %216 : vector<4x192xf32>
    %218 = math.exp %217 : vector<4x192xf32>
    %cst_91 = arith.constant 1.000000e+00 : f32
    %219 = vector.broadcast %cst_91 : f32 to vector<4x192xf32>
    %220 = arith.addf %219, %218 : vector<4x192xf32>
    %221 = arith.divf %219, %220 : vector<4x192xf32>
    %222 = vector.extract_strided_slice %221 {offsets = [0, 0], sizes = [4, 64], strides = [1, 1]} : vector<4x192xf32> to vector<4x64xf32>
    %223 = vector.extract_strided_slice %221 {offsets = [0, 64], sizes = [4, 64], strides = [1, 1]} : vector<4x192xf32> to vector<4x64xf32>
    %224 = vector.extract_strided_slice %221 {offsets = [0, 128], sizes = [4, 64], strides = [1, 1]} : vector<4x192xf32> to vector<4x64xf32>
    %225 = vector.extract_strided_slice %215 {offsets = [0, 192], sizes = [4, 64], strides = [1, 1]} : vector<4x256xf32> to vector<4x64xf32>
    %226 = math.tanh %225 : vector<4x64xf32>
    %227 = arith.mulf %223, %195 : vector<4x64xf32>
    %228 = arith.mulf %222, %226 : vector<4x64xf32>
    %229 = arith.addf %227, %228 : vector<4x64xf32>
    %230 = math.tanh %229 : vector<4x64xf32>
    %231 = arith.mulf %224, %230 : vector<4x64xf32>
    %232 = vector.extract_strided_slice %231 {offsets = [0, 0], sizes = [2, 64], strides = [1, 1]} : vector<4x64xf32> to vector<2x64xf32>
    %c0_92 = arith.constant 0 : index
    %c7 = arith.constant 7 : index
    %c0_93 = arith.constant 0 : index
    %233 = vector.load %arg11[%c0_92, %c7, %c0_93] : memref<2x20x128xf32, #tpu.memory_space<vmem>>, vector<2x1x64xf32>
    %234 = vector.shape_cast %233 : vector<2x1x64xf32> to vector<2x64xf32>
    %235 = vector.shape_cast %232 : vector<2x64xf32> to vector<2x1x64xf32>
    tpu.vector_store %arg11[%c0_92, %c7, %c0_93], %235 {strides = array<i32>} : memref<2x20x128xf32, #tpu.memory_space<vmem>>, vector<2x1x64xf32>,
    %236 = vector.extract_strided_slice %231 {offsets = [2, 0], sizes = [2, 64], strides = [1, 1]} : vector<4x64xf32> to vector<2x64xf32>
    %c0_94 = arith.constant 0 : index
    %c12_95 = arith.constant 12 : index
    %c64_96 = arith.constant 64 : index
    %237 = vector.load %arg11[%c0_94, %c12_95, %c64_96] : memref<2x20x128xf32, #tpu.memory_space<vmem>>, vector<2x1x64xf32>
    %238 = vector.shape_cast %237 : vector<2x1x64xf32> to vector<2x64xf32>
    %239 = vector.shape_cast %236 : vector<2x64xf32> to vector<2x1x64xf32>
    tpu.vector_store %arg11[%c0_94, %c12_95, %c64_96], %239 {strides = array<i32>} : memref<2x20x128xf32, #tpu.memory_space<vmem>>, vector<2x1x64xf32>,
    %240 = tpu.concatenate %231, %231 in 1 : vector<4x64xf32>, vector<4x64xf32> -> vector<4x128xf32>
    %241 = arith.mulf %240, %34 : vector<4x128xf32>
    %242 = arith.truncf %241 : vector<4x128xf32> to vector<4x128xbf16>
    %c6_97 = arith.constant 6 : index
    %c0_98 = arith.constant 0 : index
    %243 = vector.load %arg10[%c6_97, %c0_98] : memref<32x512xf32, #tpu.memory_space<vmem>>, vector<1x256xf32>
    %c22 = arith.constant 22 : index
    %c0_99 = arith.constant 0 : index
    %244 = vector.load %arg10[%c22, %c0_99] : memref<32x512xf32, #tpu.memory_space<vmem>>, vector<1x256xf32>
    %c9 = arith.constant 9 : index
    %c256_100 = arith.constant 256 : index
    %245 = vector.load %arg10[%c9, %c256_100] : memref<32x512xf32, #tpu.memory_space<vmem>>, vector<1x256xf32>
    %c25 = arith.constant 25 : index
    %c256_101 = arith.constant 256 : index
    %246 = vector.load %arg10[%c25, %c256_101] : memref<32x512xf32, #tpu.memory_space<vmem>>, vector<1x256xf32>
    %247 = tpu.concatenate %243, %244, %245, %246 in 0 : vector<1x256xf32>, vector<1x256xf32>, vector<1x256xf32>, vector<1x256xf32> -> vector<4x256xf32>
    %cst_102 = arith.constant dense<0.000000e+00> : vector<4x256xf32>
    %248 = tpu.matmul %242, %33, %cst_102 {dimension_numbers = #tpu.dot_dimension_numbers<[1], [0], [0], [1], [0, 0, 1, 1], [], []>} : vector<4x128xbf16>, vector<128x256xbf16>, vector<4x256xf32> -> vector<4x256xf32>
    %249 = arith.addf %247, %248 : vector<4x256xf32>
    %250 = vector.extract_strided_slice %249 {offsets = [0, 0], sizes = [4, 192], strides = [1, 1]} : vector<4x256xf32> to vector<4x192xf32>
    %251 = arith.negf %250 : vector<4x192xf32>
    %252 = math.exp %251 : vector<4x192xf32>
    %cst_103 = arith.constant 1.000000e+00 : f32
    %253 = vector.broadcast %cst_103 : f32 to vector<4x192xf32>
    %254 = arith.addf %253, %252 : vector<4x192xf32>
    %255 = arith.divf %253, %254 : vector<4x192xf32>
    %256 = vector.extract_strided_slice %255 {offsets = [0, 0], sizes = [4, 64], strides = [1, 1]} : vector<4x192xf32> to vector<4x64xf32>
    %257 = vector.extract_strided_slice %255 {offsets = [0, 64], sizes = [4, 64], strides = [1, 1]} : vector<4x192xf32> to vector<4x64xf32>
    %258 = vector.extract_strided_slice %255 {offsets = [0, 128], sizes = [4, 64], strides = [1, 1]} : vector<4x192xf32> to vector<4x64xf32>
    %259 = vector.extract_strided_slice %249 {offsets = [0, 192], sizes = [4, 64], strides = [1, 1]} : vector<4x256xf32> to vector<4x64xf32>
    %260 = math.tanh %259 : vector<4x64xf32>
    %261 = arith.mulf %257, %229 : vector<4x64xf32>
    %262 = arith.mulf %256, %260 : vector<4x64xf32>
    %263 = arith.addf %261, %262 : vector<4x64xf32>
    %264 = math.tanh %263 : vector<4x64xf32>
    %265 = arith.mulf %258, %264 : vector<4x64xf32>
    %266 = vector.extract_strided_slice %265 {offsets = [0, 0], sizes = [2, 64], strides = [1, 1]} : vector<4x64xf32> to vector<2x64xf32>
    %c0_104 = arith.constant 0 : index
    %c8 = arith.constant 8 : index
    %c0_105 = arith.constant 0 : index
    %267 = vector.load %arg11[%c0_104, %c8, %c0_105] : memref<2x20x128xf32, #tpu.memory_space<vmem>>, vector<2x1x64xf32>
    %268 = vector.shape_cast %267 : vector<2x1x64xf32> to vector<2x64xf32>
    %269 = vector.shape_cast %266 : vector<2x64xf32> to vector<2x1x64xf32>
    tpu.vector_store %arg11[%c0_104, %c8, %c0_105], %269 {strides = array<i32>} : memref<2x20x128xf32, #tpu.memory_space<vmem>>, vector<2x1x64xf32>,
    %270 = vector.extract_strided_slice %265 {offsets = [2, 0], sizes = [2, 64], strides = [1, 1]} : vector<4x64xf32> to vector<2x64xf32>
    %c0_106 = arith.constant 0 : index
    %c11_107 = arith.constant 11 : index
    %c64_108 = arith.constant 64 : index
    %271 = vector.load %arg11[%c0_106, %c11_107, %c64_108] : memref<2x20x128xf32, #tpu.memory_space<vmem>>, vector<2x1x64xf32>
    %272 = vector.shape_cast %271 : vector<2x1x64xf32> to vector<2x64xf32>
    %273 = vector.shape_cast %270 : vector<2x64xf32> to vector<2x1x64xf32>
    tpu.vector_store %arg11[%c0_106, %c11_107, %c64_108], %273 {strides = array<i32>} : memref<2x20x128xf32, #tpu.memory_space<vmem>>, vector<2x1x64xf32>,
    %274 = tpu.concatenate %265, %265 in 1 : vector<4x64xf32>, vector<4x64xf32> -> vector<4x128xf32>
    %275 = arith.mulf %274, %34 : vector<4x128xf32>
    %276 = arith.truncf %275 : vector<4x128xf32> to vector<4x128xbf16>
    %c7_109 = arith.constant 7 : index
    %c0_110 = arith.constant 0 : index
    %277 = vector.load %arg10[%c7_109, %c0_110] : memref<32x512xf32, #tpu.memory_space<vmem>>, vector<1x256xf32>
    %c23 = arith.constant 23 : index
    %c0_111 = arith.constant 0 : index
    %278 = vector.load %arg10[%c23, %c0_111] : memref<32x512xf32, #tpu.memory_space<vmem>>, vector<1x256xf32>
    %c8_112 = arith.constant 8 : index
    %c256_113 = arith.constant 256 : index
    %279 = vector.load %arg10[%c8_112, %c256_113] : memref<32x512xf32, #tpu.memory_space<vmem>>, vector<1x256xf32>
    %c24 = arith.constant 24 : index
    %c256_114 = arith.constant 256 : index
    %280 = vector.load %arg10[%c24, %c256_114] : memref<32x512xf32, #tpu.memory_space<vmem>>, vector<1x256xf32>
    %281 = tpu.concatenate %277, %278, %279, %280 in 0 : vector<1x256xf32>, vector<1x256xf32>, vector<1x256xf32>, vector<1x256xf32> -> vector<4x256xf32>
    %cst_115 = arith.constant dense<0.000000e+00> : vector<4x256xf32>
    %282 = tpu.matmul %276, %33, %cst_115 {dimension_numbers = #tpu.dot_dimension_numbers<[1], [0], [0], [1], [0, 0, 1, 1], [], []>} : vector<4x128xbf16>, vector<128x256xbf16>, vector<4x256xf32> -> vector<4x256xf32>
    %283 = arith.addf %281, %282 : vector<4x256xf32>
    %284 = vector.extract_strided_slice %283 {offsets = [0, 0], sizes = [4, 192], strides = [1, 1]} : vector<4x256xf32> to vector<4x192xf32>
    %285 = arith.negf %284 : vector<4x192xf32>
    %286 = math.exp %285 : vector<4x192xf32>
    %cst_116 = arith.constant 1.000000e+00 : f32
    %287 = vector.broadcast %cst_116 : f32 to vector<4x192xf32>
    %288 = arith.addf %287, %286 : vector<4x192xf32>
    %289 = arith.divf %287, %288 : vector<4x192xf32>
    %290 = vector.extract_strided_slice %289 {offsets = [0, 0], sizes = [4, 64], strides = [1, 1]} : vector<4x192xf32> to vector<4x64xf32>
    %291 = vector.extract_strided_slice %289 {offsets = [0, 64], sizes = [4, 64], strides = [1, 1]} : vector<4x192xf32> to vector<4x64xf32>
    %292 = vector.extract_strided_slice %289 {offsets = [0, 128], sizes = [4, 64], strides = [1, 1]} : vector<4x192xf32> to vector<4x64xf32>
    %293 = vector.extract_strided_slice %283 {offsets = [0, 192], sizes = [4, 64], strides = [1, 1]} : vector<4x256xf32> to vector<4x64xf32>
    %294 = math.tanh %293 : vector<4x64xf32>
    %295 = arith.mulf %291, %263 : vector<4x64xf32>
    %296 = arith.mulf %290, %294 : vector<4x64xf32>
    %297 = arith.addf %295, %296 : vector<4x64xf32>
    %298 = math.tanh %297 : vector<4x64xf32>
    %299 = arith.mulf %292, %298 : vector<4x64xf32>
    %300 = vector.extract_strided_slice %299 {offsets = [0, 0], sizes = [2, 64], strides = [1, 1]} : vector<4x64xf32> to vector<2x64xf32>
    %c0_117 = arith.constant 0 : index
    %c9_118 = arith.constant 9 : index
    %c0_119 = arith.constant 0 : index
    %301 = vector.load %arg11[%c0_117, %c9_118, %c0_119] : memref<2x20x128xf32, #tpu.memory_space<vmem>>, vector<2x1x64xf32>
    %302 = vector.shape_cast %301 : vector<2x1x64xf32> to vector<2x64xf32>
    %303 = vector.shape_cast %300 : vector<2x64xf32> to vector<2x1x64xf32>
    tpu.vector_store %arg11[%c0_117, %c9_118, %c0_119], %303 {strides = array<i32>} : memref<2x20x128xf32, #tpu.memory_space<vmem>>, vector<2x1x64xf32>,
    %304 = vector.extract_strided_slice %299 {offsets = [2, 0], sizes = [2, 64], strides = [1, 1]} : vector<4x64xf32> to vector<2x64xf32>
    %c0_120 = arith.constant 0 : index
    %c10_121 = arith.constant 10 : index
    %c64_122 = arith.constant 64 : index
    %305 = vector.load %arg11[%c0_120, %c10_121, %c64_122] : memref<2x20x128xf32, #tpu.memory_space<vmem>>, vector<2x1x64xf32>
    %306 = vector.shape_cast %305 : vector<2x1x64xf32> to vector<2x64xf32>
    %307 = vector.shape_cast %304 : vector<2x64xf32> to vector<2x1x64xf32>
    tpu.vector_store %arg11[%c0_120, %c10_121, %c64_122], %307 {strides = array<i32>} : memref<2x20x128xf32, #tpu.memory_space<vmem>>, vector<2x1x64xf32>,
    %308 = tpu.concatenate %299, %299 in 1 : vector<4x64xf32>, vector<4x64xf32> -> vector<4x128xf32>
    %309 = arith.mulf %308, %34 : vector<4x128xf32>
    %310 = arith.truncf %309 : vector<4x128xf32> to vector<4x128xbf16>
    %c8_123 = arith.constant 8 : index
    %c0_124 = arith.constant 0 : index
    %311 = vector.load %arg10[%c8_123, %c0_124] : memref<32x512xf32, #tpu.memory_space<vmem>>, vector<1x256xf32>
    %c24_125 = arith.constant 24 : index
    %c0_126 = arith.constant 0 : index
    %312 = vector.load %arg10[%c24_125, %c0_126] : memref<32x512xf32, #tpu.memory_space<vmem>>, vector<1x256xf32>
    %c7_127 = arith.constant 7 : index
    %c256_128 = arith.constant 256 : index
    %313 = vector.load %arg10[%c7_127, %c256_128] : memref<32x512xf32, #tpu.memory_space<vmem>>, vector<1x256xf32>
    %c23_129 = arith.constant 23 : index
    %c256_130 = arith.constant 256 : index
    %314 = vector.load %arg10[%c23_129, %c256_130] : memref<32x512xf32, #tpu.memory_space<vmem>>, vector<1x256xf32>
    %315 = tpu.concatenate %311, %312, %313, %314 in 0 : vector<1x256xf32>, vector<1x256xf32>, vector<1x256xf32>, vector<1x256xf32> -> vector<4x256xf32>
    %cst_131 = arith.constant dense<0.000000e+00> : vector<4x256xf32>
    %316 = tpu.matmul %310, %33, %cst_131 {dimension_numbers = #tpu.dot_dimension_numbers<[1], [0], [0], [1], [0, 0, 1, 1], [], []>} : vector<4x128xbf16>, vector<128x256xbf16>, vector<4x256xf32> -> vector<4x256xf32>
    %317 = arith.addf %315, %316 : vector<4x256xf32>
    %318 = vector.extract_strided_slice %317 {offsets = [0, 0], sizes = [4, 192], strides = [1, 1]} : vector<4x256xf32> to vector<4x192xf32>
    %319 = arith.negf %318 : vector<4x192xf32>
    %320 = math.exp %319 : vector<4x192xf32>
    %cst_132 = arith.constant 1.000000e+00 : f32
    %321 = vector.broadcast %cst_132 : f32 to vector<4x192xf32>
    %322 = arith.addf %321, %320 : vector<4x192xf32>
    %323 = arith.divf %321, %322 : vector<4x192xf32>
    %324 = vector.extract_strided_slice %323 {offsets = [0, 0], sizes = [4, 64], strides = [1, 1]} : vector<4x192xf32> to vector<4x64xf32>
    %325 = vector.extract_strided_slice %323 {offsets = [0, 64], sizes = [4, 64], strides = [1, 1]} : vector<4x192xf32> to vector<4x64xf32>
    %326 = vector.extract_strided_slice %323 {offsets = [0, 128], sizes = [4, 64], strides = [1, 1]} : vector<4x192xf32> to vector<4x64xf32>
    %327 = vector.extract_strided_slice %317 {offsets = [0, 192], sizes = [4, 64], strides = [1, 1]} : vector<4x256xf32> to vector<4x64xf32>
    %328 = math.tanh %327 : vector<4x64xf32>
    %329 = arith.mulf %325, %297 : vector<4x64xf32>
    %330 = arith.mulf %324, %328 : vector<4x64xf32>
    %331 = arith.addf %329, %330 : vector<4x64xf32>
    %332 = math.tanh %331 : vector<4x64xf32>
    %333 = arith.mulf %326, %332 : vector<4x64xf32>
    %334 = vector.extract_strided_slice %333 {offsets = [0, 0], sizes = [2, 64], strides = [1, 1]} : vector<4x64xf32> to vector<2x64xf32>
    %c0_133 = arith.constant 0 : index
    %c10_134 = arith.constant 10 : index
    %c0_135 = arith.constant 0 : index
    %335 = vector.load %arg11[%c0_133, %c10_134, %c0_135] : memref<2x20x128xf32, #tpu.memory_space<vmem>>, vector<2x1x64xf32>
    %336 = vector.shape_cast %335 : vector<2x1x64xf32> to vector<2x64xf32>
    %337 = vector.shape_cast %334 : vector<2x64xf32> to vector<2x1x64xf32>
    tpu.vector_store %arg11[%c0_133, %c10_134, %c0_135], %337 {strides = array<i32>} : memref<2x20x128xf32, #tpu.memory_space<vmem>>, vector<2x1x64xf32>,
    %338 = vector.extract_strided_slice %333 {offsets = [2, 0], sizes = [2, 64], strides = [1, 1]} : vector<4x64xf32> to vector<2x64xf32>
    %c0_136 = arith.constant 0 : index
    %c9_137 = arith.constant 9 : index
    %c64_138 = arith.constant 64 : index
    %339 = vector.load %arg11[%c0_136, %c9_137, %c64_138] : memref<2x20x128xf32, #tpu.memory_space<vmem>>, vector<2x1x64xf32>
    %340 = vector.shape_cast %339 : vector<2x1x64xf32> to vector<2x64xf32>
    %341 = vector.shape_cast %338 : vector<2x64xf32> to vector<2x1x64xf32>
    tpu.vector_store %arg11[%c0_136, %c9_137, %c64_138], %341 {strides = array<i32>} : memref<2x20x128xf32, #tpu.memory_space<vmem>>, vector<2x1x64xf32>,
    %342 = tpu.concatenate %333, %333 in 1 : vector<4x64xf32>, vector<4x64xf32> -> vector<4x128xf32>
    %343 = arith.mulf %342, %34 : vector<4x128xf32>
    %344 = arith.truncf %343 : vector<4x128xf32> to vector<4x128xbf16>
    %c9_139 = arith.constant 9 : index
    %c0_140 = arith.constant 0 : index
    %345 = vector.load %arg10[%c9_139, %c0_140] : memref<32x512xf32, #tpu.memory_space<vmem>>, vector<1x256xf32>
    %c25_141 = arith.constant 25 : index
    %c0_142 = arith.constant 0 : index
    %346 = vector.load %arg10[%c25_141, %c0_142] : memref<32x512xf32, #tpu.memory_space<vmem>>, vector<1x256xf32>
    %c6_143 = arith.constant 6 : index
    %c256_144 = arith.constant 256 : index
    %347 = vector.load %arg10[%c6_143, %c256_144] : memref<32x512xf32, #tpu.memory_space<vmem>>, vector<1x256xf32>
    %c22_145 = arith.constant 22 : index
    %c256_146 = arith.constant 256 : index
    %348 = vector.load %arg10[%c22_145, %c256_146] : memref<32x512xf32, #tpu.memory_space<vmem>>, vector<1x256xf32>
    %349 = tpu.concatenate %345, %346, %347, %348 in 0 : vector<1x256xf32>, vector<1x256xf32>, vector<1x256xf32>, vector<1x256xf32> -> vector<4x256xf32>
    %cst_147 = arith.constant dense<0.000000e+00> : vector<4x256xf32>
    %350 = tpu.matmul %344, %33, %cst_147 {dimension_numbers = #tpu.dot_dimension_numbers<[1], [0], [0], [1], [0, 0, 1, 1], [], []>} : vector<4x128xbf16>, vector<128x256xbf16>, vector<4x256xf32> -> vector<4x256xf32>
    %351 = arith.addf %349, %350 : vector<4x256xf32>
    %352 = vector.extract_strided_slice %351 {offsets = [0, 0], sizes = [4, 192], strides = [1, 1]} : vector<4x256xf32> to vector<4x192xf32>
    %353 = arith.negf %352 : vector<4x192xf32>
    %354 = math.exp %353 : vector<4x192xf32>
    %cst_148 = arith.constant 1.000000e+00 : f32
    %355 = vector.broadcast %cst_148 : f32 to vector<4x192xf32>
    %356 = arith.addf %355, %354 : vector<4x192xf32>
    %357 = arith.divf %355, %356 : vector<4x192xf32>
    %358 = vector.extract_strided_slice %357 {offsets = [0, 0], sizes = [4, 64], strides = [1, 1]} : vector<4x192xf32> to vector<4x64xf32>
    %359 = vector.extract_strided_slice %357 {offsets = [0, 64], sizes = [4, 64], strides = [1, 1]} : vector<4x192xf32> to vector<4x64xf32>
    %360 = vector.extract_strided_slice %357 {offsets = [0, 128], sizes = [4, 64], strides = [1, 1]} : vector<4x192xf32> to vector<4x64xf32>
    %361 = vector.extract_strided_slice %351 {offsets = [0, 192], sizes = [4, 64], strides = [1, 1]} : vector<4x256xf32> to vector<4x64xf32>
    %362 = math.tanh %361 : vector<4x64xf32>
    %363 = arith.mulf %359, %331 : vector<4x64xf32>
    %364 = arith.mulf %358, %362 : vector<4x64xf32>
    %365 = arith.addf %363, %364 : vector<4x64xf32>
    %366 = math.tanh %365 : vector<4x64xf32>
    %367 = arith.mulf %360, %366 : vector<4x64xf32>
    %368 = vector.extract_strided_slice %367 {offsets = [0, 0], sizes = [2, 64], strides = [1, 1]} : vector<4x64xf32> to vector<2x64xf32>
    %c0_149 = arith.constant 0 : index
    %c11_150 = arith.constant 11 : index
    %c0_151 = arith.constant 0 : index
    %369 = vector.load %arg11[%c0_149, %c11_150, %c0_151] : memref<2x20x128xf32, #tpu.memory_space<vmem>>, vector<2x1x64xf32>
    %370 = vector.shape_cast %369 : vector<2x1x64xf32> to vector<2x64xf32>
    %371 = vector.shape_cast %368 : vector<2x64xf32> to vector<2x1x64xf32>
    tpu.vector_store %arg11[%c0_149, %c11_150, %c0_151], %371 {strides = array<i32>} : memref<2x20x128xf32, #tpu.memory_space<vmem>>, vector<2x1x64xf32>,
    %372 = vector.extract_strided_slice %367 {offsets = [2, 0], sizes = [2, 64], strides = [1, 1]} : vector<4x64xf32> to vector<2x64xf32>
    %c0_152 = arith.constant 0 : index
    %c8_153 = arith.constant 8 : index
    %c64_154 = arith.constant 64 : index
    %373 = vector.load %arg11[%c0_152, %c8_153, %c64_154] : memref<2x20x128xf32, #tpu.memory_space<vmem>>, vector<2x1x64xf32>
    %374 = vector.shape_cast %373 : vector<2x1x64xf32> to vector<2x64xf32>
    %375 = vector.shape_cast %372 : vector<2x64xf32> to vector<2x1x64xf32>
    tpu.vector_store %arg11[%c0_152, %c8_153, %c64_154], %375 {strides = array<i32>} : memref<2x20x128xf32, #tpu.memory_space<vmem>>, vector<2x1x64xf32>,
    %376 = tpu.concatenate %367, %367 in 1 : vector<4x64xf32>, vector<4x64xf32> -> vector<4x128xf32>
    %377 = arith.mulf %376, %34 : vector<4x128xf32>
    %378 = arith.truncf %377 : vector<4x128xf32> to vector<4x128xbf16>
    %c10_155 = arith.constant 10 : index
    %c0_156 = arith.constant 0 : index
    %379 = vector.load %arg10[%c10_155, %c0_156] : memref<32x512xf32, #tpu.memory_space<vmem>>, vector<1x256xf32>
    %c26_157 = arith.constant 26 : index
    %c0_158 = arith.constant 0 : index
    %380 = vector.load %arg10[%c26_157, %c0_158] : memref<32x512xf32, #tpu.memory_space<vmem>>, vector<1x256xf32>
    %c5_159 = arith.constant 5 : index
    %c256_160 = arith.constant 256 : index
    %381 = vector.load %arg10[%c5_159, %c256_160] : memref<32x512xf32, #tpu.memory_space<vmem>>, vector<1x256xf32>
    %c21_161 = arith.constant 21 : index
    %c256_162 = arith.constant 256 : index
    %382 = vector.load %arg10[%c21_161, %c256_162] : memref<32x512xf32, #tpu.memory_space<vmem>>, vector<1x256xf32>
    %383 = tpu.concatenate %379, %380, %381, %382 in 0 : vector<1x256xf32>, vector<1x256xf32>, vector<1x256xf32>, vector<1x256xf32> -> vector<4x256xf32>
    %cst_163 = arith.constant dense<0.000000e+00> : vector<4x256xf32>
    %384 = tpu.matmul %378, %33, %cst_163 {dimension_numbers = #tpu.dot_dimension_numbers<[1], [0], [0], [1], [0, 0, 1, 1], [], []>} : vector<4x128xbf16>, vector<128x256xbf16>, vector<4x256xf32> -> vector<4x256xf32>
    %385 = arith.addf %383, %384 : vector<4x256xf32>
    %386 = vector.extract_strided_slice %385 {offsets = [0, 0], sizes = [4, 192], strides = [1, 1]} : vector<4x256xf32> to vector<4x192xf32>
    %387 = arith.negf %386 : vector<4x192xf32>
    %388 = math.exp %387 : vector<4x192xf32>
    %cst_164 = arith.constant 1.000000e+00 : f32
    %389 = vector.broadcast %cst_164 : f32 to vector<4x192xf32>
    %390 = arith.addf %389, %388 : vector<4x192xf32>
    %391 = arith.divf %389, %390 : vector<4x192xf32>
    %392 = vector.extract_strided_slice %391 {offsets = [0, 0], sizes = [4, 64], strides = [1, 1]} : vector<4x192xf32> to vector<4x64xf32>
    %393 = vector.extract_strided_slice %391 {offsets = [0, 64], sizes = [4, 64], strides = [1, 1]} : vector<4x192xf32> to vector<4x64xf32>
    %394 = vector.extract_strided_slice %391 {offsets = [0, 128], sizes = [4, 64], strides = [1, 1]} : vector<4x192xf32> to vector<4x64xf32>
    %395 = vector.extract_strided_slice %385 {offsets = [0, 192], sizes = [4, 64], strides = [1, 1]} : vector<4x256xf32> to vector<4x64xf32>
    %396 = math.tanh %395 : vector<4x64xf32>
    %397 = arith.mulf %393, %365 : vector<4x64xf32>
    %398 = arith.mulf %392, %396 : vector<4x64xf32>
    %399 = arith.addf %397, %398 : vector<4x64xf32>
    %400 = math.tanh %399 : vector<4x64xf32>
    %401 = arith.mulf %394, %400 : vector<4x64xf32>
    %402 = vector.extract_strided_slice %401 {offsets = [0, 0], sizes = [2, 64], strides = [1, 1]} : vector<4x64xf32> to vector<2x64xf32>
    %c0_165 = arith.constant 0 : index
    %c12_166 = arith.constant 12 : index
    %c0_167 = arith.constant 0 : index
    %403 = vector.load %arg11[%c0_165, %c12_166, %c0_167] : memref<2x20x128xf32, #tpu.memory_space<vmem>>, vector<2x1x64xf32>
    %404 = vector.shape_cast %403 : vector<2x1x64xf32> to vector<2x64xf32>
    %405 = vector.shape_cast %402 : vector<2x64xf32> to vector<2x1x64xf32>
    tpu.vector_store %arg11[%c0_165, %c12_166, %c0_167], %405 {strides = array<i32>} : memref<2x20x128xf32, #tpu.memory_space<vmem>>, vector<2x1x64xf32>,
    %406 = vector.extract_strided_slice %401 {offsets = [2, 0], sizes = [2, 64], strides = [1, 1]} : vector<4x64xf32> to vector<2x64xf32>
    %c0_168 = arith.constant 0 : index
    %c7_169 = arith.constant 7 : index
    %c64_170 = arith.constant 64 : index
    %407 = vector.load %arg11[%c0_168, %c7_169, %c64_170] : memref<2x20x128xf32, #tpu.memory_space<vmem>>, vector<2x1x64xf32>
    %408 = vector.shape_cast %407 : vector<2x1x64xf32> to vector<2x64xf32>
    %409 = vector.shape_cast %406 : vector<2x64xf32> to vector<2x1x64xf32>
    tpu.vector_store %arg11[%c0_168, %c7_169, %c64_170], %409 {strides = array<i32>} : memref<2x20x128xf32, #tpu.memory_space<vmem>>, vector<2x1x64xf32>,
    %410 = tpu.concatenate %401, %401 in 1 : vector<4x64xf32>, vector<4x64xf32> -> vector<4x128xf32>
    %411 = arith.mulf %410, %34 : vector<4x128xf32>
    %412 = arith.truncf %411 : vector<4x128xf32> to vector<4x128xbf16>
    %c11_171 = arith.constant 11 : index
    %c0_172 = arith.constant 0 : index
    %413 = vector.load %arg10[%c11_171, %c0_172] : memref<32x512xf32, #tpu.memory_space<vmem>>, vector<1x256xf32>
    %c27_173 = arith.constant 27 : index
    %c0_174 = arith.constant 0 : index
    %414 = vector.load %arg10[%c27_173, %c0_174] : memref<32x512xf32, #tpu.memory_space<vmem>>, vector<1x256xf32>
    %c4_175 = arith.constant 4 : index
    %c256_176 = arith.constant 256 : index
    %415 = vector.load %arg10[%c4_175, %c256_176] : memref<32x512xf32, #tpu.memory_space<vmem>>, vector<1x256xf32>
    %c20_177 = arith.constant 20 : index
    %c256_178 = arith.constant 256 : index
    %416 = vector.load %arg10[%c20_177, %c256_178] : memref<32x512xf32, #tpu.memory_space<vmem>>, vector<1x256xf32>
    %417 = tpu.concatenate %413, %414, %415, %416 in 0 : vector<1x256xf32>, vector<1x256xf32>, vector<1x256xf32>, vector<1x256xf32> -> vector<4x256xf32>
    %cst_179 = arith.constant dense<0.000000e+00> : vector<4x256xf32>
    %418 = tpu.matmul %412, %33, %cst_179 {dimension_numbers = #tpu.dot_dimension_numbers<[1], [0], [0], [1], [0, 0, 1, 1], [], []>} : vector<4x128xbf16>, vector<128x256xbf16>, vector<4x256xf32> -> vector<4x256xf32>
    %419 = arith.addf %417, %418 : vector<4x256xf32>
    %420 = vector.extract_strided_slice %419 {offsets = [0, 0], sizes = [4, 192], strides = [1, 1]} : vector<4x256xf32> to vector<4x192xf32>
    %421 = arith.negf %420 : vector<4x192xf32>
    %422 = math.exp %421 : vector<4x192xf32>
    %cst_180 = arith.constant 1.000000e+00 : f32
    %423 = vector.broadcast %cst_180 : f32 to vector<4x192xf32>
    %424 = arith.addf %423, %422 : vector<4x192xf32>
    %425 = arith.divf %423, %424 : vector<4x192xf32>
    %426 = vector.extract_strided_slice %425 {offsets = [0, 0], sizes = [4, 64], strides = [1, 1]} : vector<4x192xf32> to vector<4x64xf32>
    %427 = vector.extract_strided_slice %425 {offsets = [0, 64], sizes = [4, 64], strides = [1, 1]} : vector<4x192xf32> to vector<4x64xf32>
    %428 = vector.extract_strided_slice %425 {offsets = [0, 128], sizes = [4, 64], strides = [1, 1]} : vector<4x192xf32> to vector<4x64xf32>
    %429 = vector.extract_strided_slice %419 {offsets = [0, 192], sizes = [4, 64], strides = [1, 1]} : vector<4x256xf32> to vector<4x64xf32>
    %430 = math.tanh %429 : vector<4x64xf32>
    %431 = arith.mulf %427, %399 : vector<4x64xf32>
    %432 = arith.mulf %426, %430 : vector<4x64xf32>
    %433 = arith.addf %431, %432 : vector<4x64xf32>
    %434 = math.tanh %433 : vector<4x64xf32>
    %435 = arith.mulf %428, %434 : vector<4x64xf32>
    %436 = vector.extract_strided_slice %435 {offsets = [0, 0], sizes = [2, 64], strides = [1, 1]} : vector<4x64xf32> to vector<2x64xf32>
    %c0_181 = arith.constant 0 : index
    %c13_182 = arith.constant 13 : index
    %c0_183 = arith.constant 0 : index
    %437 = vector.load %arg11[%c0_181, %c13_182, %c0_183] : memref<2x20x128xf32, #tpu.memory_space<vmem>>, vector<2x1x64xf32>
    %438 = vector.shape_cast %437 : vector<2x1x64xf32> to vector<2x64xf32>
    %439 = vector.shape_cast %436 : vector<2x64xf32> to vector<2x1x64xf32>
    tpu.vector_store %arg11[%c0_181, %c13_182, %c0_183], %439 {strides = array<i32>} : memref<2x20x128xf32, #tpu.memory_space<vmem>>, vector<2x1x64xf32>,
    %440 = vector.extract_strided_slice %435 {offsets = [2, 0], sizes = [2, 64], strides = [1, 1]} : vector<4x64xf32> to vector<2x64xf32>
    %c0_184 = arith.constant 0 : index
    %c6_185 = arith.constant 6 : index
    %c64_186 = arith.constant 64 : index
    %441 = vector.load %arg11[%c0_184, %c6_185, %c64_186] : memref<2x20x128xf32, #tpu.memory_space<vmem>>, vector<2x1x64xf32>
    %442 = vector.shape_cast %441 : vector<2x1x64xf32> to vector<2x64xf32>
    %443 = vector.shape_cast %440 : vector<2x64xf32> to vector<2x1x64xf32>
    tpu.vector_store %arg11[%c0_184, %c6_185, %c64_186], %443 {strides = array<i32>} : memref<2x20x128xf32, #tpu.memory_space<vmem>>, vector<2x1x64xf32>,
    %444 = tpu.concatenate %435, %435 in 1 : vector<4x64xf32>, vector<4x64xf32> -> vector<4x128xf32>
    %445 = arith.mulf %444, %34 : vector<4x128xf32>
    %446 = arith.truncf %445 : vector<4x128xf32> to vector<4x128xbf16>
    %c12_187 = arith.constant 12 : index
    %c0_188 = arith.constant 0 : index
    %447 = vector.load %arg10[%c12_187, %c0_188] : memref<32x512xf32, #tpu.memory_space<vmem>>, vector<1x256xf32>
    %c28_189 = arith.constant 28 : index
    %c0_190 = arith.constant 0 : index
    %448 = vector.load %arg10[%c28_189, %c0_190] : memref<32x512xf32, #tpu.memory_space<vmem>>, vector<1x256xf32>
    %c3_191 = arith.constant 3 : index
    %c256_192 = arith.constant 256 : index
    %449 = vector.load %arg10[%c3_191, %c256_192] : memref<32x512xf32, #tpu.memory_space<vmem>>, vector<1x256xf32>
    %c19_193 = arith.constant 19 : index
    %c256_194 = arith.constant 256 : index
    %450 = vector.load %arg10[%c19_193, %c256_194] : memref<32x512xf32, #tpu.memory_space<vmem>>, vector<1x256xf32>
    %451 = tpu.concatenate %447, %448, %449, %450 in 0 : vector<1x256xf32>, vector<1x256xf32>, vector<1x256xf32>, vector<1x256xf32> -> vector<4x256xf32>
    %cst_195 = arith.constant dense<0.000000e+00> : vector<4x256xf32>
    %452 = tpu.matmul %446, %33, %cst_195 {dimension_numbers = #tpu.dot_dimension_numbers<[1], [0], [0], [1], [0, 0, 1, 1], [], []>} : vector<4x128xbf16>, vector<128x256xbf16>, vector<4x256xf32> -> vector<4x256xf32>
    %453 = arith.addf %451, %452 : vector<4x256xf32>
    %454 = vector.extract_strided_slice %453 {offsets = [0, 0], sizes = [4, 192], strides = [1, 1]} : vector<4x256xf32> to vector<4x192xf32>
    %455 = arith.negf %454 : vector<4x192xf32>
    %456 = math.exp %455 : vector<4x192xf32>
    %cst_196 = arith.constant 1.000000e+00 : f32
    %457 = vector.broadcast %cst_196 : f32 to vector<4x192xf32>
    %458 = arith.addf %457, %456 : vector<4x192xf32>
    %459 = arith.divf %457, %458 : vector<4x192xf32>
    %460 = vector.extract_strided_slice %459 {offsets = [0, 0], sizes = [4, 64], strides = [1, 1]} : vector<4x192xf32> to vector<4x64xf32>
    %461 = vector.extract_strided_slice %459 {offsets = [0, 64], sizes = [4, 64], strides = [1, 1]} : vector<4x192xf32> to vector<4x64xf32>
    %462 = vector.extract_strided_slice %459 {offsets = [0, 128], sizes = [4, 64], strides = [1, 1]} : vector<4x192xf32> to vector<4x64xf32>
    %463 = vector.extract_strided_slice %453 {offsets = [0, 192], sizes = [4, 64], strides = [1, 1]} : vector<4x256xf32> to vector<4x64xf32>
    %464 = math.tanh %463 : vector<4x64xf32>
    %465 = arith.mulf %461, %433 : vector<4x64xf32>
    %466 = arith.mulf %460, %464 : vector<4x64xf32>
    %467 = arith.addf %465, %466 : vector<4x64xf32>
    %468 = math.tanh %467 : vector<4x64xf32>
    %469 = arith.mulf %462, %468 : vector<4x64xf32>
    %470 = vector.extract_strided_slice %469 {offsets = [0, 0], sizes = [2, 64], strides = [1, 1]} : vector<4x64xf32> to vector<2x64xf32>
    %c0_197 = arith.constant 0 : index
    %c14_198 = arith.constant 14 : index
    %c0_199 = arith.constant 0 : index
    %471 = vector.load %arg11[%c0_197, %c14_198, %c0_199] : memref<2x20x128xf32, #tpu.memory_space<vmem>>, vector<2x1x64xf32>
    %472 = vector.shape_cast %471 : vector<2x1x64xf32> to vector<2x64xf32>
    %473 = vector.shape_cast %470 : vector<2x64xf32> to vector<2x1x64xf32>
    tpu.vector_store %arg11[%c0_197, %c14_198, %c0_199], %473 {strides = array<i32>} : memref<2x20x128xf32, #tpu.memory_space<vmem>>, vector<2x1x64xf32>,
    %474 = vector.extract_strided_slice %469 {offsets = [2, 0], sizes = [2, 64], strides = [1, 1]} : vector<4x64xf32> to vector<2x64xf32>
    %c0_200 = arith.constant 0 : index
    %c5_201 = arith.constant 5 : index
    %c64_202 = arith.constant 64 : index
    %475 = vector.load %arg11[%c0_200, %c5_201, %c64_202] : memref<2x20x128xf32, #tpu.memory_space<vmem>>, vector<2x1x64xf32>
    %476 = vector.shape_cast %475 : vector<2x1x64xf32> to vector<2x64xf32>
    %477 = vector.shape_cast %474 : vector<2x64xf32> to vector<2x1x64xf32>
    tpu.vector_store %arg11[%c0_200, %c5_201, %c64_202], %477 {strides = array<i32>} : memref<2x20x128xf32, #tpu.memory_space<vmem>>, vector<2x1x64xf32>,
    %478 = tpu.concatenate %469, %469 in 1 : vector<4x64xf32>, vector<4x64xf32> -> vector<4x128xf32>
    %479 = arith.mulf %478, %34 : vector<4x128xf32>
    %480 = arith.truncf %479 : vector<4x128xf32> to vector<4x128xbf16>
    %c13_203 = arith.constant 13 : index
    %c0_204 = arith.constant 0 : index
    %481 = vector.load %arg10[%c13_203, %c0_204] : memref<32x512xf32, #tpu.memory_space<vmem>>, vector<1x256xf32>
    %c29_205 = arith.constant 29 : index
    %c0_206 = arith.constant 0 : index
    %482 = vector.load %arg10[%c29_205, %c0_206] : memref<32x512xf32, #tpu.memory_space<vmem>>, vector<1x256xf32>
    %c2_207 = arith.constant 2 : index
    %c256_208 = arith.constant 256 : index
    %483 = vector.load %arg10[%c2_207, %c256_208] : memref<32x512xf32, #tpu.memory_space<vmem>>, vector<1x256xf32>
    %c18_209 = arith.constant 18 : index
    %c256_210 = arith.constant 256 : index
    %484 = vector.load %arg10[%c18_209, %c256_210] : memref<32x512xf32, #tpu.memory_space<vmem>>, vector<1x256xf32>
    %485 = tpu.concatenate %481, %482, %483, %484 in 0 : vector<1x256xf32>, vector<1x256xf32>, vector<1x256xf32>, vector<1x256xf32> -> vector<4x256xf32>
    %cst_211 = arith.constant dense<0.000000e+00> : vector<4x256xf32>
    %486 = tpu.matmul %480, %33, %cst_211 {dimension_numbers = #tpu.dot_dimension_numbers<[1], [0], [0], [1], [0, 0, 1, 1], [], []>} : vector<4x128xbf16>, vector<128x256xbf16>, vector<4x256xf32> -> vector<4x256xf32>
    %487 = arith.addf %485, %486 : vector<4x256xf32>
    %488 = vector.extract_strided_slice %487 {offsets = [0, 0], sizes = [4, 192], strides = [1, 1]} : vector<4x256xf32> to vector<4x192xf32>
    %489 = arith.negf %488 : vector<4x192xf32>
    %490 = math.exp %489 : vector<4x192xf32>
    %cst_212 = arith.constant 1.000000e+00 : f32
    %491 = vector.broadcast %cst_212 : f32 to vector<4x192xf32>
    %492 = arith.addf %491, %490 : vector<4x192xf32>
    %493 = arith.divf %491, %492 : vector<4x192xf32>
    %494 = vector.extract_strided_slice %493 {offsets = [0, 0], sizes = [4, 64], strides = [1, 1]} : vector<4x192xf32> to vector<4x64xf32>
    %495 = vector.extract_strided_slice %493 {offsets = [0, 64], sizes = [4, 64], strides = [1, 1]} : vector<4x192xf32> to vector<4x64xf32>
    %496 = vector.extract_strided_slice %493 {offsets = [0, 128], sizes = [4, 64], strides = [1, 1]} : vector<4x192xf32> to vector<4x64xf32>
    %497 = vector.extract_strided_slice %487 {offsets = [0, 192], sizes = [4, 64], strides = [1, 1]} : vector<4x256xf32> to vector<4x64xf32>
    %498 = math.tanh %497 : vector<4x64xf32>
    %499 = arith.mulf %495, %467 : vector<4x64xf32>
    %500 = arith.mulf %494, %498 : vector<4x64xf32>
    %501 = arith.addf %499, %500 : vector<4x64xf32>
    %502 = math.tanh %501 : vector<4x64xf32>
    %503 = arith.mulf %496, %502 : vector<4x64xf32>
    %504 = vector.extract_strided_slice %503 {offsets = [0, 0], sizes = [2, 64], strides = [1, 1]} : vector<4x64xf32> to vector<2x64xf32>
    %c0_213 = arith.constant 0 : index
    %c15_214 = arith.constant 15 : index
    %c0_215 = arith.constant 0 : index
    %505 = vector.load %arg11[%c0_213, %c15_214, %c0_215] : memref<2x20x128xf32, #tpu.memory_space<vmem>>, vector<2x1x64xf32>
    %506 = vector.shape_cast %505 : vector<2x1x64xf32> to vector<2x64xf32>
    %507 = vector.shape_cast %504 : vector<2x64xf32> to vector<2x1x64xf32>
    tpu.vector_store %arg11[%c0_213, %c15_214, %c0_215], %507 {strides = array<i32>} : memref<2x20x128xf32, #tpu.memory_space<vmem>>, vector<2x1x64xf32>,
    %508 = vector.extract_strided_slice %503 {offsets = [2, 0], sizes = [2, 64], strides = [1, 1]} : vector<4x64xf32> to vector<2x64xf32>
    %c0_216 = arith.constant 0 : index
    %c4_217 = arith.constant 4 : index
    %c64_218 = arith.constant 64 : index
    %509 = vector.load %arg11[%c0_216, %c4_217, %c64_218] : memref<2x20x128xf32, #tpu.memory_space<vmem>>, vector<2x1x64xf32>
    %510 = vector.shape_cast %509 : vector<2x1x64xf32> to vector<2x64xf32>
    %511 = vector.shape_cast %508 : vector<2x64xf32> to vector<2x1x64xf32>
    tpu.vector_store %arg11[%c0_216, %c4_217, %c64_218], %511 {strides = array<i32>} : memref<2x20x128xf32, #tpu.memory_space<vmem>>, vector<2x1x64xf32>,
    %512 = tpu.concatenate %503, %503 in 1 : vector<4x64xf32>, vector<4x64xf32> -> vector<4x128xf32>
    %513 = arith.mulf %512, %34 : vector<4x128xf32>
    %514 = arith.truncf %513 : vector<4x128xf32> to vector<4x128xbf16>
    %c14_219 = arith.constant 14 : index
    %c0_220 = arith.constant 0 : index
    %515 = vector.load %arg10[%c14_219, %c0_220] : memref<32x512xf32, #tpu.memory_space<vmem>>, vector<1x256xf32>
    %c30_221 = arith.constant 30 : index
    %c0_222 = arith.constant 0 : index
    %516 = vector.load %arg10[%c30_221, %c0_222] : memref<32x512xf32, #tpu.memory_space<vmem>>, vector<1x256xf32>
    %c1_223 = arith.constant 1 : index
    %c256_224 = arith.constant 256 : index
    %517 = vector.load %arg10[%c1_223, %c256_224] : memref<32x512xf32, #tpu.memory_space<vmem>>, vector<1x256xf32>
    %c17_225 = arith.constant 17 : index
    %c256_226 = arith.constant 256 : index
    %518 = vector.load %arg10[%c17_225, %c256_226] : memref<32x512xf32, #tpu.memory_space<vmem>>, vector<1x256xf32>
    %519 = tpu.concatenate %515, %516, %517, %518 in 0 : vector<1x256xf32>, vector<1x256xf32>, vector<1x256xf32>, vector<1x256xf32> -> vector<4x256xf32>
    %cst_227 = arith.constant dense<0.000000e+00> : vector<4x256xf32>
    %520 = tpu.matmul %514, %33, %cst_227 {dimension_numbers = #tpu.dot_dimension_numbers<[1], [0], [0], [1], [0, 0, 1, 1], [], []>} : vector<4x128xbf16>, vector<128x256xbf16>, vector<4x256xf32> -> vector<4x256xf32>
    %521 = arith.addf %519, %520 : vector<4x256xf32>
    %522 = vector.extract_strided_slice %521 {offsets = [0, 0], sizes = [4, 192], strides = [1, 1]} : vector<4x256xf32> to vector<4x192xf32>
    %523 = arith.negf %522 : vector<4x192xf32>
    %524 = math.exp %523 : vector<4x192xf32>
    %cst_228 = arith.constant 1.000000e+00 : f32
    %525 = vector.broadcast %cst_228 : f32 to vector<4x192xf32>
    %526 = arith.addf %525, %524 : vector<4x192xf32>
    %527 = arith.divf %525, %526 : vector<4x192xf32>
    %528 = vector.extract_strided_slice %527 {offsets = [0, 0], sizes = [4, 64], strides = [1, 1]} : vector<4x192xf32> to vector<4x64xf32>
    %529 = vector.extract_strided_slice %527 {offsets = [0, 64], sizes = [4, 64], strides = [1, 1]} : vector<4x192xf32> to vector<4x64xf32>
    %530 = vector.extract_strided_slice %527 {offsets = [0, 128], sizes = [4, 64], strides = [1, 1]} : vector<4x192xf32> to vector<4x64xf32>
    %531 = vector.extract_strided_slice %521 {offsets = [0, 192], sizes = [4, 64], strides = [1, 1]} : vector<4x256xf32> to vector<4x64xf32>
    %532 = math.tanh %531 : vector<4x64xf32>
    %533 = arith.mulf %529, %501 : vector<4x64xf32>
    %534 = arith.mulf %528, %532 : vector<4x64xf32>
    %535 = arith.addf %533, %534 : vector<4x64xf32>
    %536 = math.tanh %535 : vector<4x64xf32>
    %537 = arith.mulf %530, %536 : vector<4x64xf32>
    %538 = vector.extract_strided_slice %537 {offsets = [0, 0], sizes = [2, 64], strides = [1, 1]} : vector<4x64xf32> to vector<2x64xf32>
    %c0_229 = arith.constant 0 : index
    %c16_230 = arith.constant 16 : index
    %c0_231 = arith.constant 0 : index
    %539 = vector.load %arg11[%c0_229, %c16_230, %c0_231] : memref<2x20x128xf32, #tpu.memory_space<vmem>>, vector<2x1x64xf32>
    %540 = vector.shape_cast %539 : vector<2x1x64xf32> to vector<2x64xf32>
    %541 = vector.shape_cast %538 : vector<2x64xf32> to vector<2x1x64xf32>
    tpu.vector_store %arg11[%c0_229, %c16_230, %c0_231], %541 {strides = array<i32>} : memref<2x20x128xf32, #tpu.memory_space<vmem>>, vector<2x1x64xf32>,
    %542 = vector.extract_strided_slice %537 {offsets = [2, 0], sizes = [2, 64], strides = [1, 1]} : vector<4x64xf32> to vector<2x64xf32>
    %c0_232 = arith.constant 0 : index
    %c3_233 = arith.constant 3 : index
    %c64_234 = arith.constant 64 : index
    %543 = vector.load %arg11[%c0_232, %c3_233, %c64_234] : memref<2x20x128xf32, #tpu.memory_space<vmem>>, vector<2x1x64xf32>
    %544 = vector.shape_cast %543 : vector<2x1x64xf32> to vector<2x64xf32>
    %545 = vector.shape_cast %542 : vector<2x64xf32> to vector<2x1x64xf32>
    tpu.vector_store %arg11[%c0_232, %c3_233, %c64_234], %545 {strides = array<i32>} : memref<2x20x128xf32, #tpu.memory_space<vmem>>, vector<2x1x64xf32>,
    %546 = tpu.concatenate %537, %537 in 1 : vector<4x64xf32>, vector<4x64xf32> -> vector<4x128xf32>
    %547 = arith.mulf %546, %34 : vector<4x128xf32>
    %548 = arith.truncf %547 : vector<4x128xf32> to vector<4x128xbf16>
    %c15_235 = arith.constant 15 : index
    %c0_236 = arith.constant 0 : index
    %549 = vector.load %arg10[%c15_235, %c0_236] : memref<32x512xf32, #tpu.memory_space<vmem>>, vector<1x256xf32>
    %c31_237 = arith.constant 31 : index
    %c0_238 = arith.constant 0 : index
    %550 = vector.load %arg10[%c31_237, %c0_238] : memref<32x512xf32, #tpu.memory_space<vmem>>, vector<1x256xf32>
    %c0_239 = arith.constant 0 : index
    %c256_240 = arith.constant 256 : index
    %551 = vector.load %arg10[%c0_239, %c256_240] : memref<32x512xf32, #tpu.memory_space<vmem>>, vector<1x256xf32>
    %c16_241 = arith.constant 16 : index
    %c256_242 = arith.constant 256 : index
    %552 = vector.load %arg10[%c16_241, %c256_242] : memref<32x512xf32, #tpu.memory_space<vmem>>, vector<1x256xf32>
    %553 = tpu.concatenate %549, %550, %551, %552 in 0 : vector<1x256xf32>, vector<1x256xf32>, vector<1x256xf32>, vector<1x256xf32> -> vector<4x256xf32>
    %cst_243 = arith.constant dense<0.000000e+00> : vector<4x256xf32>
    %554 = tpu.matmul %548, %33, %cst_243 {dimension_numbers = #tpu.dot_dimension_numbers<[1], [0], [0], [1], [0, 0, 1, 1], [], []>} : vector<4x128xbf16>, vector<128x256xbf16>, vector<4x256xf32> -> vector<4x256xf32>
    %555 = arith.addf %553, %554 : vector<4x256xf32>
    %556 = vector.extract_strided_slice %555 {offsets = [0, 0], sizes = [4, 192], strides = [1, 1]} : vector<4x256xf32> to vector<4x192xf32>
    %557 = arith.negf %556 : vector<4x192xf32>
    %558 = math.exp %557 : vector<4x192xf32>
    %cst_244 = arith.constant 1.000000e+00 : f32
    %559 = vector.broadcast %cst_244 : f32 to vector<4x192xf32>
    %560 = arith.addf %559, %558 : vector<4x192xf32>
    %561 = arith.divf %559, %560 : vector<4x192xf32>
    %562 = vector.extract_strided_slice %561 {offsets = [0, 0], sizes = [4, 64], strides = [1, 1]} : vector<4x192xf32> to vector<4x64xf32>
    %563 = vector.extract_strided_slice %561 {offsets = [0, 64], sizes = [4, 64], strides = [1, 1]} : vector<4x192xf32> to vector<4x64xf32>
    %564 = vector.extract_strided_slice %561 {offsets = [0, 128], sizes = [4, 64], strides = [1, 1]} : vector<4x192xf32> to vector<4x64xf32>
    %565 = vector.extract_strided_slice %555 {offsets = [0, 192], sizes = [4, 64], strides = [1, 1]} : vector<4x256xf32> to vector<4x64xf32>
    %566 = math.tanh %565 : vector<4x64xf32>
    %567 = arith.mulf %563, %535 : vector<4x64xf32>
    %568 = arith.mulf %562, %566 : vector<4x64xf32>
    %569 = arith.addf %567, %568 : vector<4x64xf32>
    %570 = math.tanh %569 : vector<4x64xf32>
    %571 = arith.mulf %564, %570 : vector<4x64xf32>
    %572 = vector.extract_strided_slice %571 {offsets = [0, 0], sizes = [2, 64], strides = [1, 1]} : vector<4x64xf32> to vector<2x64xf32>
    %c0_245 = arith.constant 0 : index
    %c17_246 = arith.constant 17 : index
    %c0_247 = arith.constant 0 : index
    %573 = vector.load %arg11[%c0_245, %c17_246, %c0_247] : memref<2x20x128xf32, #tpu.memory_space<vmem>>, vector<2x1x64xf32>
    %574 = vector.shape_cast %573 : vector<2x1x64xf32> to vector<2x64xf32>
    %575 = vector.shape_cast %572 : vector<2x64xf32> to vector<2x1x64xf32>
    tpu.vector_store %arg11[%c0_245, %c17_246, %c0_247], %575 {strides = array<i32>} : memref<2x20x128xf32, #tpu.memory_space<vmem>>, vector<2x1x64xf32>,
    %576 = vector.extract_strided_slice %571 {offsets = [2, 0], sizes = [2, 64], strides = [1, 1]} : vector<4x64xf32> to vector<2x64xf32>
    %c0_248 = arith.constant 0 : index
    %c2_249 = arith.constant 2 : index
    %c64_250 = arith.constant 64 : index
    %577 = vector.load %arg11[%c0_248, %c2_249, %c64_250] : memref<2x20x128xf32, #tpu.memory_space<vmem>>, vector<2x1x64xf32>
    %578 = vector.shape_cast %577 : vector<2x1x64xf32> to vector<2x64xf32>
    %579 = vector.shape_cast %576 : vector<2x64xf32> to vector<2x1x64xf32>
    tpu.vector_store %arg11[%c0_248, %c2_249, %c64_250], %579 {strides = array<i32>} : memref<2x20x128xf32, #tpu.memory_space<vmem>>, vector<2x1x64xf32>,
    %c0_251 = arith.constant 0 : index
    %c0_252 = arith.constant 0 : index
    %c0_253 = arith.constant 0 : index
    %580 = vector.load %arg11[%c0_251, %c0_252, %c0_253] : memref<2x20x128xf32, #tpu.memory_space<vmem>>, vector<2x20x128xf32>
    %581 = vector.extract_strided_slice %580 {offsets = [0, 0, 0], sizes = [1, 16, 128], strides = [1, 1, 1]} : vector<2x20x128xf32> to vector<1x16x128xf32>
    %582 = vector.shape_cast %581 : vector<1x16x128xf32> to vector<16x128xf32>
    %583 = vector.extract_strided_slice %580 {offsets = [0, 1, 0], sizes = [1, 16, 128], strides = [1, 1, 1]} : vector<2x20x128xf32> to vector<1x16x128xf32>
    %584 = vector.shape_cast %583 : vector<1x16x128xf32> to vector<16x128xf32>
    %585 = vector.extract_strided_slice %580 {offsets = [0, 2, 0], sizes = [1, 16, 128], strides = [1, 1, 1]} : vector<2x20x128xf32> to vector<1x16x128xf32>
    %586 = vector.shape_cast %585 : vector<1x16x128xf32> to vector<16x128xf32>
    %587 = vector.extract_strided_slice %580 {offsets = [0, 3, 0], sizes = [1, 16, 128], strides = [1, 1, 1]} : vector<2x20x128xf32> to vector<1x16x128xf32>
    %588 = vector.shape_cast %587 : vector<1x16x128xf32> to vector<16x128xf32>
    %589 = vector.extract_strided_slice %580 {offsets = [0, 4, 0], sizes = [1, 16, 128], strides = [1, 1, 1]} : vector<2x20x128xf32> to vector<1x16x128xf32>
    %590 = vector.shape_cast %589 : vector<1x16x128xf32> to vector<16x128xf32>
    %591 = tpu.concatenate %582, %584, %586, %588, %590 in 1 : vector<16x128xf32>, vector<16x128xf32>, vector<16x128xf32>, vector<16x128xf32>, vector<16x128xf32> -> vector<16x640xf32>
    %592 = vector.extract_strided_slice %580 {offsets = [1, 0, 0], sizes = [1, 16, 128], strides = [1, 1, 1]} : vector<2x20x128xf32> to vector<1x16x128xf32>
    %593 = vector.shape_cast %592 : vector<1x16x128xf32> to vector<16x128xf32>
    %594 = vector.extract_strided_slice %580 {offsets = [1, 1, 0], sizes = [1, 16, 128], strides = [1, 1, 1]} : vector<2x20x128xf32> to vector<1x16x128xf32>
    %595 = vector.shape_cast %594 : vector<1x16x128xf32> to vector<16x128xf32>
    %596 = vector.extract_strided_slice %580 {offsets = [1, 2, 0], sizes = [1, 16, 128], strides = [1, 1, 1]} : vector<2x20x128xf32> to vector<1x16x128xf32>
    %597 = vector.shape_cast %596 : vector<1x16x128xf32> to vector<16x128xf32>
    %598 = vector.extract_strided_slice %580 {offsets = [1, 3, 0], sizes = [1, 16, 128], strides = [1, 1, 1]} : vector<2x20x128xf32> to vector<1x16x128xf32>
    %599 = vector.shape_cast %598 : vector<1x16x128xf32> to vector<16x128xf32>
    %600 = vector.extract_strided_slice %580 {offsets = [1, 4, 0], sizes = [1, 16, 128], strides = [1, 1, 1]} : vector<2x20x128xf32> to vector<1x16x128xf32>
    %601 = vector.shape_cast %600 : vector<1x16x128xf32> to vector<16x128xf32>
    %602 = tpu.concatenate %593, %595, %597, %599, %601 in 1 : vector<16x128xf32>, vector<16x128xf32>, vector<16x128xf32>, vector<16x128xf32>, vector<16x128xf32> -> vector<16x640xf32>
    %603 = tpu.concatenate %591, %602 in 0 : vector<16x640xf32>, vector<16x640xf32> -> vector<32x640xf32>
    %604 = arith.truncf %603 : vector<32x640xf32> to vector<32x640xbf16>
    %c0_254 = arith.constant 0 : index
    %c0_255 = arith.constant 0 : index
    %605 = vector.load %arg7[%c0_254, %c0_255] : memref<640x64xbf16, #tpu.memory_space<vmem>>, vector<640x64xbf16>
    %cst_256 = arith.constant dense<0.000000e+00> : vector<32x64xf32>
    %606 = tpu.matmul %604, %605, %cst_256 {dimension_numbers = #tpu.dot_dimension_numbers<[1], [0], [0], [1], [0, 0, 1, 1], [], []>} : vector<32x640xbf16>, vector<640x64xbf16>, vector<32x64xf32> -> vector<32x64xf32>
    %c0_257 = arith.constant 0 : index
    %c0_258 = arith.constant 0 : index
    %607 = vector.load %arg8[%c0_257, %c0_258] : memref<1x64xf32, #tpu.memory_space<vmem>>, vector<1x64xf32>
    %608 = vector.broadcast %607 : vector<1x64xf32> to vector<32x64xf32>
    %609 = arith.addf %606, %608 : vector<32x64xf32>
    %cst_259 = arith.constant 0.000000e+00 : f32
    %610 = vector.broadcast %cst_259 : f32 to vector<32x64xf32>
    %611 = arith.maximumf %609, %610 : vector<32x64xf32>
    %c0_260 = arith.constant 0 : index
    %c0_261 = arith.constant 0 : index
    %612 = vector.load %arg9[%c0_260, %c0_261] : memref<32x64xf32, #tpu.memory_space<vmem>>, vector<32x64xf32>
    tpu.vector_store %arg9[%c0_260, %c0_261], %611 {strides = array<i32>} : memref<32x64xf32, #tpu.memory_space<vmem>>, vector<32x64xf32>,
    return
  }
}

</mosaic_0001>

<bundles_post_ra>
// kernel: forward.1
= control target key start
LH: loop header
LB: loop body
LE: loop exit
PB: predicated region body
PF: predicated region fallthrough
CT: control target
= control target key end

     0   :  { %s6821_s0 = inlined_call_operand.vmem [shape: f32[2,128,16], index: 0, kind: input, shape index: {}]   ;;  %s6822_s1 = inlined_call_operand.vmem [shape: bf16[384,32], index: 1, kind: input, shape index: {}]   ;;  %s6823_s2 = inlined_call_operand.vmem [shape: f32[1,32], index: 2, kind: input, shape index: {}]   ;;  %s6824_s3 = inlined_call_operand.vmem [shape: bf16[32,512], index: 3, kind: input, shape index: {}]   ;;  %s6825_s4 = inlined_call_operand.vmem [shape: f32[1,512], index: 4, kind: input, shape index: {}]   ;;  %s6826_s5 = inlined_call_operand.vmem [shape: bf16[128,256], index: 5, kind: input, shape index: {}]   ;;  %s6827_s6 = inlined_call_operand.vmem [shape: f32[4,128], index: 6, kind: input, shape index: {}]   ;;  %s6828_s7 = inlined_call_operand.vmem [shape: bf16[640,64], index: 7, kind: input, shape index: {}]   ;;  %s6829_s8 = inlined_call_operand.vmem [shape: f32[1,64], index: 8, kind: input, shape index: {}]   ;;  %s6830_s9 = inlined_call_operand.hbm [shape: f32[32,64], index: 9, kind: output, shape index: {}]  }
   0x1   :  { %v34_v0 = vld [vmem:[%s6821_s0] sm:$0xff]  ;;  %v35_v2 = vld [vmem:[%s6821_s0 + $0x8] sm:$0xff]  ;;  %v36_v6 = vld [vmem:[%s6821_s0 + $0x10] sm:$0xff] }
   0x2   :  { %v4285_v1 = vld [vmem:[%s6821_s0 + $0x80] sm:$0xff]  ;;  %v4286_v4 = vld [vmem:[%s6821_s0 + $0x88] sm:$0xff]  ;;  %v4287_v7 = vld [vmem:[%s6821_s0 + $0x90] sm:$0xff] }
   0x3   :  { %v4587_v3 = vpack.i.bf16 %v4285_v1, %v34_v0  ;;  %v4589_v5 = vpack.i.bf16 %v4286_v4, %v35_v2  ;;  %v4591_v8 = vpack.i.bf16 %v4287_v7, %v36_v6  ;;  %v37_v9 = vld [vmem:[%s6821_s0 + $0x18] sm:$0xff]  ;;  %v38_v11 = vld [vmem:[%s6821_s0 + $0x20] sm:$0xff]  ;;  %v39_v17 = vld [vmem:[%s6821_s0 + $0x28] sm:$0xff] }
   0x4   :  { %v4288_v10 = vld [vmem:[%s6821_s0 + $0x98] sm:$0xff]  ;;  %v4289_v12 = vld [vmem:[%s6821_s0 + $0xa0] sm:$0xff]  ;;  %v4290_v18 = vld [vmem:[%s6821_s0 + $0xa8] sm:$0xff] }
   0x5   :  { %4588 = vxpose.xlu0.b32.start [1/16] (narrow) %v4587_v3, 16  ;;  %v4593_v13 = vpack.i.bf16 %v4288_v10, %v37_v9  ;;  %v4629_v14 = vld [vmem:[%s6822_s1 + $0x78] sm:$0xff]   ;;  %v4632_v19 = vld [vmem:[%s6822_s1 + $0x70] sm:$0xff]   ;;  %v4595_v20 = vpack.i.bf16 %v4289_v12, %v38_v11  ;;  %v4635_v23 = vld [vmem:[%s6822_s1 + $0x68] sm:$0xff]   ;;  %v4597_v27 = vpack.i.bf16 %v4290_v18, %v39_v17 }
   0x6   :  { %v4630_v15 = vld [vmem:[%s6822_s1 + $0xb8] sm:$0xff]   ;;  %4435 = vmatprep.subr.bf16.mxu0 %v4629_v14  ;;  %v4633_v21 = vld [vmem:[%s6822_s1 + $0xb0] sm:$0xff]   ;;  %v4636_v26 = vld [vmem:[%s6822_s1 + $0xa8] sm:$0xff]  }
   0x7   :  { %v4631_v16 = vld [vmem:[%s6822_s1 + $0x38] sm:$0xff]   ;;  %4539 = vmatprep.subr.bf16.mxu1 %v4630_v15  ;;  %v4634_v22 = vld [vmem:[%s6822_s1 + $0x30] sm:$0xff]   ;;  %v4637_v28 = vld [vmem:[%s6822_s1 + $0x28] sm:$0xff]  }
   0x8   :  { %4436 = vmatpush3.bf16.msra.mxu0 %v4631_v16  ;;  %4540 = vmatpush3.bf16.msra.mxu1 %v4630_v15  ;;  %v40_v24 = vld [vmem:[%s6821_s0 + $0x30] sm:$0xff]  ;;  %v4638_v29 = vld [vmem:[%s6822_s1 + $0x60] sm:$0xff]   ;;  %v41_v31 = vld [vmem:[%s6821_s0 + $0x38] sm:$0xff] }
   0x9   :  { %4590 = vxpose.xlu0.b32.cont [2/16] (narrow) %v4589_v5, 16  ;;  %4437 = vmatprep.subr.bf16.mxu0 %v4632_v19  ;;  %v4291_v25 = vld [vmem:[%s6821_s0 + $0xb0] sm:$0xff]  ;;  %v4639_v30 = vld [vmem:[%s6822_s1 + $0xa0] sm:$0xff]   ;;  %v4292_v32 = vld [vmem:[%s6821_s0 + $0xb8] sm:$0xff] }
   0xa   :  { %4541 = vmatprep.subr.bf16.mxu1 %v4633_v21  ;;  %v4599_v33 = vpack.i.bf16 %v4291_v25, %v40_v24  ;;  %v4640_v34 = vld [vmem:[%s6822_s1 + $0x20] sm:$0xff]   ;;  %v4641_v35 = vld [vmem:[%s6822_s1 + $0x58] sm:$0xff]   ;;  %v4601_v39 = vpack.i.bf16 %v4292_v32, %v41_v31  ;;  %v4644_v41 = vld [vmem:[%s6822_s1 + $0x50] sm:$0xff]  }
   0xb   :  { %v4642_v36 = vld [vmem:[%s6822_s1 + $0x98] sm:$0xff]   ;;  %v42_v37 = vld [vmem:[%s6821_s0 + $0x40] sm:$0xff]  ;;  %v4645_v42 = vld [vmem:[%s6822_s1 + $0x90] sm:$0xff]  }
   0xc   :  { %4438 = vmatpush3.bf16.msra.mxu0 %v4634_v22  ;;  %4542 = vmatpush3.bf16.msra.mxu1 %v4633_v21  ;;  %v4293_v38 = vld [vmem:[%s6821_s0 + $0xc0] sm:$0xff]  ;;  %v4643_v40 = vld [vmem:[%s6822_s1 + $0x18] sm:$0xff]   ;;  %v43_v43 = vld [vmem:[%s6821_s0 + $0x48] sm:$0xff] }
   0xd   :  { %4592 = vxpose.xlu0.b32.cont [3/16] (narrow) %v4591_v8, 16  ;;  %4439 = vmatprep.subr.bf16.mxu0 %v4635_v23  ;;  %v4294_v44 = vld [vmem:[%s6821_s0 + $0xc8] sm:$0xff]  ;;  %v4603_v45 = vpack.i.bf16 %v4293_v38, %v42_v37  ;;  %v4646_v46 = vld [vmem:[%s6822_s1 + $0x10] sm:$0xff]   ;;  %v4650_v52 = vld [vmem:[%s6822_s1 + $0x40] sm:$0xff]  }
   0xe   :  { %4543 = vmatprep.subr.bf16.mxu1 %v4636_v26  ;;  %v4647_v47 = vld [vmem:[%s6822_s1 + $0x48] sm:$0xff]   ;;  %v44_v49 = vld [vmem:[%s6821_s0 + $0x50] sm:$0xff]  ;;  %v4605_v53 = vpack.i.bf16 %v4294_v44, %v43_v43  ;;  %v4651_v54 = vld [vmem:[%s6822_s1 + $0x80] sm:$0xff]  }
   0xf   :  { %v4648_v48 = vld [vmem:[%s6822_s1 + $0x88] sm:$0xff]   ;;  %v4295_v50 = vld [vmem:[%s6821_s0 + $0xd0] sm:$0xff]  ;;  %v4652_v55 = vld [vmem:[%s6822_s1] sm:$0xff]  }
  0x10   :  { %4440 = vmatpush3.bf16.msra.mxu0 %v4637_v28  ;;  %4544 = vmatpush3.bf16.msra.mxu1 %v4636_v26  ;;  %v4649_v51 = vld [vmem:[%s6822_s1 + $0x8] sm:$0xff]   ;;  %v45_v56 = vld [vmem:[%s6821_s0 + $0x58] sm:$0xff]  ;;  %v4607_v58 = vpack.i.bf16 %v4295_v50, %v44_v49  ;;  %v46_v59 = vld [vmem:[%s6821_s0 + $0x60] sm:$0xff] }
  0x11   :  { %4594 = vxpose.xlu0.b32.cont [4/16] (narrow) %v4593_v13, 16  ;;  %4441 = vmatprep.subr.bf16.mxu0 %v4638_v29  ;;  %v4296_v57 = vld [vmem:[%s6821_s0 + $0xd8] sm:$0xff]  ;;  %v4297_v60 = vld [vmem:[%s6821_s0 + $0xe0] sm:$0xff]  ;;  %v47_v62 = vld [vmem:[%s6821_s0 + $0x68] sm:$0xff] }
  0x12   :  { %4545 = vmatprep.subr.bf16.mxu1 %v4639_v30  ;;  %v4609_v61 = vpack.i.bf16 %v4296_v57, %v45_v56  ;;  %v4611_v63 = vpack.i.bf16 %v4297_v60, %v46_v59  ;;  %v4298_v0 = vld [vmem:[%s6821_s0 + $0xe8] sm:$0xff]  ;;  %v48_v1 = vld [vmem:[%s6821_s0 + $0x70] sm:$0xff]  ;;  %v49_v4 = vld [vmem:[%s6821_s0 + $0x78] sm:$0xff] }
  0x13   :  { %v4613_v2 = vpack.i.bf16 %v4298_v0, %v47_v62  ;;  %v4299_v3 = vld [vmem:[%s6821_s0 + $0xf0] sm:$0xff]  ;;  %v4300_v6 = vld [vmem:[%s6821_s0 + $0xf8] sm:$0xff] }
  0x14   :  { %4442 = vmatpush3.bf16.msra.mxu0 %v4640_v34  ;;  %4546 = vmatpush3.bf16.msra.mxu1 %v4639_v30  ;;  %v4615_v5 = vpack.i.bf16 %v4299_v3, %v48_v1  ;;  %v4617_v7 = vpack.i.bf16 %v4300_v6, %v49_v4 }
  0x15   :  { %4596 = vxpose.xlu0.b32.cont [5/16] (narrow) %v4595_v20, 16  ;;  %4443 = vmatprep.subr.bf16.mxu0 %v4641_v35 }
  0x16   :  { %4547 = vmatprep.subr.bf16.mxu1 %v4642_v36 }
  0x18   :  { %4444 = vmatpush3.bf16.msra.mxu0 %v4643_v40  ;;  %4548 = vmatpush3.bf16.msra.mxu1 %v4642_v36 }
  0x19   :  { %4598 = vxpose.xlu0.b32.cont [6/16] (narrow) %v4597_v27, 16  ;;  %4445 = vmatprep.subr.bf16.mxu0 %v4644_v41 }
  0x1a   :  { %4549 = vmatprep.subr.bf16.mxu1 %v4645_v42 }
  0x1c   :  { %4446 = vmatpush3.bf16.msra.mxu0 %v4646_v46  ;;  %4550 = vmatpush3.bf16.msra.mxu1 %v4645_v42 }
  0x1d   :  { %4600 = vxpose.xlu0.b32.cont [7/16] (narrow) %v4599_v33, 16  ;;  %4447 = vmatprep.subr.bf16.mxu0 %v4647_v47 }
  0x1e   :  { %4551 = vmatprep.subr.bf16.mxu1 %v4648_v48 }
  0x20   :  { %4448 = vmatpush3.bf16.msra.mxu0 %v4649_v51  ;;  %4552 = vmatpush3.bf16.msra.mxu1 %v4648_v48 }
  0x21   :  { %4602 = vxpose.xlu0.b32.cont [8/16] (narrow) %v4601_v39, 16  ;;  %4449 = vmatprep.subr.bf16.mxu0 %v4650_v52 }
  0x22   :  { %4553 = vmatprep.subr.bf16.mxu1 %v4651_v54 }
  0x24   :  { %4450 = vmatpush3.bf16.msra.mxu0 %v4652_v55  ;;  %4554 = vmatpush3.bf16.msra.mxu1 %v4651_v54 }
  0x25   :  { %4604 = vxpose.xlu0.b32.cont [9/16] (narrow) %v4603_v45, 16 }
  0x29   :  { %4606 = vxpose.xlu0.b32.cont [10/16] (narrow) %v4605_v53, 16 }
  0x2d   :  { %4608 = vxpose.xlu0.b32.cont [11/16] (narrow) %v4607_v58, 16 }
  0x31   :  { %4610 = vxpose.xlu0.b32.cont [12/16] (narrow) %v4609_v61, 16 }
  0x35   :  { %4612 = vxpose.xlu0.b32.cont [13/16] (narrow) %v4611_v63, 16 }
  0x39   :  { %4614 = vxpose.xlu0.b32.cont [14/16] (narrow) %v4613_v2, 16 }
  0x3d   :  { %4616 = vxpose.xlu0.b32.cont [15/16] (narrow) %v4615_v5, 16 }
  0x41   :  { %4618 = vxpose.xlu0.b32.end [16/16] (narrow) %v4617_v7, 16 }
  0x42   :  { %14 = vsyncpa [#allocation5], 0  ;;  %vm84_vm0 = vcmask 1040384   ;;  %vm95_vm1 = vcmask 1046528   ;;  %vm103_vm2 = vcmask 1045504   ;;  %vm4976_vm4 = vmmov 1  }
  0x43   :  { %vm4326_vm3 = vmneg %vm84_vm0  ;;  %v4658_v50 = vld [vmem:[%s6824_s3 + $0x24] ss:$16 sps:$4 sm:$0xff]   ;;  %v4655_v51 = vld [vmem:[%s6824_s3 + $0x2c] ss:$16 sps:$4 sm:$0xff]   ;;  %v6831_v59 = vmov 0   ;;  %vm565_vm6 = vcmask 261120  }
  0x44   :  { %vm4327_vm5 = vmpackc.low %vm4976_vm4, %vm4326_vm3  ;;  %v4656_v52 = vld [vmem:[%s6824_s3 + $0x20] ss:$16 sps:$4 sm:$0xff]   ;;  %v4653_v53 = vld [vmem:[%s6824_s3 + $0x28] ss:$16 sps:$4 sm:$0xff]   ;;  %584 = vmatprep.subr.bf16.mxu1 %v4658_v50  ;;  %637 = vmatprep.subr.bf16.mxu0 %v4655_v51  ;;  %vm770_vm7 = vcmask 1041408   ;;  %vm773_vm8 = vcmask 1042432  }
  0x45   :  { %v4661_v54 = vld [vmem:[%s6824_s3 + $0x4] ss:$16 sps:$4 sm:$0xff]   ;;  %v4659_v55 = vld [vmem:[%s6824_s3] ss:$16 sps:$4 sm:$0xff]   ;;  %v4664_v56 = vld [vmem:[%s6824_s3 + $0xc] ss:$16 sps:$4 sm:$0xff]  }
  0x46   :  { %v4662_v57 = vld [vmem:[%s6824_s3 + $0x8] ss:$16 sps:$4 sm:$0xff]   ;;  %v5244_v58 = vld [vmem:[%s6826_s5 + $0x74] ss:$8 sps:$4 sm:$0xff]   ;;  %v4301_v63 = vld [vmem:[%s6823_s2] ss:$0 sm:$0xff] }
  0x47   :  { %vm954_vm9 = vcmask 516096   ;;  %vm979_vm10 = vcmask 523264   ;;  %vm973_vm11 = vcmask 1040896   ;;  %vm3730_vm12 = vcmask 1044480  }
  0x48   :  { %vm3738_vm13 = vcmask 1043456  }
  0x81   :  { %v4619_v8 = vpop.trf.xlu0 }
  0x82   :  { %v4623_v9 = vunpack.i.h.bf16 %v4619_v8  ;;  %v4620_v10 = vunpack.i.l.bf16 %v4619_v8 }
  0x84   :  { %v162_v11 = vrot.slane %v4623_v9, 7  ;;  %v85_v12 = vrot.slane %v4620_v10, 7 }
  0x85   :  { %v4624_v13 = vpop.trf.xlu0 }
  0x86   :  { %v4628_v14 = vunpack.i.h.bf16 %v4624_v13  ;;  %v4625_v15 = vunpack.i.l.bf16 %v4624_v13  ;;  %v91_v16 = vsel %vm84_vm0, 0.0, %v85_v12  ;;  %v168_v17 = vsel %vm84_vm0, 0.0, %v162_v11 }
  0x87   :  { %v96_v20 = vrot.slane %v91_v16, 1  ;;  %v104_v21 = vrot.slane %v91_v16, 2  ;;  %v179_v22 = vrot.slane %v168_v17, 2  ;;  %v172_v34 = vrot.slane %v168_v17, 1 }
  0x88   :  { %v163_v18 = vrot.slane %v4628_v14, 7  ;;  %v86_v19 = vrot.slane %v4625_v15, 7 }
  0x8a   :  { %v169_v23 = vsel %vm84_vm0, %v163_v18, 0.0  ;;  %v164_v24 = vsel %vm84_vm0, %v162_v11, %v163_v18  ;;  %v87_v25 = vsel %vm84_vm0, %v85_v12, %v86_v19  ;;  %v92_v26 = vsel %vm84_vm0, %v86_v19, 0.0  ;;  %v5256_v19 = vld [vmem:[%s6826_s5 + $0x70] ss:$8 sps:$4 sm:$0xff]  }
  0x8b   :  { %v175_v27 = vrot.slane %v169_v23, 1  ;;  %v182_v28 = vrot.slane %v169_v23, 2  ;;  %v97_v29 = vrot.slane %v87_v25, 1  ;;  %v99_v30 = vrot.slane %v92_v26, 1 }
  0x8c   :  { %v105_v31 = vrot.slane %v87_v25, 2  ;;  %v107_v32 = vrot.slane %v92_v26, 2  ;;  %v180_v33 = vrot.slane %v164_v24, 2  ;;  %v4328_v37 = vpack.c.bf16 %v87_v25, %v85_v12  ;;  %v5269_v25 = vld [vmem:[%s6826_s5 + $0x60] ss:$8 sps:$4 sm:$0xff]  }
  0x8d   :  { %v98_v35 = vsel %vm95_vm1, %v96_v20, %v97_v29  ;;  %v100_v36 = vsel %vm95_vm1, %v97_v29, %v99_v30  ;;  %v173_v38 = vrot.slane %v164_v24, 1  ;;  %v4332_v49 = vpack.c.bf16 %v164_v24, %v162_v11  ;;  %v5285_v30 = vld [vmem:[%s6826_s5 + $0x50] ss:$8 sps:$4 sm:$0xff]  }
  0x8e   :  { %v187_v39 = vpack.c.bf16 %v100_v36, %v98_v35  ;;  %v106_v40 = vsel %vm103_vm2, %v104_v21, %v105_v31  ;;  %v108_v41 = vsel %vm103_vm2, %v105_v31, %v107_v32  ;;  %v181_v42 = vsel %vm103_vm2, %v179_v22, %v180_v33  ;;  %v5261_v22 = vld [vmem:[%s6826_s5 + $0x64] ss:$8 sps:$4 sm:$0xff]   ;;  %v5317_v35 = vld [vmem:[%s6826_s5 + $0x30] ss:$8 sps:$4 sm:$0xff]  }
  0x8f   :  { %v188_v43 = vpack.c.bf16 %v108_v41, %v106_v40  ;;  %v183_v44 = vsel %vm103_vm2, %v180_v33, %v182_v28  ;;  %v174_v45 = vsel %vm95_vm1, %v172_v34, %v173_v38  ;;  %v176_v46 = vsel %vm95_vm1, %v173_v38, %v175_v27  ;;  %v5277_v27 = vld [vmem:[%s6826_s5 + $0x54] ss:$8 sps:$4 sm:$0xff]   ;;  %v5291_v32 = vld [vmem:[%s6826_s5 + $0x44] ss:$8 sps:$4 sm:$0xff]   ;;  %v5300_v33 = vld [vmem:[%s6826_s5 + $0x40] ss:$8 sps:$4 sm:$0xff]  }
  0x90   :  { %423 = vmatprep.mubr.bf16.mxu0 %v187_v39  ;;  %v191_v47 = vpack.c.bf16 %v183_v44, %v181_v42  ;;  %v190_v48 = vpack.c.bf16 %v176_v46, %v174_v45  ;;  %v5307_v34 = vld [vmem:[%s6826_s5 + $0x34] ss:$8 sps:$4 sm:$0xff]   ;;  %v5323_v36 = vld [vmem:[%s6826_s5 + $0x24] ss:$8 sps:$4 sm:$0xff]   ;;  %v5345_v39 = vld [vmem:[%s6826_s5 + $0x10] ss:$8 sps:$4 sm:$0xff]   ;;  %v505_v42 = vlaneseq }
  0x91   :  { %4555 = vmatprep.mubr.bf16.mxu1 %v188_v43  ;;  %4329 = vmatmul.mubr.msk.bf16.vlgmr.msra.gmra.mxu0 %vm4327_vm5, %v4328_v37  ;;  %v5331_v37 = vld [vmem:[%s6826_s5 + $0x20] ss:$8 sps:$4 sm:$0xff]   ;;  %v5337_v38 = vld [vmem:[%s6826_s5 + $0x14] ss:$8 sps:$4 sm:$0xff]   ;;  %v5351_v40 = vld [vmem:[%s6826_s5 + $0x4] ss:$8 sps:$4 sm:$0xff]  }
  0x92   :  { %4556 = vmatmul.mubr.bf16.vlgmr.msra.gmra.mxu1 %v191_v47  ;;  %431 = vmatprep.mubr.bf16.mxu0 %v190_v48  ;;  %v5359_v41 = vld [vmem:[%s6826_s5] ss:$8 sps:$4 sm:$0xff]   ;;  %v5386_v43 = vshrl.u32 %v505_v42, 7 }
  0x93   :  { %585 = vmatpush1.bf16.msra.mxu1 %v4656_v52  ;;  %638 = vmatpush1.bf16.msra.mxu0 %v4653_v53  ;;  %v503_v46 = vld [vmem:[%s6825_s4] sm:$0xf]  ;;  %s4978_s4 = smov 64  }
  0x94   :  { %586 = vmatprep.subr.bf16.mxu1 %v4661_v54  ;;  %639 = vmatprep.subr.bf16.mxu0 %v4664_v56  ;;  %v5389_v44 = vsub.s32 0, %v5386_v43  ;;  %v515_v45 = vsub.s32 2, %v5386_v43  ;;  %v5396_v47 = vsub.s32 1, %v5386_v43  ;;  %v519_v48 = vsub.s32 3, %v5386_v43 }
  0x95   :  { %604 = vmatprep.mubr.bf16.mxu1 %v6831_v59 }
  0x96   :  { %v516_v50 = vrot.slane %v503_v46, %v515_v45  ;;  %v512_v51 = vrot.slane %v503_v46, %v5396_v47  ;;  %v520_v52 = vrot.slane %v503_v46, %v519_v48 }
  0x97   :  { %587 = vmatpush1.bf16.msra.mxu1 %v4659_v55  ;;  %640 = vmatpush1.bf16.msra.mxu0 %v4662_v57 }
  0x98   :  { %856 = vmatprep.subr.bf16.mxu1 %v5244_v58  ;;  %1041 = vmatprep.subr.bf16.mxu0 %v5244_v58 }
  0x99   :  { %4333 = vmatmul.mubr.msk.bf16.gmra.mxu0 %vm4327_vm5, %v4332_v49  ;;  %v508_v49 = vrot.slane %v503_v46, %v5389_v44 }
  0x9a   :  { %657 = vmatprep.mubr.bf16.mxu0 %v6831_v59 }
 0x151   :  { %v4451_v60 = vpop.f32.mrf.mxu0 }
 0x152   :  { %v4557_v61 = vpop.f32.mrf.mxu1 }
 0x153   :  { %v4452_v62 = vpop.f32.mrf.mxu0 }
 0x154   :  { %v4453_v0 = vadd.f32 %v4452_v62, %v4451_v60  ;;  %v474_v1 = vpop.f32.mrf.mxu1 }
 0x155   :  { %v4454_v2 = vpop.f32.mrf.mxu0 }
 0x156   :  { %v426_v3 = vadd.f32 %v4453_v0, %v4301_v63  ;;  %v4558_v4 = vpop.f32.mrf.mxu1 }
 0x157   :  { %v4455_v5 = vpop.f32.mrf.mxu0 }
 0x158   :  { %v4456_v6 = vadd.f32 %v4455_v5, %v4454_v2  ;;  %v475_v8 = vadd.f32 %v474_v1, %v426_v3  ;;  %v477_v10 = vpop.f32.mrf.mxu1 }
 0x159   :  { %v4457_v7 = vpop.f32.mrf.mxu0 }
 0x15a   :  { %v429_v9 = vadd.f32 %v4456_v6, %v4301_v63  ;;  %v489_v15 = vmax.f32 %v475_v8, 0.0 }
 0x15b   :  { %v4458_v11 = vpop.f32.mrf.mxu0 }
 0x15c   :  { %v478_v12 = vadd.f32 %v477_v10, %v429_v9  ;;  %v4459_v13 = vadd.f32 %v4458_v11, %v4457_v7 }
 0x15d   :  { %v4460_v14 = vpop.f32.mrf.mxu0 }
 0x15e   :  { %v490_v16 = vmax.f32 %v478_v12, 0.0  ;;  %v434_v17 = vadd.f32 %v4459_v13, %v4301_v63 }
 0x15f   :  { %v4461_v18 = vpop.f32.mrf.mxu0 }
 0x160   :  { %v493_v20 = vpack.c.bf16 %v490_v16, %v489_v15  ;;  %v4462_v21 = vadd.f32 %v4461_v18, %v4460_v14  ;;  %v483_v23 = vadd.f32 %v4557_v61, %v434_v17 }
 0x162   :  { %v437_v24 = vadd.f32 %v4462_v21, %v4301_v63  ;;  %4342 = vmatmul.mubr.msk.bf16.vlgmr.msra.gmra.mxu1 %vm565_vm6, %v493_v20  ;;  %4344 = vmatmul.mubr.msk.bf16.vlgmr.msra.gmra.mxu0 %vm565_vm6, %v493_v20  ;;  %v491_v28 = vmax.f32 %v483_v23, 0.0 }
 0x163   :  { %857 = vmatpush1.bf16.msra.mxu1 %v5256_v19  ;;  %614 = vmatprep.mubr.bf16.mxu1 %v6831_v59 }
 0x164   :  { %v486_v26 = vadd.f32 %v4558_v4, %v437_v24  ;;  %858 = vmatprep.subr.bf16.mxu1 %v5261_v22  ;;  %667 = vmatprep.mubr.bf16.mxu0 %v6831_v59 }
 0x165   :  { %1042 = vmatpush1.bf16.msra.mxu0 %v5256_v19 }
 0x166   :  { %v492_v29 = vmax.f32 %v486_v26, 0.0  ;;  %1043 = vmatprep.subr.bf16.mxu0 %v5261_v22 }
 0x167   :  { %859 = vmatpush1.bf16.msra.mxu1 %v5269_v25 }
 0x168   :  { %v494_v31 = vpack.c.bf16 %v492_v29, %v491_v28  ;;  %860 = vmatprep.subr.bf16.mxu1 %v5277_v27 }
 0x169   :  { %1044 = vmatpush1.bf16.msra.mxu0 %v5269_v25 }
 0x16a   :  { %4343 = vmatmul.mubr.msk.bf16.gmra.mxu1 %vm565_vm6, %v494_v31  ;;  %4345 = vmatmul.mubr.msk.bf16.gmra.mxu0 %vm565_vm6, %v494_v31 }
 0x16b   :  { %861 = vmatpush1.bf16.msra.mxu1 %v5285_v30  ;;  %888 = vmatprep.mubr.bf16.mxu1 %v6831_v59 }
 0x16c   :  { %862 = vmatprep.subr.bf16.mxu1 %v5291_v32  ;;  %1045 = vmatprep.subr.bf16.mxu0 %v5277_v27 }
 0x16d   :  { %1046 = vmatpush1.bf16.msra.mxu0 %v5285_v30  ;;  %1073 = vmatprep.mubr.bf16.mxu0 %v6831_v59 }
 0x16e   :  { %1047 = vmatprep.subr.bf16.mxu0 %v5291_v32 }
 0x16f   :  { %863 = vmatpush1.bf16.msra.mxu1 %v5300_v33 }
 0x170   :  { %864 = vmatprep.subr.bf16.mxu1 %v5307_v34 }
 0x171   :  { %1048 = vmatpush1.bf16.msra.mxu0 %v5300_v33 }
 0x172   :  { %1049 = vmatprep.subr.bf16.mxu0 %v5307_v34 }
 0x173   :  { %865 = vmatpush1.bf16.msra.mxu1 %v5317_v35 }
 0x174   :  { %866 = vmatprep.subr.bf16.mxu1 %v5323_v36 }
 0x175   :  { %1050 = vmatpush1.bf16.msra.mxu0 %v5317_v35 }
 0x176   :  { %1051 = vmatprep.subr.bf16.mxu0 %v5323_v36 }
 0x177   :  { %867 = vmatpush1.bf16.msra.mxu1 %v5331_v37 }
 0x178   :  { %868 = vmatprep.subr.bf16.mxu1 %v5337_v38 }
 0x179   :  { %1052 = vmatpush1.bf16.msra.mxu0 %v5331_v37 }
 0x17a   :  { %1053 = vmatprep.subr.bf16.mxu0 %v5337_v38 }
 0x17b   :  { %869 = vmatpush1.bf16.msra.mxu1 %v5345_v39 }
 0x17c   :  { %870 = vmatprep.subr.bf16.mxu1 %v5351_v40 }
 0x17d   :  { %1054 = vmatpush1.bf16.msra.mxu0 %v5345_v39 }
 0x17e   :  { %1055 = vmatprep.subr.bf16.mxu0 %v5351_v40 }
 0x17f   :  { %871 = vmatpush1.bf16.msra.mxu1 %v5359_v41 }
 0x180   :  { %1223 = vmatprep.subr.bf16.mxu1 %v5244_v58 }
 0x181   :  { %1056 = vmatpush1.bf16.msra.mxu0 %v5359_v41 }
 0x182   :  { %889 = vmatmul.mubr.bf16.vlgmr.msra.gmra.mxu1 %v6831_v59  ;;  %1405 = vmatprep.subr.bf16.mxu0 %v5244_v58 }
 0x183   :  { %1224 = vmatpush1.bf16.msra.mxu1 %v5256_v19  ;;  %1255 = vmatprep.mubr.bf16.mxu1 %v6831_v59 }
 0x184   :  { %1225 = vmatprep.subr.bf16.mxu1 %v5261_v22 }
 0x187   :  { %1226 = vmatpush1.bf16.msra.mxu1 %v5269_v25 }
 0x188   :  { %1227 = vmatprep.subr.bf16.mxu1 %v5277_v27 }
 0x18b   :  { %1228 = vmatpush1.bf16.msra.mxu1 %v5285_v30 }
 0x18c   :  { %1229 = vmatprep.subr.bf16.mxu1 %v5291_v32 }
 0x18f   :  { %1230 = vmatpush1.bf16.msra.mxu1 %v5300_v33 }
 0x190   :  { %1231 = vmatprep.subr.bf16.mxu1 %v5307_v34 }
 0x193   :  { %1232 = vmatpush1.bf16.msra.mxu1 %v5317_v35 }
 0x194   :  { %1233 = vmatprep.subr.bf16.mxu1 %v5323_v36 }
 0x197   :  { %1234 = vmatpush1.bf16.msra.mxu1 %v5331_v37 }
 0x198   :  { %1235 = vmatprep.subr.bf16.mxu1 %v5337_v38 }
 0x19b   :  { %1236 = vmatpush1.bf16.msra.mxu1 %v5345_v39 }
 0x19c   :  { %1237 = vmatprep.subr.bf16.mxu1 %v5351_v40 }
 0x19f   :  { %1238 = vmatpush1.bf16.msra.mxu1 %v5359_v41 }
 0x1a0   :  { %1587 = vmatprep.subr.bf16.mxu1 %v5244_v58 }
 0x222   :  { %v606_v53 = vpop.f32.mrf.mxu1  ;;  %v659_v54 = vpop.f32.mrf.mxu0 }
 0x223   :  { %v607_v55 = vadd.f32 %v606_v53, %v508_v49  ;;  %v660_v56 = vadd.f32 %v659_v54, %v516_v50 }
 0x224   :  { %v608_v57 = vpop.f32.mrf.mxu1  ;;  %v661_v58 = vpop.f32.mrf.mxu0 }
 0x225   :  { %678 = vst [vmem:[#allocation2] sm:$0xff] %v607_v55  ;;  %680 = vst [vmem:[#allocation2 + $0x10] sm:$0xff] %v660_v56  ;;  %v609_v60 = vadd.f32 %v608_v57, %v512_v51  ;;  %v662_v61 = vadd.f32 %v661_v58, %v520_v52 }
 0x226   :  { %v610_v62 = vpop.f32.mrf.mxu1  ;;  %v663_v63 = vpop.f32.mrf.mxu0 }
 0x227   :  { %679 = vst [vmem:[#allocation2 + $0x8] sm:$0xff] %v609_v60  ;;  %681 = vst [vmem:[#allocation2 + $0x18] sm:$0xff] %v662_v61  ;;  %v611_v0 = vadd.f32 %v610_v62, %v508_v49  ;;  %v664_v1 = vadd.f32 %v663_v63, %v516_v50 }
 0x228   :  { %v612_v2 = vpop.f32.mrf.mxu1  ;;  %v665_v3 = vpop.f32.mrf.mxu0 }
 0x229   :  { %682 = vst [vmem:[#allocation2 + $0x20] sm:$0xff] %v611_v0  ;;  %684 = vst [vmem:[#allocation2 + $0x30] sm:$0xff] %v664_v1  ;;  %v613_v4 = vadd.f32 %v612_v2, %v512_v51  ;;  %v666_v5 = vadd.f32 %v665_v3, %v520_v52 }
 0x22a   :  { %v616_v6 = vpop.f32.mrf.mxu1  ;;  %v669_v7 = vpop.f32.mrf.mxu0 }
 0x22b   :  { %683 = vst [vmem:[#allocation2 + $0x28] sm:$0xff] %v613_v4  ;;  %685 = vst [vmem:[#allocation2 + $0x38] sm:$0xff] %v666_v5  ;;  %v617_v8 = vadd.f32 %v616_v6, %v508_v49  ;;  %v670_v9 = vadd.f32 %v669_v7, %v516_v50 }
 0x22c   :  { %v618_v10 = vpop.f32.mrf.mxu1  ;;  %v671_v11 = vpop.f32.mrf.mxu0 }
 0x22d   :  { %686 = vst [vmem:[#allocation2 + $0x40] sm:$0xff] %v617_v8  ;;  %688 = vst [vmem:[#allocation2 + $0x50] sm:$0xff] %v670_v9  ;;  %v619_v12 = vadd.f32 %v618_v10, %v512_v51  ;;  %v672_v13 = vadd.f32 %v671_v11, %v520_v52 }
 0x22e   :  { %v620_v14 = vpop.f32.mrf.mxu1  ;;  %v673_v15 = vpop.f32.mrf.mxu0  ;;  %v5401_v16 = vld [vmem:[#allocation2] ss:$8 sm:$0x3]  ;;  %v5403_v17 = vld [vmem:[#allocation2 + $0x1] ss:$8 sm:$0x3] }
 0x22f   :  { %687 = vst [vmem:[#allocation2 + $0x48] sm:$0xff] %v619_v12  ;;  %689 = vst [vmem:[#allocation2 + $0x58] sm:$0xff] %v672_v13  ;;  %v621_v18 = vadd.f32 %v620_v14, %v508_v49  ;;  %v674_v20 = vadd.f32 %v673_v15, %v516_v50  ;;  %v5405_v21 = vld [vmem:[#allocation2 + $0x2] ss:$8 sm:$0x3]  ;;  %v728_v28 = vrot.slane %v5401_v16, %v5389_v44 }
 0x230   :  { %v5407_v23 = vld [vmem:[#allocation2 + $0x3] ss:$8 sm:$0x3]  ;;  %v622_v24 = vpop.f32.mrf.mxu1  ;;  %v675_v26 = vpop.f32.mrf.mxu0  ;;  %v732_v29 = vrot.slane %v5401_v16, %v5396_v47  ;;  %v995_v31 = vrot.slane %v5403_v17, %v5389_v44  ;;  %v5415_v42 = vld [vmem:[#allocation2 + $0x4] ss:$8 sm:$0x3]  ;;  %v999_v49 = vrot.slane %v5403_v17, %v5396_v47  ;;  %v1177_v50 = vrot.slane %v5405_v21, %v5389_v44 }
 0x231   :  { %v5417_v45 = vld [vmem:[#allocation2 + $0x5] ss:$8 sm:$0x3]  ;;  %690 = vst [vmem:[#allocation2 + $0x60] sm:$0xff] %v621_v18  ;;  %692 = vst [vmem:[#allocation2 + $0x70] sm:$0xff] %v674_v20  ;;  %v623_v46 = vadd.f32 %v622_v24, %v512_v51  ;;  %v676_v48 = vadd.f32 %v675_v26, %v520_v52  ;;  %v1181_v56 = vrot.slane %v5405_v21, %v5396_v47 }
 0x232   :  { %v5423_v53 = vld [vmem:[#allocation2 + $0x6] ss:$8 sm:$0x3]  ;;  %v721_v54 = vld [vmem:[#allocation2 + $0x37] ss:$8 sm:$0x3]  ;;  %v1359_v57 = vrot.slane %v5407_v23, %v5389_v44  ;;  %v1363_v51 = vrot.slane %v5407_v23, %v5396_v47  ;;  %v1541_v52 = vrot.slane %v5415_v42, %v5389_v44  ;;  %v1545_v62 = vrot.slane %v5415_v42, %v5396_v47 }
 0x233   :  { %v988_v55 = vld [vmem:[#allocation2 + $0x36] ss:$8 sm:$0x3]  ;;  %691 = vst [vmem:[#allocation2 + $0x68] sm:$0xff] %v623_v46  ;;  %693 = vst [vmem:[#allocation2 + $0x78] sm:$0xff] %v676_v48  ;;  %v750_v58 = vrot.slane %v721_v54, %v5389_v44  ;;  %v1723_v63 = vrot.slane %v5417_v45, %v5389_v44  ;;  %v754_v1 = vrot.slane %v721_v54, %v5396_v47 }
 0x234   :  { %v1170_v60 = vld [vmem:[#allocation2 + $0x35] ss:$8 sm:$0x3]  ;;  %v5434_v61 = vld [vmem:[#allocation2 + $0x34] ss:$8 sm:$0x3]  ;;  %v1017_v2 = vrot.slane %v988_v55, %v5389_v44  ;;  %v1021_v3 = vrot.slane %v988_v55, %v5396_v47 }
 0x235   :  { %v1199_v4 = vrot.slane %v1170_v60, %v5389_v44  ;;  %v5446_v5 = vld [vmem:[#allocation2 + $0x33] ss:$8 sm:$0x3]  ;;  %v5448_v6 = vld [vmem:[#allocation2 + $0x32] ss:$8 sm:$0x3]  ;;  %v1203_v7 = vrot.slane %v1170_v60, %v5396_v47  ;;  %v1381_v8 = vrot.slane %v5434_v61, %v5389_v44  ;;  %v1385_v9 = vrot.slane %v5434_v61, %v5396_v47 }
 0x236   :  { %v1563_v10 = vrot.slane %v5446_v5, %v5389_v44  ;;  %v719_v11 = vld [vmem:[#allocation2 + $0x40] ss:$8 sm:$0x3]  ;;  %v986_v12 = vld [vmem:[#allocation2 + $0x41] ss:$8 sm:$0x3]  ;;  %v1567_v13 = vrot.slane %v5446_v5, %v5396_v47  ;;  %v6833_v42 = vrot.slane %v5448_v6, %v5389_v44  ;;  %v1909_v5 = vrot.slane %v5423_v53, %v5396_v47 }
 0x237   :  { %v739_v17 = vrot.slane %v719_v11, %v5389_v44  ;;  %v743_v18 = vrot.slane %v719_v11, %v5396_v47  ;;  %v1006_v20 = vrot.slane %v986_v12, %v5389_v44  ;;  %v1010_v21 = vrot.slane %v986_v12, %v5396_v47  ;;  %v1168_v24 = vld [vmem:[#allocation2 + $0x42] ss:$8 sm:$0x3]  ;;  %v1350_v26 = vld [vmem:[#allocation2 + $0x43] ss:$8 sm:$0x3] }
 0x238   :  { %v1188_v46 = vrot.slane %v1168_v24, %v5389_v44  ;;  %v1192_v48 = vrot.slane %v1168_v24, %v5396_v47  ;;  %v1370_v54 = vrot.slane %v1350_v26, %v5389_v44  ;;  %v1374_v55 = vrot.slane %v1350_v26, %v5396_v47 }
 0x239   :  { %v768_v60 = vsel %vm84_vm0, %v728_v28, %v739_v17  ;;  %v769_v61 = vsel %vm84_vm0, %v732_v29, %v743_v18  ;;  %v1035_v11 = vsel %vm84_vm0, %v995_v31, %v1006_v20  ;;  %v1036_v59 = vsel %vm84_vm0, %v999_v49, %v1010_v21 }
 0x23a   :  { %v723_v16 = vld [vmem:[#allocation2 + $0x77] ss:$8 sm:$0x3]  ;;  %v771_v12 = vsel %vm770_vm7, %v768_v60, %v750_v58  ;;  %v772_v15 = vsel %vm770_vm7, %v769_v61, %v754_v1  ;;  %v990_v0 = vld [vmem:[#allocation2 + $0x76] ss:$8 sm:$0x3]  ;;  %v1037_v24 = vsel %vm770_vm7, %v1035_v11, %v1017_v2  ;;  %v1038_v14 = vsel %vm770_vm7, %v1036_v59, %v1021_v3 }
 0x23b   :  { %v761_v26 = vrot.slane %v723_v16, %v5389_v44  ;;  %v765_v28 = vrot.slane %v723_v16, %v5396_v47  ;;  %v1028_v29 = vrot.slane %v990_v0, %v5389_v44  ;;  %v1032_v31 = vrot.slane %v990_v0, %v5396_v47  ;;  %v1172_v17 = vld [vmem:[#allocation2 + $0x75] ss:$8 sm:$0x3]  ;;  %v1354_v49 = vld [vmem:[#allocation2 + $0x74] ss:$8 sm:$0x3] }
 0x23c   :  { %v1210_v18 = vrot.slane %v1172_v17, %v5389_v44  ;;  %v1217_v58 = vsel %vm84_vm0, %v1177_v50, %v1188_v46  ;;  %v1214_v1 = vrot.slane %v1172_v17, %v5396_v47  ;;  %v1218_v2 = vsel %vm84_vm0, %v1181_v56, %v1192_v48  ;;  %v1532_v0 = vld [vmem:[#allocation2 + $0x44] ss:$8 sm:$0x3]  ;;  %v1536_v21 = vld [vmem:[#allocation2 + $0x73] ss:$8 sm:$0x3] }
 0x23d   :  { %v774_v59 = vsel %vm773_vm8, %v771_v12, %v761_v26  ;;  %v775_v3 = vsel %vm773_vm8, %v772_v15, %v765_v28  ;;  %v5492_v16 = vsel %vm773_vm8, %v1037_v24, %v1028_v29  ;;  %v5495_v20 = vsel %vm773_vm8, %v1038_v14, %v1032_v31  ;;  %v1714_v15 = vld [vmem:[#allocation2 + $0x45] ss:$8 sm:$0x3]  ;;  %v1718_v11 = vld [vmem:[#allocation2 + $0x72] ss:$8 sm:$0x3] }
 0x23e   :  { %v1219_v60 = vsel %vm770_vm7, %v1217_v58, %v1199_v4  ;;  %v1220_v50 = vsel %vm770_vm7, %v1218_v2, %v1203_v7  ;;  %v1392_v46 = vrot.slane %v1354_v49, %v5389_v44  ;;  %v1399_v56 = vsel %vm84_vm0, %v1359_v57, %v1370_v54  ;;  %v1900_v58 = vld [vmem:[#allocation2 + $0x71] ss:$8 sm:$0x3] }
 0x23f   :  { %v5505_v48 = vsel %vm773_vm8, %v1219_v60, %v1210_v18  ;;  %v5508_v14 = vsel %vm773_vm8, %v1220_v50, %v1214_v1  ;;  %v1401_v61 = vsel %vm770_vm7, %v1399_v56, %v1381_v8  ;;  %v1396_v4 = vrot.slane %v1354_v49, %v5396_v47  ;;  %v1896_v18 = vld [vmem:[#allocation2 + $0x46] ss:$8 sm:$0x3] }
 0x240   :  { %v5513_v7 = vsel %vm773_vm8, %v1401_v61, %v1392_v46  ;;  %v1400_v57 = vsel %vm84_vm0, %v1363_v51, %v1374_v55  ;;  %v1552_v54 = vrot.slane %v1532_v0, %v5389_v44  ;;  %v1574_v12 = vrot.slane %v1536_v21, %v5389_v44  ;;  %v2076_v61 = vld [vmem:[#allocation2 + $0x7] ss:$8 sm:$0x3] }
 0x241   :  { %v1402_v24 = vsel %vm770_vm7, %v1400_v57, %v1385_v9  ;;  %v1556_v26 = vrot.slane %v1532_v0, %v5396_v47  ;;  %v1578_v8 = vrot.slane %v1536_v21, %v5396_v47  ;;  %v1734_v28 = vrot.slane %v1714_v15, %v5389_v44  ;;  %v1898_v0 = vld [vmem:[#allocation2 + $0x31] ss:$8 sm:$0x3] }
 0x242   :  { %v890_v29 = vpop.f32.mrf.mxu1  ;;  %v5526_v31 = vsel %vm773_vm8, %v1402_v24, %v1396_v4  ;;  %v1581_v23 = vsel %vm84_vm0, %v1541_v52, %v1552_v54  ;;  %v1756_v51 = vrot.slane %v1718_v11, %v5389_v44  ;;  %v1738_v55 = vrot.slane %v1714_v15, %v5396_v47  ;;  %v2080_v24 = vld [vmem:[#allocation2 + $0x30] ss:$8 sm:$0x3] }
 0x243   :  { %v5534_v9 = vadd.f32 %v890_v29, %v774_v59  ;;  %v1583_v17 = vsel %vm770_vm7, %v1581_v23, %v1563_v10  ;;  %v1582_v49 = vsel %vm84_vm0, %v1545_v62, %v1556_v26  ;;  %v1763_v52 = vsel %vm84_vm0, %v1723_v63, %v1734_v28  ;;  %v2082_v23 = vld [vmem:[#allocation2 + $0x70] ss:$8 sm:$0x3] }
 0x244   :  { %v892_v1 = vpop.f32.mrf.mxu1  ;;  %v5549_v2 = vsel %vm773_vm8, %v1583_v17, %v1574_v12  ;;  %v1584_v10 = vsel %vm770_vm7, %v1582_v49, %v1567_v13  ;;  %v1765_v62 = vsel %vm770_vm7, %v1763_v52, %v6833_v42  ;;  %v1760_v59 = vrot.slane %v1718_v11, %v5396_v47  ;;  %v2078_v12 = vld [vmem:[#allocation2 + $0x47] ss:$8 sm:$0x3]  ;;  %v2258_v49 = vld [vmem:[#allocation2 + $0x20] ss:$8 sm:$0x3] }
 0x245   :  { %v5560_v63 = vadd.f32 %v892_v1, %v775_v3  ;;  %v5563_v21 = vsel %vm773_vm8, %v1584_v10, %v1578_v8  ;;  %v5566_v60 = vsel %vm773_vm8, %v1765_v62, %v1756_v51  ;;  %v6834_v50 = vrot.slane %v5417_v45, %v5396_v47  ;;  %v2260_v52 = vld [vmem:[#allocation2 + $0x60] ss:$8 sm:$0x3]  ;;  %v2262_v10 = vld [vmem:[#allocation2 + $0x17] ss:$8 sm:$0x3] }
 0x246   :  { %v894_v13 = vpop.f32.mrf.mxu1  ;;  %v1916_v56 = vrot.slane %v1896_v18, %v5389_v44  ;;  %v1938_v3 = vrot.slane %v1900_v58, %v5389_v44  ;;  %v1920_v15 = vrot.slane %v1896_v18, %v5396_v47  ;;  %v6835_v4 = vrot.slane %v5448_v6, %v5396_v47 }
 0x247   :  { %v1764_v46 = vsel %vm84_vm0, %v6834_v50, %v1738_v55  ;;  %v1927_v57 = vrot.slane %v1898_v0, %v5389_v44  ;;  %v1931_v54 = vrot.slane %v1898_v0, %v5396_v47  ;;  %v1942_v45 = vrot.slane %v1900_v58, %v5396_v47 }
 0x248   :  { %v1766_v11 = vsel %vm770_vm7, %v1764_v46, %v6835_v4  ;;  %4729 = vtanh.f32 %v5560_v63  ;;  %v895_v26 = vpop.f32.mrf.mxu1  ;;  %v6836_v28 = vrot.slane %v5423_v53, %v5389_v44  ;;  %v1946_v29 = vsel %vm84_vm0, %v1909_v5, %v1920_v15  ;;  %v2264_v5 = vld [vmem:[#allocation2 + $0x57] ss:$8 sm:$0x3] }
 0x249   :  { %v5586_v8 = vsel %vm773_vm8, %v1766_v11, %v1760_v59  ;;  %v1948_v55 = vsel %vm770_vm7, %v1946_v29, %v1931_v54  ;;  %v2087_v17 = vrot.slane %v2076_v61, %v5389_v44  ;;  %v2098_v53 = vrot.slane %v2078_v12, %v5389_v44  ;;  %v2442_v11 = vld [vmem:[#allocation2 + $0x61] ss:$8 sm:$0x3]  ;;  %v2446_v26 = vld [vmem:[#allocation2 + $0x56] ss:$8 sm:$0x3] }
 0x24a   :  { %v1945_v6 = vsel %vm84_vm0, %v6836_v28, %v1916_v56  ;;  %v5600_v58 = vsel %vm773_vm8, %v1948_v55, %v1942_v45  ;;  %v2109_v1 = vrot.slane %v2080_v24, %v5389_v44  ;;  %v2120_v42 = vrot.slane %v2082_v23, %v5389_v44 }
 0x24b   :  { %v1947_v51 = vsel %vm770_vm7, %v1945_v6, %v1927_v57  ;;  %v2091_v62 = vrot.slane %v2076_v61, %v5396_v47  ;;  %v2102_v59 = vrot.slane %v2078_v12, %v5396_v47  ;;  %v2113_v0 = vrot.slane %v2080_v24, %v5396_v47  ;;  %v2440_v61 = vld [vmem:[#allocation2 + $0x21] ss:$8 sm:$0x3]  ;;  %v2444_v24 = vld [vmem:[#allocation2 + $0x16] ss:$8 sm:$0x3] }
 0x24c   :  { %v5597_v18 = vsel %vm773_vm8, %v1947_v51, %v1938_v3  ;;  %v2127_v13 = vsel %vm84_vm0, %v2087_v17, %v2098_v53  ;;  %v2124_v50 = vrot.slane %v2082_v23, %v5396_v47  ;;  %v2269_v46 = vrot.slane %v2258_v49, %v5389_v44 }
 0x24d   :  { %v2280_v56 = vrot.slane %v2260_v52, %v5389_v44  ;;  %v2129_v3 = vsel %vm770_vm7, %v2127_v13, %v2109_v1  ;;  %v2128_v15 = vsel %vm84_vm0, %v2091_v62, %v2102_v59  ;;  %v2291_v4 = vrot.slane %v2262_v10, %v5389_v44 }
 0x24e   :  { %v5616_v57 = vsel %vm773_vm8, %v2129_v3, %v2120_v42  ;;  %v2130_v54 = vsel %vm770_vm7, %v2128_v15, %v2113_v0  ;;  %v2302_v45 = vrot.slane %v2264_v5, %v5389_v44  ;;  %v2273_v29 = vrot.slane %v2258_v49, %v5396_v47  ;;  %v2622_v49 = vld [vmem:[#allocation2 + $0x22] ss:$8 sm:$0x3] }
 0x24f   :  { %v2309_v12 = vsel %vm84_vm0, %v2269_v46, %v2280_v56  ;;  %v5622_v28 = vsel %vm773_vm8, %v2130_v54, %v2124_v50  ;;  %v2284_v23 = vrot.slane %v2260_v52, %v5396_v47  ;;  %v2295_v55 = vrot.slane %v2262_v10, %v5396_v47  ;;  %v2624_v0 = vld [vmem:[#allocation2 + $0x62] ss:$8 sm:$0x3]  ;;  %v2626_v46 = vld [vmem:[#allocation2 + $0x15] ss:$8 sm:$0x3] }
 0x250   :  { %v2311_v6 = vsel %vm770_vm7, %v2309_v12, %v2291_v4  ;;  %v2451_v17 = vrot.slane %v2440_v61, %v5389_v44  ;;  %v2462_v53 = vrot.slane %v2442_v11, %v5389_v44  ;;  %v2306_v1 = vrot.slane %v2264_v5, %v5396_v47  ;;  %v2628_v56 = vld [vmem:[#allocation2 + $0x55] ss:$8 sm:$0x3] }
 0x251   :  { %v5628_v51 = vsel %vm773_vm8, %v2311_v6, %v2302_v45  ;;  %v2310_v42 = vsel %vm84_vm0, %v2273_v29, %v2284_v23  ;;  %v2473_v62 = vrot.slane %v2444_v24, %v5389_v44  ;;  %v2484_v59 = vrot.slane %v2446_v26, %v5389_v44 }
 0x252   :  { %v2312_v52 = vsel %vm770_vm7, %v2310_v42, %v2295_v55  ;;  %v2491_v13 = vsel %vm84_vm0, %v2451_v17, %v2462_v53  ;;  %v2455_v10 = vrot.slane %v2440_v61, %v5396_v47  ;;  %v2466_v50 = vrot.slane %v2442_v11, %v5396_v47  ;;  %v2804_v55 = vld [vmem:[#allocation2 + $0x23] ss:$8 sm:$0x3]  ;;  %v2808_v42 = vld [vmem:[#allocation2 + $0x14] ss:$8 sm:$0x3] }
 0x253   :  { %v5642_v5 = vsel %vm773_vm8, %v2312_v52, %v2306_v1  ;;  %v2493_v3 = vsel %vm770_vm7, %v2491_v13, %v2473_v62  ;;  %v2477_v15 = vrot.slane %v2444_v24, %v5396_v47  ;;  %v2488_v4 = vrot.slane %v2446_v26, %v5396_v47  ;;  %v2806_v24 = vld [vmem:[#allocation2 + $0x63] ss:$8 sm:$0x3]  ;;  %v2810_v62 = vld [vmem:[#allocation2 + $0x54] ss:$8 sm:$0x3] }
 0x254   :  { %v5648_v54 = vsel %vm773_vm8, %v2493_v3, %v2484_v59  ;;  %v2492_v45 = vsel %vm84_vm0, %v2455_v10, %v2466_v50  ;;  %v2633_v61 = vrot.slane %v2622_v49, %v5389_v44  ;;  %v2644_v11 = vrot.slane %v2624_v0, %v5389_v44 }
 0x255   :  { %v4730_v12 = vpop.eup %4729  ;;  %v2494_v6 = vsel %vm770_vm7, %v2492_v45, %v2477_v15  ;;  %v2655_v29 = vrot.slane %v2626_v46, %v5389_v44  ;;  %v2666_v23 = vrot.slane %v2628_v56, %v5389_v44  ;;  %v2637_v53 = vrot.slane %v2622_v49, %v5396_v47  ;;  %v2986_v49 = vld [vmem:[#allocation2 + $0x24] ss:$8 sm:$0x3] }
 0x256   :  { %914 = vrot.lane.b32.xlu1 %v4730_v12, %s4978_s4  ;;  %v5658_v26 = vsel %vm773_vm8, %v2494_v6, %v2488_v4  ;;  %v2673_v17 = vsel %vm84_vm0, %v2633_v61, %v2644_v11  ;;  %v2648_v1 = vrot.slane %v2624_v0, %v5396_v47  ;;  %v2659_v52 = vrot.slane %v2626_v46, %v5396_v47  ;;  %v2988_v61 = vld [vmem:[#allocation2 + $0x64] ss:$8 sm:$0x3]  ;;  %v2990_v46 = vld [vmem:[#allocation2 + $0x13] ss:$8 sm:$0x3] }
 0x257   :  { %v2675_v59 = vsel %vm770_vm7, %v2673_v17, %v2655_v29  ;;  %v2670_v13 = vrot.slane %v2628_v56, %v5396_v47  ;;  %v2815_v3 = vrot.slane %v2804_v55, %v5389_v44  ;;  %v2826_v15 = vrot.slane %v2806_v24, %v5389_v44  ;;  %v2992_v29 = vld [vmem:[#allocation2 + $0x53] ss:$8 sm:$0x3] }
 0x258   :  { %v5667_v10 = vsel %vm773_vm8, %v2675_v59, %v2666_v23  ;;  %v2674_v50 = vsel %vm84_vm0, %v2637_v53, %v2648_v1  ;;  %v2837_v4 = vrot.slane %v2808_v42, %v5389_v44  ;;  %v2848_v45 = vrot.slane %v2810_v62, %v5389_v44 }
 0x259   :  { %v2676_v0 = vsel %vm770_vm7, %v2674_v50, %v2659_v52  ;;  %v2855_v11 = vsel %vm84_vm0, %v2815_v3, %v2826_v15  ;;  %v2819_v12 = vrot.slane %v2804_v55, %v5396_v47  ;;  %v2830_v6 = vrot.slane %v2806_v24, %v5396_v47  ;;  %v3168_v50 = vld [vmem:[#allocation2 + $0x25] ss:$8 sm:$0x3] }
 0x25a   :  { %v5676_v56 = vsel %vm773_vm8, %v2676_v0, %v2670_v13  ;;  %v2857_v23 = vsel %vm770_vm7, %v2855_v11, %v2837_v4  ;;  %v2841_v17 = vrot.slane %v2808_v42, %v5396_v47  ;;  %v2852_v53 = vrot.slane %v2810_v62, %v5396_v47  ;;  %v3170_v24 = vld [vmem:[#allocation2 + $0x65] ss:$8 sm:$0x3]  ;;  %v3172_v0 = vld [vmem:[#allocation2 + $0x12] ss:$8 sm:$0x3] }
 0x25b   :  { %v2997_v1 = vrot.slane %v2986_v49, %v5389_v44  ;;  %v5686_v59 = vsel %vm773_vm8, %v2857_v23, %v2848_v45  ;;  %v2856_v52 = vsel %vm84_vm0, %v2819_v12, %v2830_v6  ;;  %v3008_v13 = vrot.slane %v2988_v61, %v5389_v44  ;;  %v3174_v4 = vld [vmem:[#allocation2 + $0x52] ss:$8 sm:$0x3] }
 0x25c   :  { %v3019_v55 = vrot.slane %v2990_v46, %v5389_v44  ;;  %v2858_v3 = vsel %vm770_vm7, %v2856_v52, %v2841_v17  ;;  %v3030_v15 = vrot.slane %v2992_v29, %v5389_v44  ;;  %v3001_v42 = vrot.slane %v2986_v49, %v5396_v47 }
 0x25d   :  { %v3012_v62 = vrot.slane %v2988_v61, %v5396_v47  ;;  %v5696_v45 = vsel %vm773_vm8, %v2858_v3, %v2852_v53  ;;  %v3037_v11 = vsel %vm84_vm0, %v2997_v1, %v3008_v13  ;;  %v3023_v12 = vrot.slane %v2990_v46, %v5396_v47  ;;  %v3350_v46 = vld [vmem:[#allocation2 + $0x26] ss:$8 sm:$0x3] }
 0x25e   :  { %v3034_v6 = vrot.slane %v2992_v29, %v5396_v47  ;;  %v3039_v23 = vsel %vm770_vm7, %v3037_v11, %v3019_v55  ;;  %v3179_v52 = vrot.slane %v3168_v50, %v5389_v44  ;;  %v3190_v49 = vrot.slane %v3170_v24, %v5389_v44  ;;  %v3352_v13 = vld [vmem:[#allocation2 + $0x66] ss:$8 sm:$0x3]  ;;  %v3354_v11 = vld [vmem:[#allocation2 + $0x11] ss:$8 sm:$0x3] }
 0x25f   :  { %v3038_v17 = vsel %vm84_vm0, %v3001_v42, %v3012_v62  ;;  %v5706_v61 = vsel %vm773_vm8, %v3039_v23, %v3030_v15  ;;  %v3201_v3 = vrot.slane %v3172_v0, %v5389_v44  ;;  %v3212_v1 = vrot.slane %v3174_v4, %v5389_v44 }
 0x260   :  { %6837 = vst [vmem:[#allocation7_spill] sm:$0xff] %v5706_v61  ;;  %v3040_v53 = vsel %vm770_vm7, %v3038_v17, %v3023_v12  ;;  %v3219_v55 = vsel %vm84_vm0, %v3179_v52, %v3190_v49  ;;  %v3183_v42 = vrot.slane %v3168_v50, %v5396_v47  ;;  %v3194_v62 = vrot.slane %v3170_v24, %v5396_v47  ;;  %v3356_v17 = vld [vmem:[#allocation2 + $0x51] ss:$8 sm:$0x3] }
 0x261   :  { %v5712_v29 = vsel %vm773_vm8, %v3040_v53, %v3034_v6  ;;  %v3221_v15 = vsel %vm770_vm7, %v3219_v55, %v3201_v3  ;;  %v3205_v12 = vrot.slane %v3172_v0, %v5396_v47  ;;  %v3216_v23 = vrot.slane %v3174_v4, %v5396_v47  ;;  %v3532_v3 = vld [vmem:[#allocation2 + $0x27] ss:$8 sm:$0x3] }
 0x262   :  { %v5721_v61 = vsel %vm773_vm8, %v3221_v15, %v3212_v1  ;;  %v3220_v6 = vsel %vm84_vm0, %v3183_v42, %v3194_v62  ;;  %v3361_v53 = vrot.slane %v3350_v46, %v5389_v44  ;;  %v3372_v52 = vrot.slane %v3352_v13, %v5389_v44  ;;  %v3534_v4 = vld [vmem:[#allocation2 + $0x67] ss:$8 sm:$0x3]  ;;  %v3536_v15 = vld [vmem:[#allocation2 + $0x10] ss:$8 sm:$0x3] }
 0x263   :  { %6838 = vst [vmem:[#allocation8_spill] sm:$0xff] %v5721_v61  ;;  %v3222_v50 = vsel %vm770_vm7, %v3220_v6, %v3205_v12  ;;  %v3383_v24 = vrot.slane %v3354_v11, %v5389_v44  ;;  %v3365_v49 = vrot.slane %v3350_v46, %v5396_v47  ;;  %v3376_v0 = vrot.slane %v3352_v13, %v5396_v47  ;;  %v3538_v61 = vld [vmem:[#allocation2 + $0x50] ss:$8 sm:$0x3] }
 0x264   :  { %v5731_v55 = vsel %vm773_vm8, %v3222_v50, %v3216_v23  ;;  %v3394_v1 = vrot.slane %v3356_v17, %v5389_v44  ;;  %v3401_v42 = vsel %vm84_vm0, %v3361_v53, %v3372_v52  ;;  %v3387_v62 = vrot.slane %v3354_v11, %v5396_v47 }
 0x265   :  { %6839 = vst [vmem:[#allocation9_spill] sm:$0xff] %v5731_v55  ;;  %v3403_v12 = vsel %vm770_vm7, %v3401_v42, %v3383_v24  ;;  %v3398_v6 = vrot.slane %v3356_v17, %v5396_v47  ;;  %v3402_v46 = vsel %vm84_vm0, %v3365_v49, %v3376_v0  ;;  %v3543_v50 = vrot.slane %v3532_v3, %v5389_v44 }
 0x266   :  { %v5740_v13 = vsel %vm773_vm8, %v3403_v12, %v3394_v1  ;;  %v3404_v23 = vsel %vm770_vm7, %v3402_v46, %v3387_v62  ;;  %v3554_v55 = vrot.slane %v3534_v4, %v5389_v44  ;;  %v3565_v11 = vrot.slane %v3536_v15, %v5389_v44 }
 0x267   :  { %v5746_v53 = vsel %vm773_vm8, %v3404_v23, %v3398_v6  ;;  %v3547_v52 = vrot.slane %v3532_v3, %v5396_v47  ;;  %v3558_v17 = vrot.slane %v3534_v4, %v5396_v47  ;;  %v3576_v24 = vrot.slane %v3538_v61, %v5389_v44 }
 0x268   :  { %v3583_v49 = vsel %vm84_vm0, %v3543_v50, %v3554_v55  ;;  %v3569_v0 = vrot.slane %v3536_v15, %v5396_v47  ;;  %v3580_v42 = vrot.slane %v3538_v61, %v5396_v47  ;;  %v4362_v4 = vmul.f32 -1.442695, %v5534_v9 }
 0x269   :  { %v3585_v1 = vsel %vm770_vm7, %v3583_v49, %v3565_v11  ;;  %v3584_v62 = vsel %vm84_vm0, %v3547_v52, %v3558_v17  ;;  %v4979_v17 = vmov 0.0   ;;  %v4363_v9 = vmul.f32 -1.442695, %v5560_v63 }
 0x26a   :  { %v5758_v12 = vsel %vm773_vm8, %v3585_v1, %v3576_v24  ;;  %v3586_v6 = vsel %vm770_vm7, %v3584_v62, %v3569_v0  ;;  %4731 = vpow2.f32 %v4362_v4  ;;  %713 = vst [vmem:[#allocation3 + $0x10] sm:$0xf] %v4979_v17  ;;  %711 = vst [vmem:[#allocation3] sm:$0xff] %v4979_v17  ;;  %v4980_v0 = vmov 1966171168  }
 0x26b   :  { %v5762_v3 = vsel %vm773_vm8, %v3586_v6, %v3580_v42  ;;  %712 = vst [vmem:[#allocation3 + $0x8] sm:$0xff] %v4979_v17  ;;  %714 = vst [vmem:[#allocation3 + $0x18] sm:$0xff] %v4979_v17  ;;  %v931_v1 = vunpack.c.l.s4 %v4980_v0 }
 0x26c   :  { %715 = vst [vmem:[#allocation3 + $0x20] sm:$0xff] %v4979_v17  ;;  %716 = vst [vmem:[#allocation3 + $0x28] sm:$0xf] %v4979_v17  ;;  %v6840_v17 = vmov 0  }
 0x26d   :  { %v932_v42 = vunpack.c.0.s8 %v931_v1 }
 0x26f   :  { %v5772_v62 = vsub.s32 %v932_v42, %v5386_v43  ;;  %v5789_v43 = vld [vmem:[%s6827_s6] sm:$0xf] }
 0x277   :  { %v4732_v55 = vpop.eup %4731 }
 0x278   :  { %v905_v46 = vadd.f32 1.0, %v4732_v55 }
 0x27a   :  { %4733 = vrcp.f32 %v905_v46 }
 0x287   :  { %v4734_v15 = vpop.eup %4733 }
 0x288   :  { %v912_v47 = vmul.f32 0.0, %v4734_v15 }
 0x2c8   :  { %v915_v23 = vpop.permute.xlu1 %914 }
 0x2c9   :  { %v917_v50 = vmul.f32 %v4734_v15, %v915_v23 }
 0x2cb   :  { %919 = vrot.lane.b32.xlu1 %v917_v50, %s4978_s4 }
 0x33d   :  { %v920_v61 = vpop.permute.xlu1 %919 }
 0x33e   :  { %v5766_v11 = vadd.f32 %v920_v61, %v912_v47 }
 0x340   :  { %4735 = vtanh.f32 %v5766_v11 }
 0x341   :  { %4737 = vpow2.f32 %v4363_v9 }
 0x34d   :  { %v4736_v52 = vpop.eup %4735 }
 0x34e   :  { %925 = vrot.lane.b32.xlu1 %v4736_v52, %s4978_s4  ;;  %v4738_v24 = vpop.eup %4737 }
 0x34f   :  { %v906_v49 = vadd.f32 1.0, %v4738_v24 }
 0x351   :  { %4739 = vrcp.f32 %v906_v49 }
 0x35e   :  { %v4740_v6 = vpop.eup %4739 }
 0x3c0   :  { %v926_v4 = vpop.permute.xlu1 %925 }
 0x3c1   :  { %v928_v55 = vmul.f32 %v4740_v6, %v926_v4 }
 0x3c3   :  { %v936_v46 = vrot.slane %v928_v55, %v5772_v62  ;;  %976 = vrot.lane.b32.xlu1 %v928_v55, %s4978_s4 }
 0x3c5   :  { %v937_v15 = vcombine.high %v936_v46, %v936_v46  ;;  %v5777_v63 = vrot.slane %v936_v46, %v5772_v62 }
 0x3c7   :  { %v5780_v23 = vrot.slane %v937_v15, %v5772_v62  ;;  %955 = vst.msk [vmem:[#allocation3 + $0x2] sm:$0x1] %vm954_vm9, %v5777_v63 }
 0x3c9   :  { %956 = vst.msk [vmem:[#allocation3 + $0x1a] sm:$0x1] %vm954_vm9, %v5780_v23 }
 0x435   :  { %v977_v50 = vpop.permute.xlu1 %976 }
 0x436   :  { %v980_v47 = vsel %vm979_vm10, %v928_v55, %v977_v50 }
 0x437   :  { %v981_v61 = vmul.f32 %v980_v47, %v5789_v43 }
 0x439   :  { %v982_v52 = vpack.c.bf16 %v981_v61, %v981_v61 }
 0x43b   :  { %1074 = vmatmul.mubr.bf16.vlgmr.msra.gmra.mxu0 %v982_v52 }
 0x43c   :  { %1406 = vmatpush1.bf16.msra.mxu0 %v5256_v19  ;;  %1437 = vmatprep.mubr.bf16.mxu0 %v6840_v17  ;;  %v5812_v19 = vld [vmem:[%s6826_s5 + $0x74] ss:$8 sps:$4 sm:$0xff]  }
 0x43d   :  { %1407 = vmatprep.subr.bf16.mxu0 %v5261_v22 }
 0x440   :  { %1408 = vmatpush1.bf16.msra.mxu0 %v5269_v25 }
 0x441   :  { %1409 = vmatprep.subr.bf16.mxu0 %v5277_v27 }
 0x444   :  { %1410 = vmatpush1.bf16.msra.mxu0 %v5285_v30 }
 0x445   :  { %1411 = vmatprep.subr.bf16.mxu0 %v5291_v32 }
 0x448   :  { %1412 = vmatpush1.bf16.msra.mxu0 %v5300_v33 }
 0x449   :  { %1413 = vmatprep.subr.bf16.mxu0 %v5307_v34 }
 0x44c   :  { %1414 = vmatpush1.bf16.msra.mxu0 %v5317_v35 }
 0x44d   :  { %1415 = vmatprep.subr.bf16.mxu0 %v5323_v36 }
 0x450   :  { %1416 = vmatpush1.bf16.msra.mxu0 %v5331_v37 }
 0x451   :  { %1417 = vmatprep.subr.bf16.mxu0 %v5337_v38 }
 0x454   :  { %1418 = vmatpush1.bf16.msra.mxu0 %v5345_v39 }
 0x455   :  { %1419 = vmatprep.subr.bf16.mxu0 %v5351_v40 }
 0x458   :  { %1420 = vmatpush1.bf16.msra.mxu0 %v5359_v41 }
 0x459   :  { %1769 = vmatprep.subr.bf16.mxu0 %v5812_v19 }
 0x4fb   :  { %v1075_v22 = vpop.f32.mrf.mxu0 }
 0x4fc   :  { %v1082_v25 = vadd.f32 %v1075_v22, %v5492_v16  ;;  %v5841_v22 = vld [vmem:[%s6826_s5 + $0x70] ss:$8 sps:$4 sm:$0xff]  }
 0x4fd   :  { %v1077_v27 = vpop.f32.mrf.mxu0 }
 0x4fe   :  { %v1083_v30 = vadd.f32 %v1077_v27, %v5495_v20  ;;  %v4364_v35 = vmul.f32 -1.442695, %v1082_v25  ;;  %v5848_v25 = vld [vmem:[%s6826_s5 + $0x64] ss:$8 sps:$4 sm:$0xff]   ;;  %v5854_v27 = vld [vmem:[%s6826_s5 + $0x60] ss:$8 sps:$4 sm:$0xff]  }
 0x4ff   :  { %v1079_v32 = vpop.f32.mrf.mxu0 }
 0x500   :  { %4741 = vtanh.f32 %v1083_v30  ;;  %v4365_v49 = vmul.f32 -1.442695, %v1083_v30  ;;  %v5860_v30 = vld [vmem:[%s6826_s5 + $0x54] ss:$8 sps:$4 sm:$0xff]   ;;  %v5866_v32 = vld [vmem:[%s6826_s5 + $0x50] ss:$8 sps:$4 sm:$0xff]  }
 0x501   :  { %v1080_v33 = vpop.f32.mrf.mxu0  ;;  %4743 = vpow2.f32 %v4364_v35  ;;  %v5884_v35 = vld [vmem:[%s6826_s5 + $0x34] ss:$8 sps:$4 sm:$0xff]  }
 0x502   :  { %v5872_v33 = vld [vmem:[%s6826_s5 + $0x44] ss:$8 sps:$4 sm:$0xff]  }
 0x50d   :  { %v4742_v34 = vpop.eup %4741 }
 0x50e   :  { %1099 = vrot.lane.b32.xlu1 %v4742_v34, %s4978_s4  ;;  %v4744_v36 = vpop.eup %4743  ;;  %v5878_v34 = vld [vmem:[%s6826_s5 + $0x40] ss:$8 sps:$4 sm:$0xff]  }
 0x50f   :  { %v1090_v37 = vadd.f32 1.0, %v4744_v36  ;;  %v5890_v36 = vld [vmem:[%s6826_s5 + $0x30] ss:$8 sps:$4 sm:$0xff]  }
 0x511   :  { %4745 = vrcp.f32 %v1090_v37  ;;  %v5896_v37 = vld [vmem:[%s6826_s5 + $0x24] ss:$8 sps:$4 sm:$0xff]  }
 0x51e   :  { %v4746_v38 = vpop.eup %4745 }
 0x51f   :  { %v1097_v16 = vmul.f32 %v4746_v38, %v5766_v11 }
 0x580   :  { %v1100_v39 = vpop.permute.xlu1 %1099 }
 0x581   :  { %v1102_v40 = vmul.f32 %v4746_v38, %v1100_v39  ;;  %v5902_v38 = vld [vmem:[%s6826_s5 + $0x20] ss:$8 sps:$4 sm:$0xff]   ;;  %v5908_v39 = vld [vmem:[%s6826_s5 + $0x14] ss:$8 sps:$4 sm:$0xff]  }
 0x583   :  { %1104 = vrot.lane.b32.xlu1 %v1102_v40, %s4978_s4  ;;  %v5914_v40 = vld [vmem:[%s6826_s5 + $0x10] ss:$8 sps:$4 sm:$0xff]  }
 0x5f5   :  { %v1105_v9 = vpop.permute.xlu1 %1104 }
 0x5f6   :  { %v5820_v20 = vadd.f32 %v1105_v9, %v1097_v16  ;;  %v5920_v16 = vld [vmem:[%s6826_s5 + $0x4] ss:$8 sps:$4 sm:$0xff]  }
 0x5f8   :  { %4747 = vtanh.f32 %v5820_v20 }
 0x5f9   :  { %4749 = vpow2.f32 %v4365_v49 }
 0x605   :  { %v4748_v24 = vpop.eup %4747 }
 0x606   :  { %1110 = vrot.lane.b32.xlu1 %v4748_v24, %s4978_s4  ;;  %v4750_v0 = vpop.eup %4749 }
 0x607   :  { %v1091_v1 = vadd.f32 1.0, %v4750_v0 }
 0x609   :  { %4751 = vrcp.f32 %v1091_v1 }
 0x616   :  { %v4752_v42 = vpop.eup %4751 }
 0x678   :  { %v1111_v6 = vpop.permute.xlu1 %1110 }
 0x679   :  { %v1113_v4 = vmul.f32 %v4752_v42, %v1111_v6 }
 0x67b   :  { %v1121_v55 = vrot.slane %v1113_v4, %v5772_v62  ;;  %1159 = vrot.lane.b32.xlu1 %v1113_v4, %s4978_s4 }
 0x67d   :  { %v1122_v11 = vcombine.high %v1121_v55, %v1121_v55  ;;  %v5827_v46 = vrot.slane %v1121_v55, %v5772_v62 }
 0x67f   :  { %1139 = vst.msk [vmem:[#allocation3 + $0x3] sm:$0x1] %vm954_vm9, %v5827_v46  ;;  %v5832_v15 = vrot.slane %v1122_v11, %v5772_v62 }
 0x681   :  { %1140 = vst.msk [vmem:[#allocation3 + $0x1b] sm:$0x1] %vm954_vm9, %v5832_v15 }
 0x6ed   :  { %v1160_v50 = vpop.permute.xlu1 %1159 }
 0x6ee   :  { %v1162_v47 = vsel %vm979_vm10, %v1113_v4, %v1160_v50 }
 0x6ef   :  { %v1163_v61 = vmul.f32 %v1162_v47, %v5789_v43 }
 0x6f1   :  { %v1164_v52 = vpack.c.bf16 %v1163_v61, %v1163_v61 }
 0x6f3   :  { %1256 = vmatmul.mubr.bf16.vlgmr.msra.gmra.mxu1 %v1164_v52 }
 0x6f4   :  { %1588 = vmatpush1.bf16.msra.mxu1 %v5841_v22  ;;  %1619 = vmatprep.mubr.bf16.mxu1 %v6840_v17 }
 0x6f5   :  { %1589 = vmatprep.subr.bf16.mxu1 %v5848_v25 }
 0x6f8   :  { %1590 = vmatpush1.bf16.msra.mxu1 %v5854_v27 }
 0x6f9   :  { %1591 = vmatprep.subr.bf16.mxu1 %v5860_v30 }
 0x6fc   :  { %1592 = vmatpush1.bf16.msra.mxu1 %v5866_v32 }
 0x6fd   :  { %1593 = vmatprep.subr.bf16.mxu1 %v5872_v33 }
 0x700   :  { %1594 = vmatpush1.bf16.msra.mxu1 %v5878_v34 }
 0x701   :  { %1595 = vmatprep.subr.bf16.mxu1 %v5884_v35 }
 0x704   :  { %1596 = vmatpush1.bf16.msra.mxu1 %v5890_v36 }
 0x705   :  { %1597 = vmatprep.subr.bf16.mxu1 %v5896_v37 }
 0x708   :  { %1598 = vmatpush1.bf16.msra.mxu1 %v5902_v38 }
 0x709   :  { %1599 = vmatprep.subr.bf16.mxu1 %v5908_v39 }
 0x70c   :  { %1600 = vmatpush1.bf16.msra.mxu1 %v5914_v40 }
 0x70d   :  { %1601 = vmatprep.subr.bf16.mxu1 %v5920_v16 }
 0x710   :  { %1602 = vmatpush1.bf16.msra.mxu1 %v5359_v41 }
 0x711   :  { %1951 = vmatprep.subr.bf16.mxu1 %v5812_v19 }
 0x7b3   :  { %v1257_v9 = vpop.f32.mrf.mxu1 }
 0x7b4   :  { %v1264_v24 = vadd.f32 %v1257_v9, %v5505_v48 }
 0x7b5   :  { %v1259_v49 = vpop.f32.mrf.mxu1 }
 0x7b6   :  { %v1265_v0 = vadd.f32 %v1259_v49, %v5508_v14  ;;  %v4366_v4 = vmul.f32 -1.442695, %v1264_v24 }
 0x7b7   :  { %v1261_v1 = vpop.f32.mrf.mxu1 }
 0x7b8   :  { %4753 = vtanh.f32 %v1265_v0  ;;  %v4367_v9 = vmul.f32 -1.442695, %v1265_v0 }
 0x7b9   :  { %v1262_v42 = vpop.f32.mrf.mxu1  ;;  %4755 = vpow2.f32 %v4366_v4 }
 0x7c5   :  { %v4754_v6 = vpop.eup %4753 }
 0x7c6   :  { %1281 = vrot.lane.b32.xlu1 %v4754_v6, %s4978_s4  ;;  %v4756_v55 = vpop.eup %4755 }
 0x7c7   :  { %v1272_v11 = vadd.f32 1.0, %v4756_v55 }
 0x7c9   :  { %4757 = vrcp.f32 %v1272_v11 }
 0x7d6   :  { %v4758_v41 = vpop.eup %4757 }
 0x7d7   :  { %v1279_v48 = vmul.f32 %v4758_v41, %v5820_v20 }
 0x838   :  { %v1282_v50 = vpop.permute.xlu1 %1281 }
 0x839   :  { %v1284_v47 = vmul.f32 %v4758_v41, %v1282_v50 }
 0x83b   :  { %1286 = vrot.lane.b32.xlu1 %v1284_v47, %s4978_s4 }
 0x8ad   :  { %v1287_v61 = vpop.permute.xlu1 %1286 }
 0x8ae   :  { %v1289_v14 = vadd.f32 %v1287_v61, %v1279_v48  ;;  %v5963_v48 = vld [vmem:[%s6826_s5] ss:$8 sps:$4 sm:$0xff]  }
 0x8b0   :  { %4759 = vtanh.f32 %v1289_v14 }
 0x8b1   :  { %4761 = vpow2.f32 %v4367_v9 }
 0x8bd   :  { %v4760_v52 = vpop.eup %4759 }
 0x8be   :  { %1292 = vrot.lane.b32.xlu1 %v4760_v52, %s4978_s4  ;;  %v4762_v24 = vpop.eup %4761 }
 0x8bf   :  { %v1273_v49 = vadd.f32 1.0, %v4762_v24 }
 0x8c1   :  { %4763 = vrcp.f32 %v1273_v49 }
 0x8ce   :  { %v4764_v1 = vpop.eup %4763 }
 0x930   :  { %v1293_v42 = vpop.permute.xlu1 %1292 }
 0x931   :  { %v1295_v6 = vmul.f32 %v4764_v1, %v1293_v42 }
 0x933   :  { %v1303_v4 = vrot.slane %v1295_v6, %v5772_v62  ;;  %1341 = vrot.lane.b32.xlu1 %v1295_v6, %s4978_s4 }
 0x935   :  { %v1304_v55 = vcombine.high %v1303_v4, %v1303_v4  ;;  %v5934_v20 = vrot.slane %v1303_v4, %v5772_v62 }
 0x937   :  { %v5937_v11 = vrot.slane %v1304_v55, %v5772_v62  ;;  %1321 = vst.msk [vmem:[#allocation3 + $0x4] sm:$0x1] %vm954_vm9, %v5934_v20 }
 0x939   :  { %1322 = vst.msk [vmem:[#allocation3 + $0x1c] sm:$0x1] %vm954_vm9, %v5937_v11 }
 0x9a5   :  { %v1342_v0 = vpop.permute.xlu1 %1341 }
 0x9a6   :  { %v1344_v41 = vsel %vm979_vm10, %v1295_v6, %v1342_v0 }
 0x9a7   :  { %v1345_v50 = vmul.f32 %v1344_v41, %v5789_v43 }
 0x9a9   :  { %v1346_v47 = vpack.c.bf16 %v1345_v50, %v1345_v50 }
 0x9ab   :  { %1438 = vmatmul.mubr.bf16.vlgmr.msra.gmra.mxu0 %v1346_v47 }
 0x9ac   :  { %1770 = vmatpush1.bf16.msra.mxu0 %v5841_v22  ;;  %1801 = vmatprep.mubr.bf16.mxu0 %v6840_v17 }
 0x9ad   :  { %1771 = vmatprep.subr.bf16.mxu0 %v5848_v25 }
 0x9b0   :  { %1772 = vmatpush1.bf16.msra.mxu0 %v5854_v27 }
 0x9b1   :  { %1773 = vmatprep.subr.bf16.mxu0 %v5860_v30 }
 0x9b4   :  { %1774 = vmatpush1.bf16.msra.mxu0 %v5866_v32 }
 0x9b5   :  { %1775 = vmatprep.subr.bf16.mxu0 %v5872_v33 }
 0x9b8   :  { %1776 = vmatpush1.bf16.msra.mxu0 %v5878_v34 }
 0x9b9   :  { %1777 = vmatprep.subr.bf16.mxu0 %v5884_v35 }
 0x9bc   :  { %1778 = vmatpush1.bf16.msra.mxu0 %v5890_v36 }
 0x9bd   :  { %1779 = vmatprep.subr.bf16.mxu0 %v5896_v37 }
 0x9c0   :  { %1780 = vmatpush1.bf16.msra.mxu0 %v5902_v38 }
 0x9c1   :  { %1781 = vmatprep.subr.bf16.mxu0 %v5908_v39 }
 0x9c4   :  { %1782 = vmatpush1.bf16.msra.mxu0 %v5914_v40 }
 0x9c5   :  { %1783 = vmatprep.subr.bf16.mxu0 %v5920_v16 }
 0x9c8   :  { %1784 = vmatpush1.bf16.msra.mxu0 %v5963_v48 }
 0x9c9   :  { %2133 = vmatprep.subr.bf16.mxu0 %v5812_v19 }
 0xa6b   :  { %v1439_v61 = vpop.f32.mrf.mxu0 }
 0xa6c   :  { %v1446_v52 = vadd.f32 %v1439_v61, %v5513_v7 }
 0xa6d   :  { %v1441_v9 = vpop.f32.mrf.mxu0 }
 0xa6e   :  { %v1447_v24 = vadd.f32 %v1441_v9, %v5526_v31  ;;  %v4368_v6 = vmul.f32 -1.442695, %v1446_v52 }
 0xa6f   :  { %v1443_v49 = vpop.f32.mrf.mxu0 }
 0xa70   :  { %4765 = vtanh.f32 %v1447_v24  ;;  %v4369_v9 = vmul.f32 -1.442695, %v1447_v24 }
 0xa71   :  { %v1444_v1 = vpop.f32.mrf.mxu0  ;;  %4767 = vpow2.f32 %v4368_v6 }
 0xa7d   :  { %v4766_v42 = vpop.eup %4765 }
 0xa7e   :  { %1463 = vrot.lane.b32.xlu1 %v4766_v42, %s4978_s4  ;;  %v4768_v4 = vpop.eup %4767 }
 0xa7f   :  { %v1454_v55 = vadd.f32 1.0, %v4768_v4 }
 0xa81   :  { %4769 = vrcp.f32 %v1454_v55 }
 0xa8e   :  { %v4770_v0 = vpop.eup %4769 }
 0xa8f   :  { %v1461_v7 = vmul.f32 %v4770_v0, %v1289_v14 }
 0xaf0   :  { %v1464_v41 = vpop.permute.xlu1 %1463 }
 0xaf1   :  { %v1466_v50 = vmul.f32 %v4770_v0, %v1464_v41 }
 0xaf3   :  { %1468 = vrot.lane.b32.xlu1 %v1466_v50, %s4978_s4 }
 0xb65   :  { %v1469_v47 = vpop.permute.xlu1 %1468 }
 0xb66   :  { %v1471_v61 = vadd.f32 %v1469_v47, %v1461_v7 }
 0xb68   :  { %4771 = vtanh.f32 %v1471_v61 }
 0xb69   :  { %4773 = vpow2.f32 %v4369_v9 }
 0xb75   :  { %v4772_v31 = vpop.eup %4771 }
 0xb76   :  { %1474 = vrot.lane.b32.xlu1 %v4772_v31, %s4978_s4  ;;  %v4774_v49 = vpop.eup %4773 }
 0xb77   :  { %v1455_v52 = vadd.f32 1.0, %v4774_v49 }
 0xb79   :  { %4775 = vrcp.f32 %v1455_v52 }
 0xb86   :  { %v4776_v1 = vpop.eup %4775 }
 0xbe8   :  { %v1475_v42 = vpop.permute.xlu1 %1474 }
 0xbe9   :  { %v1477_v6 = vmul.f32 %v4776_v1, %v1475_v42 }
 0xbeb   :  { %v1485_v4 = vrot.slane %v1477_v6, %v5772_v62  ;;  %1523 = vrot.lane.b32.xlu1 %v1477_v6, %s4978_s4 }
 0xbed   :  { %v1486_v55 = vcombine.high %v1485_v4, %v1485_v4  ;;  %v5975_v14 = vrot.slane %v1485_v4, %v5772_v62 }
 0xbef   :  { %1503 = vst.msk [vmem:[#allocation3 + $0x5] sm:$0x1] %vm954_vm9, %v5975_v14  ;;  %v5980_v24 = vrot.slane %v1486_v55, %v5772_v62 }
 0xbf1   :  { %1504 = vst.msk [vmem:[#allocation3 + $0x1d] sm:$0x1] %vm954_vm9, %v5980_v24 }
 0xc5d   :  { %v1524_v0 = vpop.permute.xlu1 %1523 }
 0xc5e   :  { %v1526_v41 = vsel %vm979_vm10, %v1477_v6, %v1524_v0 }
 0xc5f   :  { %v1527_v50 = vmul.f32 %v1526_v41, %v5789_v43 }
 0xc61   :  { %v1528_v7 = vpack.c.bf16 %v1527_v50, %v1527_v50 }
 0xc63   :  { %1620 = vmatmul.mubr.bf16.vlgmr.msra.gmra.mxu1 %v1528_v7 }
 0xc64   :  { %1952 = vmatpush1.bf16.msra.mxu1 %v5841_v22  ;;  %1983 = vmatprep.mubr.bf16.mxu1 %v6840_v17 }
 0xc65   :  { %1953 = vmatprep.subr.bf16.mxu1 %v5848_v25 }
 0xc68   :  { %1954 = vmatpush1.bf16.msra.mxu1 %v5854_v27 }
 0xc69   :  { %1955 = vmatprep.subr.bf16.mxu1 %v5860_v30 }
 0xc6c   :  { %1956 = vmatpush1.bf16.msra.mxu1 %v5866_v32 }
 0xc6d   :  { %1957 = vmatprep.subr.bf16.mxu1 %v5872_v33 }
 0xc70   :  { %1958 = vmatpush1.bf16.msra.mxu1 %v5878_v34 }
 0xc71   :  { %1959 = vmatprep.subr.bf16.mxu1 %v5884_v35 }
 0xc74   :  { %1960 = vmatpush1.bf16.msra.mxu1 %v5890_v36 }
 0xc75   :  { %1961 = vmatprep.subr.bf16.mxu1 %v5896_v37 }
 0xc78   :  { %1962 = vmatpush1.bf16.msra.mxu1 %v5902_v38 }
 0xc79   :  { %1963 = vmatprep.subr.bf16.mxu1 %v5908_v39 }
 0xc7c   :  { %1964 = vmatpush1.bf16.msra.mxu1 %v5914_v40 }
 0xc7d   :  { %1965 = vmatprep.subr.bf16.mxu1 %v5920_v16 }
 0xc80   :  { %1966 = vmatpush1.bf16.msra.mxu1 %v5963_v48 }
 0xc81   :  { %2315 = vmatprep.subr.bf16.mxu1 %v5812_v19 }
 0xd23   :  { %v1621_v47 = vpop.f32.mrf.mxu1 }
 0xd24   :  { %v1628_v31 = vadd.f32 %v1621_v47, %v5549_v2 }
 0xd25   :  { %v1623_v9 = vpop.f32.mrf.mxu1 }
 0xd26   :  { %v1629_v49 = vadd.f32 %v1623_v9, %v5563_v21  ;;  %v4370_v6 = vmul.f32 -1.442695, %v1628_v31 }
 0xd27   :  { %v1625_v52 = vpop.f32.mrf.mxu1 }
 0xd28   :  { %4777 = vtanh.f32 %v1629_v49  ;;  %v4371_v9 = vmul.f32 -1.442695, %v1629_v49 }
 0xd29   :  { %v1626_v1 = vpop.f32.mrf.mxu1  ;;  %4779 = vpow2.f32 %v4370_v6 }
 0xd35   :  { %v4778_v42 = vpop.eup %4777 }
 0xd36   :  { %1645 = vrot.lane.b32.xlu0 %v4778_v42, %s4978_s4  ;;  %v4780_v4 = vpop.eup %4779 }
 0xd37   :  { %v1636_v55 = vadd.f32 1.0, %v4780_v4 }
 0xd39   :  { %4781 = vrcp.f32 %v1636_v55 }
 0xd46   :  { %v4782_v0 = vpop.eup %4781 }
 0xd47   :  { %v1643_v2 = vmul.f32 %v4782_v0, %v1471_v61 }
 0xda8   :  { %v1646_v41 = vpop.permute.xlu0 %1645 }
 0xda9   :  { %v1648_v50 = vmul.f32 %v4782_v0, %v1646_v41 }
 0xdab   :  { %1650 = vrot.lane.b32.xlu1 %v1648_v50, %s4978_s4 }
 0xe1d   :  { %v1651_v7 = vpop.permute.xlu1 %1650 }
 0xe1e   :  { %v1653_v47 = vadd.f32 %v1651_v7, %v1643_v2 }
 0xe20   :  { %4783 = vtanh.f32 %v1653_v47 }
 0xe21   :  { %4785 = vpow2.f32 %v4371_v9 }
 0xe2d   :  { %v4784_v21 = vpop.eup %4783 }
 0xe2e   :  { %1656 = vrot.lane.b32.xlu1 %v4784_v21, %s4978_s4  ;;  %v4786_v52 = vpop.eup %4785 }
 0xe2f   :  { %v1637_v31 = vadd.f32 1.0, %v4786_v52 }
 0xe31   :  { %4787 = vrcp.f32 %v1637_v31 }
 0xe3e   :  { %v4788_v1 = vpop.eup %4787 }
 0xea0   :  { %v1657_v42 = vpop.permute.xlu1 %1656 }
 0xea1   :  { %v1659_v6 = vmul.f32 %v4788_v1, %v1657_v42 }
 0xea3   :  { %v1667_v4 = vrot.slane %v1659_v6, %v5772_v62  ;;  %1705 = vrot.lane.b32.xlu1 %v1659_v6, %s4978_s4 }
 0xea5   :  { %v1668_v55 = vcombine.high %v1667_v4, %v1667_v4  ;;  %v6011_v61 = vrot.slane %v1667_v4, %v5772_v62 }
 0xea7   :  { %v6014_v0 = vrot.slane %v1668_v55, %v5772_v62  ;;  %1685 = vst.msk [vmem:[#allocation3 + $0x6] sm:$0x1] %vm954_vm9, %v6011_v61 }
 0xea9   :  { %1686 = vst.msk [vmem:[#allocation3 + $0x1e] sm:$0x1] %vm954_vm9, %v6014_v0 }
 0xf15   :  { %v1706_v49 = vpop.permute.xlu1 %1705 }
 0xf16   :  { %v1708_v41 = vsel %vm979_vm10, %v1659_v6, %v1706_v49 }
 0xf17   :  { %v1709_v50 = vmul.f32 %v1708_v41, %v5789_v43 }
 0xf19   :  { %v1710_v2 = vpack.c.bf16 %v1709_v50, %v1709_v50 }
 0xf1b   :  { %1802 = vmatmul.mubr.bf16.vlgmr.msra.gmra.mxu0 %v1710_v2 }
 0xf1c   :  { %2134 = vmatpush1.bf16.msra.mxu0 %v5841_v22  ;;  %2165 = vmatprep.mubr.bf16.mxu0 %v6840_v17 }
 0xf1d   :  { %2135 = vmatprep.subr.bf16.mxu0 %v5848_v25 }
 0xf20   :  { %2136 = vmatpush1.bf16.msra.mxu0 %v5854_v27 }
 0xf21   :  { %2137 = vmatprep.subr.bf16.mxu0 %v5860_v30 }
 0xf24   :  { %2138 = vmatpush1.bf16.msra.mxu0 %v5866_v32 }
 0xf25   :  { %2139 = vmatprep.subr.bf16.mxu0 %v5872_v33 }
 0xf28   :  { %2140 = vmatpush1.bf16.msra.mxu0 %v5878_v34 }
 0xf29   :  { %2141 = vmatprep.subr.bf16.mxu0 %v5884_v35 }
 0xf2c   :  { %2142 = vmatpush1.bf16.msra.mxu0 %v5890_v36 }
 0xf2d   :  { %2143 = vmatprep.subr.bf16.mxu0 %v5896_v37 }
 0xf30   :  { %2144 = vmatpush1.bf16.msra.mxu0 %v5902_v38 }
 0xf31   :  { %2145 = vmatprep.subr.bf16.mxu0 %v5908_v39 }
 0xf34   :  { %2146 = vmatpush1.bf16.msra.mxu0 %v5914_v40 }
 0xf35   :  { %2147 = vmatprep.subr.bf16.mxu0 %v5920_v16 }
 0xf38   :  { %2148 = vmatpush1.bf16.msra.mxu0 %v5963_v48 }
 0xf39   :  { %2497 = vmatprep.subr.bf16.mxu0 %v5812_v19 }
 0xfdb   :  { %v1803_v7 = vpop.f32.mrf.mxu0 }
 0xfdc   :  { %v1810_v21 = vadd.f32 %v1803_v7, %v5566_v60 }
 0xfdd   :  { %v1805_v9 = vpop.f32.mrf.mxu0 }
 0xfde   :  { %v1811_v52 = vadd.f32 %v1805_v9, %v5586_v8  ;;  %v4372_v6 = vmul.f32 -1.442695, %v1810_v21 }
 0xfdf   :  { %v1807_v31 = vpop.f32.mrf.mxu0 }
 0xfe0   :  { %4789 = vtanh.f32 %v1811_v52  ;;  %v4373_v9 = vmul.f32 -1.442695, %v1811_v52 }
 0xfe1   :  { %v1808_v1 = vpop.f32.mrf.mxu0  ;;  %4791 = vpow2.f32 %v4372_v6 }
 0xfed   :  { %v4790_v42 = vpop.eup %4789 }
 0xfee   :  { %1827 = vrot.lane.b32.xlu1 %v4790_v42, %s4978_s4  ;;  %v4792_v4 = vpop.eup %4791 }
 0xfef   :  { %v1818_v55 = vadd.f32 1.0, %v4792_v4 }
 0xff1   :  { %4793 = vrcp.f32 %v1818_v55 }
 0xffe   :  { %v4794_v49 = vpop.eup %4793 }
 0xfff   :  { %v1825_v60 = vmul.f32 %v4794_v49, %v1653_v47 }
0x1060   :  { %v1828_v41 = vpop.permute.xlu1 %1827 }
0x1061   :  { %v1830_v50 = vmul.f32 %v4794_v49, %v1828_v41 }
0x1063   :  { %1832 = vrot.lane.b32.xlu1 %v1830_v50, %s4978_s4 }
0x10d5   :  { %v1833_v2 = vpop.permute.xlu1 %1832 }
0x10d6   :  { %v1835_v7 = vadd.f32 %v1833_v2, %v1825_v60 }
0x10d8   :  { %4795 = vtanh.f32 %v1835_v7 }
0x10d9   :  { %4797 = vpow2.f32 %v4373_v9 }
0x10e5   :  { %v4796_v8 = vpop.eup %4795 }
0x10e6   :  { %1838 = vrot.lane.b32.xlu1 %v4796_v8, %s4978_s4  ;;  %v4798_v31 = vpop.eup %4797 }
0x10e7   :  { %v1819_v21 = vadd.f32 1.0, %v4798_v31 }
0x10e9   :  { %4799 = vrcp.f32 %v1819_v21 }
0x10f6   :  { %v4800_v1 = vpop.eup %4799 }
0x1158   :  { %v1839_v42 = vpop.permute.xlu1 %1838 }
0x1159   :  { %v1841_v6 = vmul.f32 %v4800_v1, %v1839_v42 }
0x115b   :  { %v1849_v4 = vrot.slane %v1841_v6, %v5772_v62  ;;  %1887 = vrot.lane.b32.xlu1 %v1841_v6, %s4978_s4 }
0x115d   :  { %v1850_v55 = vcombine.high %v1849_v4, %v1849_v4  ;;  %v6047_v47 = vrot.slane %v1849_v4, %v5772_v62 }
0x115f   :  { %1867 = vst.msk [vmem:[#allocation3 + $0x7] sm:$0x1] %vm954_vm9, %v6047_v47  ;;  %v6052_v52 = vrot.slane %v1850_v55, %v5772_v62 }
0x1161   :  { %1868 = vst.msk [vmem:[#allocation3 + $0x1f] sm:$0x1] %vm954_vm9, %v6052_v52 }
0x11cd   :  { %v1888_v49 = vpop.permute.xlu1 %1887 }
0x11ce   :  { %v1890_v41 = vsel %vm979_vm10, %v1841_v6, %v1888_v49 }
0x11cf   :  { %v1891_v50 = vmul.f32 %v1890_v41, %v5789_v43 }
0x11d1   :  { %v1892_v60 = vpack.c.bf16 %v1891_v50, %v1891_v50 }
0x11d3   :  { %1984 = vmatmul.mubr.bf16.vlgmr.msra.gmra.mxu1 %v1892_v60 }
0x11d4   :  { %2316 = vmatpush1.bf16.msra.mxu1 %v5841_v22  ;;  %2347 = vmatprep.mubr.bf16.mxu1 %v6840_v17 }
0x11d5   :  { %2317 = vmatprep.subr.bf16.mxu1 %v5848_v25 }
0x11d8   :  { %2318 = vmatpush1.bf16.msra.mxu1 %v5854_v27 }
0x11d9   :  { %2319 = vmatprep.subr.bf16.mxu1 %v5860_v30 }
0x11dc   :  { %2320 = vmatpush1.bf16.msra.mxu1 %v5866_v32 }
0x11dd   :  { %2321 = vmatprep.subr.bf16.mxu1 %v5872_v33 }
0x11e0   :  { %2322 = vmatpush1.bf16.msra.mxu1 %v5878_v34 }
0x11e1   :  { %2323 = vmatprep.subr.bf16.mxu1 %v5884_v35 }
0x11e4   :  { %2324 = vmatpush1.bf16.msra.mxu1 %v5890_v36 }
0x11e5   :  { %2325 = vmatprep.subr.bf16.mxu1 %v5896_v37 }
0x11e8   :  { %2326 = vmatpush1.bf16.msra.mxu1 %v5902_v38 }
0x11e9   :  { %2327 = vmatprep.subr.bf16.mxu1 %v5908_v39 }
0x11ec   :  { %2328 = vmatpush1.bf16.msra.mxu1 %v5914_v40 }
0x11ed   :  { %2329 = vmatprep.subr.bf16.mxu1 %v5920_v16 }
0x11f0   :  { %2330 = vmatpush1.bf16.msra.mxu1 %v5963_v48 }
0x11f1   :  { %2679 = vmatprep.subr.bf16.mxu1 %v5812_v19 }
0x1293   :  { %v1985_v2 = vpop.f32.mrf.mxu1 }
0x1294   :  { %v1992_v8 = vadd.f32 %v1985_v2, %v5597_v18 }
0x1295   :  { %v1987_v9 = vpop.f32.mrf.mxu1 }
0x1296   :  { %v1993_v31 = vadd.f32 %v1987_v9, %v5600_v58  ;;  %v4374_v6 = vmul.f32 -1.442695, %v1992_v8 }
0x1297   :  { %v1989_v21 = vpop.f32.mrf.mxu1 }
0x1298   :  { %4801 = vtanh.f32 %v1993_v31  ;;  %v4375_v9 = vmul.f32 -1.442695, %v1993_v31 }
0x1299   :  { %v1990_v1 = vpop.f32.mrf.mxu1  ;;  %4803 = vpow2.f32 %v4374_v6 }
0x12a5   :  { %v4802_v42 = vpop.eup %4801 }
0x12a6   :  { %2009 = vrot.lane.b32.xlu1 %v4802_v42, %s4978_s4  ;;  %v4804_v4 = vpop.eup %4803 }
0x12a7   :  { %v2000_v55 = vadd.f32 1.0, %v4804_v4 }
0x12a9   :  { %4805 = vrcp.f32 %v2000_v55 }
0x12b6   :  { %v4806_v49 = vpop.eup %4805 }
0x12b7   :  { %v2007_v18 = vmul.f32 %v4806_v49, %v1835_v7 }
0x1318   :  { %v2010_v41 = vpop.permute.xlu1 %2009 }
0x1319   :  { %v2012_v50 = vmul.f32 %v4806_v49, %v2010_v41 }
0x131b   :  { %2014 = vrot.lane.b32.xlu1 %v2012_v50, %s4978_s4 }
0x138d   :  { %v2015_v60 = vpop.permute.xlu1 %2014 }
0x138e   :  { %v2017_v2 = vadd.f32 %v2015_v60, %v2007_v18 }
0x1390   :  { %4807 = vtanh.f32 %v2017_v2 }
0x1391   :  { %4809 = vpow2.f32 %v4375_v9 }
0x139d   :  { %v4808_v58 = vpop.eup %4807 }
0x139e   :  { %2020 = vrot.lane.b32.xlu1 %v4808_v58, %s4978_s4  ;;  %v4810_v21 = vpop.eup %4809 }
0x139f   :  { %v2001_v8 = vadd.f32 1.0, %v4810_v21 }
0x13a1   :  { %4811 = vrcp.f32 %v2001_v8 }
0x13ae   :  { %v4812_v1 = vpop.eup %4811 }
0x1410   :  { %v2021_v42 = vpop.permute.xlu1 %2020 }
0x1411   :  { %v2023_v6 = vmul.f32 %v4812_v1, %v2021_v42 }
0x1413   :  { %v2031_v4 = vrot.slane %v2023_v6, %v5772_v62  ;;  %2069 = vrot.lane.b32.xlu1 %v2023_v6, %s4978_s4 }
0x1415   :  { %v2032_v55 = vcombine.high %v2031_v4, %v2031_v4  ;;  %v6083_v7 = vrot.slane %v2031_v4, %v5772_v62 }
0x1417   :  { %v6086_v49 = vrot.slane %v2032_v55, %v5772_v62  ;;  %2049 = vst.msk [vmem:[#allocation3 + $0x8] sm:$0x1] %vm954_vm9, %v6083_v7 }
0x1419   :  { %2050 = vst.msk [vmem:[#allocation3 + $0x20] sm:$0x1] %vm954_vm9, %v6086_v49 }
0x1485   :  { %v2070_v31 = vpop.permute.xlu1 %2069 }
0x1486   :  { %v2072_v41 = vsel %vm979_vm10, %v2023_v6, %v2070_v31 }
0x1487   :  { %v2073_v50 = vmul.f32 %v2072_v41, %v5789_v43 }
0x1489   :  { %v2074_v18 = vpack.c.bf16 %v2073_v50, %v2073_v50 }
0x148b   :  { %2166 = vmatmul.mubr.bf16.vlgmr.msra.gmra.mxu0 %v2074_v18 }
0x148c   :  { %2498 = vmatpush1.bf16.msra.mxu0 %v5841_v22  ;;  %2529 = vmatprep.mubr.bf16.mxu0 %v6840_v17 }
0x148d   :  { %2499 = vmatprep.subr.bf16.mxu0 %v5848_v25 }
0x1490   :  { %2500 = vmatpush1.bf16.msra.mxu0 %v5854_v27 }
0x1491   :  { %2501 = vmatprep.subr.bf16.mxu0 %v5860_v30 }
0x1494   :  { %2502 = vmatpush1.bf16.msra.mxu0 %v5866_v32 }
0x1495   :  { %2503 = vmatprep.subr.bf16.mxu0 %v5872_v33 }
0x1498   :  { %2504 = vmatpush1.bf16.msra.mxu0 %v5878_v34 }
0x1499   :  { %2505 = vmatprep.subr.bf16.mxu0 %v5884_v35 }
0x149c   :  { %2506 = vmatpush1.bf16.msra.mxu0 %v5890_v36 }
0x149d   :  { %2507 = vmatprep.subr.bf16.mxu0 %v5896_v37 }
0x14a0   :  { %2508 = vmatpush1.bf16.msra.mxu0 %v5902_v38 }
0x14a1   :  { %2509 = vmatprep.subr.bf16.mxu0 %v5908_v39 }
0x14a4   :  { %2510 = vmatpush1.bf16.msra.mxu0 %v5914_v40 }
0x14a5   :  { %2511 = vmatprep.subr.bf16.mxu0 %v5920_v16 }
0x14a8   :  { %2512 = vmatpush1.bf16.msra.mxu0 %v5963_v48 }
0x14a9   :  { %2861 = vmatprep.subr.bf16.mxu0 %v5812_v19 }
0x154b   :  { %v2167_v60 = vpop.f32.mrf.mxu0 }
0x154c   :  { %v2174_v58 = vadd.f32 %v2167_v60, %v5616_v57 }
0x154d   :  { %v2169_v9 = vpop.f32.mrf.mxu0 }
0x154e   :  { %v2175_v21 = vadd.f32 %v2169_v9, %v5622_v28  ;;  %v4376_v6 = vmul.f32 -1.442695, %v2174_v58 }
0x154f   :  { %v2171_v8 = vpop.f32.mrf.mxu0 }
0x1550   :  { %4813 = vtanh.f32 %v2175_v21  ;;  %v4377_v9 = vmul.f32 -1.442695, %v2175_v21 }
0x1551   :  { %v2172_v1 = vpop.f32.mrf.mxu0  ;;  %4815 = vpow2.f32 %v4376_v6 }
0x155d   :  { %v4814_v42 = vpop.eup %4813 }
0x155e   :  { %2191 = vrot.lane.b32.xlu0 %v4814_v42, %s4978_s4  ;;  %v4816_v4 = vpop.eup %4815 }
0x155f   :  { %v2182_v55 = vadd.f32 1.0, %v4816_v4 }
0x1561   :  { %4817 = vrcp.f32 %v2182_v55 }
0x156e   :  { %v4818_v31 = vpop.eup %4817 }
0x156f   :  { %v2189_v57 = vmul.f32 %v4818_v31, %v2017_v2 }
0x15d0   :  { %v2192_v41 = vpop.permute.xlu0 %2191 }
0x15d1   :  { %v2194_v50 = vmul.f32 %v4818_v31, %v2192_v41 }
0x15d3   :  { %2196 = vrot.lane.b32.xlu1 %v2194_v50, %s4978_s4 }
0x1645   :  { %v2197_v18 = vpop.permute.xlu1 %2196 }
0x1646   :  { %v2199_v60 = vadd.f32 %v2197_v18, %v2189_v57 }
0x1648   :  { %4819 = vtanh.f32 %v2199_v60 }
0x1649   :  { %4821 = vpow2.f32 %v4377_v9 }
0x1655   :  { %v4820_v28 = vpop.eup %4819 }
0x1656   :  { %2202 = vrot.lane.b32.xlu0 %v4820_v28, %s4978_s4  ;;  %v4822_v8 = vpop.eup %4821 }
0x1657   :  { %v2183_v58 = vadd.f32 1.0, %v4822_v8 }
0x1659   :  { %4823 = vrcp.f32 %v2183_v58 }
0x1666   :  { %v4824_v1 = vpop.eup %4823 }
0x16c8   :  { %v2203_v42 = vpop.permute.xlu0 %2202 }
0x16c9   :  { %v2205_v6 = vmul.f32 %v4824_v1, %v2203_v42 }
0x16cb   :  { %v2213_v4 = vrot.slane %v2205_v6, %v5772_v62  ;;  %2251 = vrot.lane.b32.xlu1 %v2205_v6, %s4978_s4 }
0x16cd   :  { %v2214_v55 = vcombine.high %v2213_v4, %v2213_v4  ;;  %v6119_v2 = vrot.slane %v2213_v4, %v5772_v62 }
0x16cf   :  { %2231 = vst.msk [vmem:[#allocation3 + $0x9] sm:$0x1] %vm954_vm9, %v6119_v2  ;;  %v6124_v21 = vrot.slane %v2214_v55, %v5772_v62 }
0x16d1   :  { %2232 = vst.msk [vmem:[#allocation3 + $0x21] sm:$0x1] %vm954_vm9, %v6124_v21 }
0x173d   :  { %v2252_v31 = vpop.permute.xlu1 %2251 }
0x173e   :  { %v2254_v41 = vsel %vm979_vm10, %v2205_v6, %v2252_v31 }
0x173f   :  { %v2255_v50 = vmul.f32 %v2254_v41, %v5789_v43 }
0x1741   :  { %v2256_v57 = vpack.c.bf16 %v2255_v50, %v2255_v50 }
0x1743   :  { %2348 = vmatmul.mubr.bf16.vlgmr.msra.gmra.mxu1 %v2256_v57 }
0x1744   :  { %2680 = vmatpush1.bf16.msra.mxu1 %v5841_v22  ;;  %2711 = vmatprep.mubr.bf16.mxu1 %v6840_v17 }
0x1745   :  { %2681 = vmatprep.subr.bf16.mxu1 %v5848_v25 }
0x1748   :  { %2682 = vmatpush1.bf16.msra.mxu1 %v5854_v27 }
0x1749   :  { %2683 = vmatprep.subr.bf16.mxu1 %v5860_v30 }
0x174c   :  { %2684 = vmatpush1.bf16.msra.mxu1 %v5866_v32 }
0x174d   :  { %2685 = vmatprep.subr.bf16.mxu1 %v5872_v33 }
0x1750   :  { %2686 = vmatpush1.bf16.msra.mxu1 %v5878_v34 }
0x1751   :  { %2687 = vmatprep.subr.bf16.mxu1 %v5884_v35 }
0x1754   :  { %2688 = vmatpush1.bf16.msra.mxu1 %v5890_v36 }
0x1755   :  { %2689 = vmatprep.subr.bf16.mxu1 %v5896_v37 }
0x1758   :  { %2690 = vmatpush1.bf16.msra.mxu1 %v5902_v38 }
0x1759   :  { %2691 = vmatprep.subr.bf16.mxu1 %v5908_v39 }
0x175c   :  { %2692 = vmatpush1.bf16.msra.mxu1 %v5914_v40 }
0x175d   :  { %2693 = vmatprep.subr.bf16.mxu1 %v5920_v16 }
0x1760   :  { %2694 = vmatpush1.bf16.msra.mxu1 %v5963_v48 }
0x1761   :  { %3043 = vmatprep.subr.bf16.mxu1 %v5812_v19 }
0x1803   :  { %v2349_v18 = vpop.f32.mrf.mxu1 }
0x1804   :  { %v2356_v28 = vadd.f32 %v2349_v18, %v5628_v51 }
0x1805   :  { %v2351_v9 = vpop.f32.mrf.mxu1 }
0x1806   :  { %v2357_v8 = vadd.f32 %v2351_v9, %v5642_v5  ;;  %v4378_v6 = vmul.f32 -1.442695, %v2356_v28 }
0x1807   :  { %v2353_v58 = vpop.f32.mrf.mxu1 }
0x1808   :  { %4825 = vtanh.f32 %v2357_v8  ;;  %v4379_v9 = vmul.f32 -1.442695, %v2357_v8 }
0x1809   :  { %v2354_v1 = vpop.f32.mrf.mxu1  ;;  %4827 = vpow2.f32 %v4378_v6 }
0x1815   :  { %v4826_v42 = vpop.eup %4825 }
0x1816   :  { %2373 = vrot.lane.b32.xlu0 %v4826_v42, %s4978_s4  ;;  %v4828_v4 = vpop.eup %4827 }
0x1817   :  { %v2364_v55 = vadd.f32 1.0, %v4828_v4 }
0x1819   :  { %4829 = vrcp.f32 %v2364_v55 }
0x1826   :  { %v4830_v31 = vpop.eup %4829 }
0x1827   :  { %v2371_v51 = vmul.f32 %v4830_v31, %v2199_v60 }
0x1888   :  { %v2374_v41 = vpop.permute.xlu0 %2373 }
0x1889   :  { %v2376_v50 = vmul.f32 %v4830_v31, %v2374_v41 }
0x188b   :  { %2378 = vrot.lane.b32.xlu1 %v2376_v50, %s4978_s4 }
0x18fd   :  { %v2379_v57 = vpop.permute.xlu1 %2378 }
0x18fe   :  { %v2381_v18 = vadd.f32 %v2379_v57, %v2371_v51 }
0x1900   :  { %4831 = vtanh.f32 %v2381_v18 }
0x1901   :  { %4833 = vpow2.f32 %v4379_v9 }
0x190d   :  { %v4832_v5 = vpop.eup %4831 }
0x190e   :  { %2384 = vrot.lane.b32.xlu0 %v4832_v5, %s4978_s4  ;;  %v4834_v58 = vpop.eup %4833 }
0x190f   :  { %v2365_v28 = vadd.f32 1.0, %v4834_v58 }
0x1911   :  { %4835 = vrcp.f32 %v2365_v28 }
0x191e   :  { %v4836_v1 = vpop.eup %4835 }
0x1980   :  { %v2385_v42 = vpop.permute.xlu0 %2384 }
0x1981   :  { %v6152_v6 = vmul.f32 %v4836_v1, %v2385_v42 }
0x1983   :  { %2433 = vrot.lane.b32.xlu1 %v6152_v6, %s4978_s4 }
0x19f5   :  { %v2434_v4 = vpop.permute.xlu1 %2433 }
0x19f6   :  { %v2436_v60 = vsel %vm979_vm10, %v6152_v6, %v2434_v4 }
0x19f7   :  { %v2437_v55 = vmul.f32 %v2436_v60, %v5789_v43 }
0x19f9   :  { %v2438_v31 = vpack.c.bf16 %v2437_v55, %v2437_v55 }
0x19fb   :  { %2530 = vmatmul.mubr.bf16.vlgmr.msra.gmra.mxu0 %v2438_v31 }
0x19fc   :  { %2862 = vmatpush1.bf16.msra.mxu0 %v5841_v22  ;;  %2893 = vmatprep.mubr.bf16.mxu0 %v6840_v17 }
0x19fd   :  { %2863 = vmatprep.subr.bf16.mxu0 %v5848_v25 }
0x1a00   :  { %2864 = vmatpush1.bf16.msra.mxu0 %v5854_v27 }
0x1a01   :  { %2865 = vmatprep.subr.bf16.mxu0 %v5860_v30 }
0x1a04   :  { %2866 = vmatpush1.bf16.msra.mxu0 %v5866_v32 }
0x1a05   :  { %2867 = vmatprep.subr.bf16.mxu0 %v5872_v33 }
0x1a08   :  { %2868 = vmatpush1.bf16.msra.mxu0 %v5878_v34 }
0x1a09   :  { %2869 = vmatprep.subr.bf16.mxu0 %v5884_v35 }
0x1a0c   :  { %2870 = vmatpush1.bf16.msra.mxu0 %v5890_v36 }
0x1a0d   :  { %2871 = vmatprep.subr.bf16.mxu0 %v5896_v37 }
0x1a10   :  { %2872 = vmatpush1.bf16.msra.mxu0 %v5902_v38 }
0x1a11   :  { %2873 = vmatprep.subr.bf16.mxu0 %v5908_v39 }
0x1a14   :  { %2874 = vmatpush1.bf16.msra.mxu0 %v5914_v40 }
0x1a15   :  { %2875 = vmatprep.subr.bf16.mxu0 %v5920_v16 }
0x1a18   :  { %2876 = vmatpush1.bf16.msra.mxu0 %v5963_v48 }
0x1a19   :  { %3225 = vmatprep.subr.bf16.mxu0 %v5812_v19 }
0x1abb   :  { %v2531_v43 = vpop.f32.mrf.mxu0 }
0x1abc   :  { %v2538_v8 = vadd.f32 %v2531_v43, %v5648_v54 }
0x1abd   :  { %v2533_v41 = vpop.f32.mrf.mxu0 }
0x1abe   :  { %v2539_v50 = vadd.f32 %v2533_v41, %v5658_v26  ;;  %v4380_v9 = vmul.f32 -1.442695, %v2538_v8 }
0x1abf   :  { %v2535_v51 = vpop.f32.mrf.mxu0 }
0x1ac0   :  { %4837 = vtanh.f32 %v2539_v50  ;;  %v4381_v55 = vmul.f32 -1.442695, %v2539_v50 }
0x1ac1   :  { %v2536_v57 = vpop.f32.mrf.mxu0  ;;  %4839 = vpow2.f32 %v4380_v9 }
0x1acd   :  { %v4838_v5 = vpop.eup %4837 }
0x1ace   :  { %2555 = vrot.lane.b32.xlu0 %v4838_v5, %s4978_s4  ;;  %v4840_v58 = vpop.eup %4839  ;;  %v6190_v5 = vld [vmem:[%s6827_s6] sm:$0xf] }
0x1acf   :  { %v2546_v28 = vadd.f32 1.0, %v4840_v58 }
0x1ad1   :  { %4841 = vrcp.f32 %v2546_v28 }
0x1ade   :  { %v4842_v1 = vpop.eup %4841 }
0x1adf   :  { %v2553_v54 = vmul.f32 %v4842_v1, %v2381_v18 }
0x1b40   :  { %v2556_v42 = vpop.permute.xlu0 %2555 }
0x1b41   :  { %v2558_v19 = vmul.f32 %v4842_v1, %v2556_v42 }
0x1b43   :  { %2560 = vrot.lane.b32.xlu1 %v2558_v19, %s4978_s4 }
0x1bb5   :  { %v2561_v4 = vpop.permute.xlu1 %2560 }
0x1bb6   :  { %v2563_v60 = vadd.f32 %v2561_v4, %v2553_v54 }
0x1bb8   :  { %4843 = vtanh.f32 %v2563_v60 }
0x1bb9   :  { %4845 = vpow2.f32 %v4381_v55 }
0x1bc5   :  { %v4844_v26 = vpop.eup %4843 }
0x1bc6   :  { %2566 = vrot.lane.b32.xlu0 %v4844_v26, %s4978_s4  ;;  %v4846_v31 = vpop.eup %4845 }
0x1bc7   :  { %v2547_v43 = vadd.f32 1.0, %v4846_v31 }
0x1bc9   :  { %4847 = vrcp.f32 %v2547_v43 }
0x1bd6   :  { %v4848_v8 = vpop.eup %4847 }
0x1c38   :  { %v2567_v41 = vpop.permute.xlu0 %2566 }
0x1c39   :  { %v6181_v51 = vmul.f32 %v4848_v8, %v2567_v41  ;;  %v6233_v8 = vld [vmem:[%s6826_s5 + $0x70] ss:$8 sps:$4 sm:$0xff]   ;;  %v6240_v41 = vld [vmem:[%s6826_s5 + $0x64] ss:$8 sps:$4 sm:$0xff]  }
0x1c3b   :  { %2615 = vrot.lane.b32.xlu1 %v6181_v51, %s4978_s4 }
0x1cad   :  { %v2616_v57 = vpop.permute.xlu1 %2615 }
0x1cae   :  { %v2618_v18 = vsel %vm979_vm10, %v6181_v51, %v2616_v57  ;;  %v6246_v57 = vld [vmem:[%s6826_s5 + $0x60] ss:$8 sps:$4 sm:$0xff]  }
0x1caf   :  { %v2619_v50 = vmul.f32 %v6190_v5, %v2618_v18  ;;  %v6252_v18 = vld [vmem:[%s6826_s5 + $0x54] ss:$8 sps:$4 sm:$0xff]  }
0x1cb1   :  { %v2620_v9 = vpack.c.bf16 %v2619_v50, %v2619_v50  ;;  %v6258_v50 = vld [vmem:[%s6826_s5 + $0x50] ss:$8 sps:$4 sm:$0xff]  }
0x1cb3   :  { %2712 = vmatmul.mubr.bf16.vlgmr.msra.gmra.mxu1 %v2620_v9  ;;  %v6264_v9 = vld [vmem:[%s6826_s5 + $0x44] ss:$8 sps:$4 sm:$0xff]  }
0x1cb4   :  { %3044 = vmatpush1.bf16.msra.mxu1 %v5841_v22  ;;  %3075 = vmatprep.mubr.bf16.mxu1 %v6840_v17  ;;  %v6212_v22 = vld [vmem:[%s6826_s5 + $0x74] ss:$8 sps:$4 sm:$0xff]  }
0x1cb5   :  { %3045 = vmatprep.subr.bf16.mxu1 %v5848_v25 }
0x1cb8   :  { %3046 = vmatpush1.bf16.msra.mxu1 %v5854_v27 }
0x1cb9   :  { %3047 = vmatprep.subr.bf16.mxu1 %v5860_v30 }
0x1cbc   :  { %3048 = vmatpush1.bf16.msra.mxu1 %v5866_v32 }
0x1cbd   :  { %3049 = vmatprep.subr.bf16.mxu1 %v5872_v33 }
0x1cc0   :  { %3050 = vmatpush1.bf16.msra.mxu1 %v5878_v34 }
0x1cc1   :  { %3051 = vmatprep.subr.bf16.mxu1 %v5884_v35 }
0x1cc4   :  { %3052 = vmatpush1.bf16.msra.mxu1 %v5890_v36 }
0x1cc5   :  { %3053 = vmatprep.subr.bf16.mxu1 %v5896_v37 }
0x1cc8   :  { %3054 = vmatpush1.bf16.msra.mxu1 %v5902_v38 }
0x1cc9   :  { %3055 = vmatprep.subr.bf16.mxu1 %v5908_v39 }
0x1ccc   :  { %3056 = vmatpush1.bf16.msra.mxu1 %v5914_v40 }
0x1ccd   :  { %3057 = vmatprep.subr.bf16.mxu1 %v5920_v16 }
0x1cd0   :  { %3058 = vmatpush1.bf16.msra.mxu1 %v5963_v48 }
0x1cd1   :  { %3407 = vmatprep.subr.bf16.mxu1 %v6212_v22 }
0x1d73   :  { %v2713_v25 = vpop.f32.mrf.mxu1 }
0x1d74   :  { %v2720_v27 = vadd.f32 %v2713_v25, %v5667_v10  ;;  %v6270_v25 = vld [vmem:[%s6826_s5 + $0x40] ss:$8 sps:$4 sm:$0xff]  }
0x1d75   :  { %v2715_v30 = vpop.f32.mrf.mxu1 }
0x1d76   :  { %v2721_v32 = vadd.f32 %v2715_v30, %v5676_v56  ;;  %v4382_v36 = vmul.f32 -1.442695, %v2720_v27  ;;  %v6276_v27 = vld [vmem:[%s6826_s5 + $0x34] ss:$8 sps:$4 sm:$0xff]   ;;  %v6282_v30 = vld [vmem:[%s6826_s5 + $0x30] ss:$8 sps:$4 sm:$0xff]  }
0x1d77   :  { %v2717_v33 = vpop.f32.mrf.mxu1 }
0x1d78   :  { %4849 = vtanh.f32 %v2721_v32  ;;  %v4383_v1 = vmul.f32 -1.442695, %v2721_v32  ;;  %v6288_v32 = vld [vmem:[%s6826_s5 + $0x24] ss:$8 sps:$4 sm:$0xff]   ;;  %v6294_v33 = vld [vmem:[%s6826_s5 + $0x20] ss:$8 sps:$4 sm:$0xff]  }
0x1d79   :  { %v2718_v34 = vpop.f32.mrf.mxu1  ;;  %4851 = vpow2.f32 %v4382_v36  ;;  %v6312_v36 = vld [vmem:[%s6826_s5 + $0x4] ss:$8 sps:$4 sm:$0xff]  }
0x1d7a   :  { %v6300_v34 = vld [vmem:[%s6826_s5 + $0x14] ss:$8 sps:$4 sm:$0xff]  }
0x1d85   :  { %v4850_v35 = vpop.eup %4849 }
0x1d86   :  { %2737 = vrot.lane.b32.xlu0 %v4850_v35, %s4978_s4  ;;  %v4852_v37 = vpop.eup %4851  ;;  %v6306_v35 = vld [vmem:[%s6826_s5 + $0x10] ss:$8 sps:$4 sm:$0xff]  }
0x1d87   :  { %v2728_v38 = vadd.f32 1.0, %v4852_v37 }
0x1d89   :  { %4853 = vrcp.f32 %v2728_v38 }
0x1d96   :  { %v4854_v39 = vpop.eup %4853 }
0x1d97   :  { %v2735_v10 = vmul.f32 %v4854_v39, %v2563_v60 }
0x1df8   :  { %v2738_v40 = vpop.permute.xlu0 %2737 }
0x1df9   :  { %v2740_v16 = vmul.f32 %v4854_v39, %v2738_v40 }
0x1dfb   :  { %2742 = vrot.lane.b32.xlu1 %v2740_v16, %s4978_s4 }
0x1e6d   :  { %v2743_v58 = vpop.permute.xlu1 %2742 }
0x1e6e   :  { %v6219_v28 = vadd.f32 %v2743_v58, %v2735_v10 }
0x1e70   :  { %4855 = vtanh.f32 %v6219_v28 }
0x1e71   :  { %4857 = vpow2.f32 %v4383_v1 }
0x1e7d   :  { %v4856_v56 = vpop.eup %4855 }
0x1e7e   :  { %2748 = vrot.lane.b32.xlu0 %v4856_v56, %s4978_s4  ;;  %v4858_v42 = vpop.eup %4857 }
0x1e7f   :  { %v2729_v19 = vadd.f32 1.0, %v4858_v42 }
0x1e81   :  { %4859 = vrcp.f32 %v2729_v19 }
0x1e8e   :  { %v4860_v54 = vpop.eup %4859 }
0x1ef0   :  { %v2749_v4 = vpop.permute.xlu0 %2748 }
0x1ef1   :  { %v6223_v26 = vmul.f32 %v4860_v54, %v2749_v4 }
0x1ef3   :  { %2797 = vrot.lane.b32.xlu1 %v6223_v26, %s4978_s4 }
0x1f65   :  { %v2798_v60 = vpop.permute.xlu1 %2797 }
0x1f66   :  { %v2800_v55 = vsel %vm979_vm10, %v6223_v26, %v2798_v60 }
0x1f67   :  { %v2801_v31 = vmul.f32 %v6190_v5, %v2800_v55 }
0x1f69   :  { %v2802_v43 = vpack.c.bf16 %v2801_v31, %v2801_v31 }
0x1f6b   :  { %2894 = vmatmul.mubr.bf16.vlgmr.msra.gmra.mxu0 %v2802_v43 }
0x1f6c   :  { %3226 = vmatpush1.bf16.msra.mxu0 %v6233_v8  ;;  %3257 = vmatprep.mubr.bf16.mxu0 %v6840_v17 }
0x1f6d   :  { %3227 = vmatprep.subr.bf16.mxu0 %v6240_v41 }
0x1f70   :  { %3228 = vmatpush1.bf16.msra.mxu0 %v6246_v57 }
0x1f71   :  { %3229 = vmatprep.subr.bf16.mxu0 %v6252_v18 }
0x1f74   :  { %3230 = vmatpush1.bf16.msra.mxu0 %v6258_v50 }
0x1f75   :  { %3231 = vmatprep.subr.bf16.mxu0 %v6264_v9 }
0x1f78   :  { %3232 = vmatpush1.bf16.msra.mxu0 %v6270_v25 }
0x1f79   :  { %3233 = vmatprep.subr.bf16.mxu0 %v6276_v27 }
0x1f7c   :  { %3234 = vmatpush1.bf16.msra.mxu0 %v6282_v30 }
0x1f7d   :  { %3235 = vmatprep.subr.bf16.mxu0 %v6288_v32 }
0x1f80   :  { %3236 = vmatpush1.bf16.msra.mxu0 %v6294_v33 }
0x1f81   :  { %3237 = vmatprep.subr.bf16.mxu0 %v6300_v34 }
0x1f84   :  { %3238 = vmatpush1.bf16.msra.mxu0 %v6306_v35 }
0x1f85   :  { %3239 = vmatprep.subr.bf16.mxu0 %v6312_v36 }
0x1f88   :  { %3240 = vmatpush1.bf16.msra.mxu0 %v5963_v48 }
0x1f89   :  { %3589 = vmatprep.subr.bf16.mxu0 %v6212_v22 }
0x202b   :  { %v2895_v37 = vpop.f32.mrf.mxu0 }
0x202c   :  { %v2902_v38 = vadd.f32 %v2895_v37, %v5686_v59 }
0x202d   :  { %v2897_v39 = vpop.f32.mrf.mxu0 }
0x202e   :  { %v2903_v40 = vadd.f32 %v2897_v39, %v5696_v45  ;;  %v4384_v56 = vmul.f32 -1.442695, %v2902_v38 }
0x202f   :  { %v2899_v16 = vpop.f32.mrf.mxu0 }
0x2030   :  { %4861 = vtanh.f32 %v2903_v40  ;;  %v4385_v60 = vmul.f32 -1.442695, %v2903_v40  ;;  %v4953_v40 = vld [vmem:[%s6826_s5] ss:$8 sps:$4 sm:$0xff]  }
0x2031   :  { %v2900_v10 = vpop.f32.mrf.mxu0  ;;  %4863 = vpow2.f32 %v4384_v56  ;;  %v6841_v56 = vld [vmem:[#allocation7_spill] sm:$0xff] }
0x203d   :  { %v4862_v58 = vpop.eup %4861 }
0x203e   :  { %2919 = vrot.lane.b32.xlu0 %v4862_v58, %s4978_s4  ;;  %v4864_v1 = vpop.eup %4863 }
0x203f   :  { %v2910_v42 = vadd.f32 1.0, %v4864_v1 }
0x2041   :  { %4865 = vrcp.f32 %v2910_v42 }
0x204e   :  { %v4866_v48 = vpop.eup %4865 }
0x204f   :  { %v2917_v59 = vmul.f32 %v4866_v48, %v6219_v28 }
0x20b0   :  { %v2920_v19 = vpop.permute.xlu0 %2919 }
0x20b1   :  { %v2922_v22 = vmul.f32 %v4866_v48, %v2920_v19 }
0x20b3   :  { %2924 = vrot.lane.b32.xlu1 %v2922_v22, %s4978_s4 }
0x2125   :  { %v2925_v54 = vpop.permute.xlu1 %2924 }
0x2126   :  { %v2927_v45 = vadd.f32 %v2925_v54, %v2917_v59 }
0x2128   :  { %4867 = vtanh.f32 %v2927_v45 }
0x2129   :  { %4869 = vpow2.f32 %v4385_v60 }
0x2135   :  { %v4868_v4 = vpop.eup %4867 }
0x2136   :  { %2930 = vrot.lane.b32.xlu0 %v4868_v4, %s4978_s4  ;;  %v4870_v55 = vpop.eup %4869 }
0x2137   :  { %v2911_v31 = vadd.f32 1.0, %v4870_v55 }
0x2139   :  { %4871 = vrcp.f32 %v2911_v31 }
0x2146   :  { %v4872_v43 = vpop.eup %4871 }
0x21a8   :  { %v2931_v37 = vpop.permute.xlu0 %2930 }
0x21a9   :  { %v6323_v38 = vmul.f32 %v4872_v43, %v2931_v37 }
0x21ab   :  { %2979 = vrot.lane.b32.xlu1 %v6323_v38, %s4978_s4 }
0x221d   :  { %v2980_v39 = vpop.permute.xlu1 %2979 }
0x221e   :  { %v2982_v28 = vsel %vm979_vm10, %v6323_v38, %v2980_v39 }
0x221f   :  { %v2983_v16 = vmul.f32 %v6190_v5, %v2982_v28 }
0x2221   :  { %v2984_v10 = vpack.c.bf16 %v2983_v16, %v2983_v16 }
0x2223   :  { %3076 = vmatmul.mubr.bf16.vlgmr.msra.gmra.mxu1 %v2984_v10 }
0x2224   :  { %3408 = vmatpush1.bf16.msra.mxu1 %v6233_v8  ;;  %3439 = vmatprep.mubr.bf16.mxu1 %v6840_v17 }
0x2225   :  { %3409 = vmatprep.subr.bf16.mxu1 %v6240_v41 }
0x2228   :  { %3410 = vmatpush1.bf16.msra.mxu1 %v6246_v57 }
0x2229   :  { %3411 = vmatprep.subr.bf16.mxu1 %v6252_v18 }
0x222c   :  { %3412 = vmatpush1.bf16.msra.mxu1 %v6258_v50 }
0x222d   :  { %3413 = vmatprep.subr.bf16.mxu1 %v6264_v9 }
0x2230   :  { %3414 = vmatpush1.bf16.msra.mxu1 %v6270_v25 }
0x2231   :  { %3415 = vmatprep.subr.bf16.mxu1 %v6276_v27 }
0x2234   :  { %3416 = vmatpush1.bf16.msra.mxu1 %v6282_v30 }
0x2235   :  { %3417 = vmatprep.subr.bf16.mxu1 %v6288_v32 }
0x2238   :  { %3418 = vmatpush1.bf16.msra.mxu1 %v6294_v33 }
0x2239   :  { %3419 = vmatprep.subr.bf16.mxu1 %v6300_v34 }
0x223c   :  { %3420 = vmatpush1.bf16.msra.mxu1 %v6306_v35 }
0x223d   :  { %3421 = vmatprep.subr.bf16.mxu1 %v6312_v36 }
0x2240   :  { %3422 = vmatpush1.bf16.msra.mxu1 %v4953_v40 }
0x22e3   :  { %v3077_v58 = vpop.f32.mrf.mxu1 }
0x22e4   :  { %v3084_v1 = vadd.f32 %v3077_v58, %v6841_v56 }
0x22e5   :  { %v3079_v42 = vpop.f32.mrf.mxu1 }
0x22e6   :  { %v3085_v48 = vadd.f32 %v3079_v42, %v5712_v29  ;;  %v4386_v54 = vmul.f32 -1.442695, %v3084_v1 }
0x22e7   :  { %v3081_v19 = vpop.f32.mrf.mxu1 }
0x22e8   :  { %4873 = vtanh.f32 %v3085_v48  ;;  %v4387_v16 = vmul.f32 -1.442695, %v3085_v48 }
0x22e9   :  { %v3082_v22 = vpop.f32.mrf.mxu1  ;;  %4875 = vpow2.f32 %v4386_v54 }
0x22f5   :  { %v4874_v59 = vpop.eup %4873 }
0x22f6   :  { %3101 = vrot.lane.b32.xlu0 %v4874_v59, %s4978_s4  ;;  %v4876_v4 = vpop.eup %4875 }
0x22f7   :  { %v3092_v60 = vadd.f32 1.0, %v4876_v4 }
0x22f9   :  { %4877 = vrcp.f32 %v3092_v60 }
0x2306   :  { %v4878_v55 = vpop.eup %4877 }
0x2307   :  { %v3099_v37 = vmul.f32 %v4878_v55, %v2927_v45 }
0x2368   :  { %v3102_v31 = vpop.permute.xlu0 %3101 }
0x2369   :  { %v3104_v43 = vmul.f32 %v4878_v55, %v3102_v31 }
0x236b   :  { %3106 = vrot.lane.b32.xlu1 %v3104_v43, %s4978_s4 }
0x23dd   :  { %v3107_v39 = vpop.permute.xlu1 %3106 }
0x23de   :  { %v3109_v28 = vadd.f32 %v3107_v39, %v3099_v37 }
0x23e0   :  { %4879 = vtanh.f32 %v3109_v28 }
0x23e1   :  { %4881 = vpow2.f32 %v4387_v16 }
0x23ed   :  { %v4880_v29 = vpop.eup %4879 }
0x23ee   :  { %3112 = vrot.lane.b32.xlu0 %v4880_v29, %s4978_s4  ;;  %v4882_v10 = vpop.eup %4881 }
0x23ef   :  { %v3093_v58 = vadd.f32 1.0, %v4882_v10 }
0x23f1   :  { %4883 = vrcp.f32 %v3093_v58 }
0x23fe   :  { %v4884_v56 = vpop.eup %4883 }
0x2460   :  { %v3113_v1 = vpop.permute.xlu0 %3112 }
0x2461   :  { %v6353_v42 = vmul.f32 %v4884_v56, %v3113_v1 }
0x2463   :  { %3161 = vrot.lane.b32.xlu1 %v6353_v42, %s4978_s4 }
0x24d5   :  { %v3162_v19 = vpop.permute.xlu1 %3161 }
0x24d6   :  { %v3164_v45 = vsel %vm979_vm10, %v6353_v42, %v3162_v19 }
0x24d7   :  { %v3165_v22 = vmul.f32 %v6190_v5, %v3164_v45 }
0x24d9   :  { %v3166_v59 = vpack.c.bf16 %v3165_v22, %v3165_v22 }
0x24db   :  { %3258 = vmatmul.mubr.bf16.vlgmr.msra.gmra.mxu0 %v3166_v59 }
0x24dc   :  { %3590 = vmatpush1.bf16.msra.mxu0 %v6233_v8  ;;  %3621 = vmatprep.mubr.bf16.mxu0 %v6840_v17  ;;  %v6842_v8 = vld [vmem:[#allocation8_spill] sm:$0xff] }
0x24dd   :  { %3591 = vmatprep.subr.bf16.mxu0 %v6240_v41 }
0x24e0   :  { %3592 = vmatpush1.bf16.msra.mxu0 %v6246_v57 }
0x24e1   :  { %3593 = vmatprep.subr.bf16.mxu0 %v6252_v18  ;;  %v6843_v18 = vld [vmem:[#allocation9_spill] sm:$0xff] }
0x24e4   :  { %3594 = vmatpush1.bf16.msra.mxu0 %v6258_v50 }
0x24e5   :  { %3595 = vmatprep.subr.bf16.mxu0 %v6264_v9 }
0x24e8   :  { %3596 = vmatpush1.bf16.msra.mxu0 %v6270_v25 }
0x24e9   :  { %3597 = vmatprep.subr.bf16.mxu0 %v6276_v27 }
0x24ec   :  { %3598 = vmatpush1.bf16.msra.mxu0 %v6282_v30 }
0x24ed   :  { %3599 = vmatprep.subr.bf16.mxu0 %v6288_v32 }
0x24f0   :  { %3600 = vmatpush1.bf16.msra.mxu0 %v6294_v33 }
0x24f1   :  { %3601 = vmatprep.subr.bf16.mxu0 %v6300_v34 }
0x24f4   :  { %3602 = vmatpush1.bf16.msra.mxu0 %v6306_v35 }
0x24f5   :  { %3603 = vmatprep.subr.bf16.mxu0 %v6312_v36 }
0x24f8   :  { %3604 = vmatpush1.bf16.msra.mxu0 %v4953_v40 }
0x259b   :  { %v3259_v17 = vpop.f32.mrf.mxu0 }
0x259c   :  { %v3266_v41 = vadd.f32 %v3259_v17, %v6842_v8 }
0x259d   :  { %v3261_v57 = vpop.f32.mrf.mxu0 }
0x259e   :  { %v3267_v50 = vadd.f32 %v3261_v57, %v6843_v18  ;;  %v4388_v30 = vmul.f32 -1.442695, %v3266_v41 }
0x259f   :  { %v3263_v9 = vpop.f32.mrf.mxu0 }
0x25a0   :  { %4885 = vtanh.f32 %v3267_v50  ;;  %v4389_v60 = vmul.f32 -1.442695, %v3267_v50 }
0x25a1   :  { %v3264_v25 = vpop.f32.mrf.mxu0  ;;  %4887 = vpow2.f32 %v4388_v30 }
0x25ad   :  { %v4886_v27 = vpop.eup %4885 }
0x25ae   :  { %3283 = vrot.lane.b32.xlu0 %v4886_v27, %s4978_s4  ;;  %v4888_v32 = vpop.eup %4887 }
0x25af   :  { %v3274_v33 = vadd.f32 1.0, %v4888_v32 }
0x25b1   :  { %4889 = vrcp.f32 %v3274_v33 }
0x25be   :  { %v4890_v34 = vpop.eup %4889 }
0x25bf   :  { %v3281_v40 = vmul.f32 %v4890_v34, %v3109_v28 }
0x2620   :  { %v3284_v35 = vpop.permute.xlu0 %3283 }
0x2621   :  { %v3286_v36 = vmul.f32 %v4890_v34, %v3284_v35 }
0x2623   :  { %3288 = vrot.lane.b32.xlu1 %v3286_v36, %s4978_s4 }
0x2695   :  { %v3289_v48 = vpop.permute.xlu1 %3288 }
0x2696   :  { %v3291_v54 = vadd.f32 %v3289_v48, %v3281_v40 }
0x2698   :  { %4891 = vtanh.f32 %v3291_v54 }
0x2699   :  { %4893 = vpow2.f32 %v4389_v60 }
0x26a5   :  { %v4892_v4 = vpop.eup %4891 }
0x26a6   :  { %3294 = vrot.lane.b32.xlu0 %v4892_v4, %s4978_s4  ;;  %v4894_v55 = vpop.eup %4893 }
0x26a7   :  { %v3275_v31 = vadd.f32 1.0, %v4894_v55 }
0x26a9   :  { %4895 = vrcp.f32 %v3275_v31 }
0x26b6   :  { %v4896_v43 = vpop.eup %4895 }
0x2718   :  { %v3295_v37 = vpop.permute.xlu0 %3294 }
0x2719   :  { %v6380_v39 = vmul.f32 %v4896_v43, %v3295_v37 }
0x271b   :  { %3343 = vrot.lane.b32.xlu1 %v6380_v39, %s4978_s4 }
0x278d   :  { %v3344_v29 = vpop.permute.xlu1 %3343 }
0x278e   :  { %v3346_v28 = vsel %vm979_vm10, %v6380_v39, %v3344_v29 }
0x278f   :  { %v3347_v16 = vmul.f32 %v6190_v5, %v3346_v28 }
0x2791   :  { %v3348_v10 = vpack.c.bf16 %v3347_v16, %v3347_v16 }
0x2793   :  { %3440 = vmatmul.mubr.bf16.vlgmr.msra.gmra.mxu1 %v3348_v10 }
0x2853   :  { %v3441_v58 = vpop.f32.mrf.mxu1 }
0x2854   :  { %v3448_v56 = vadd.f32 %v3441_v58, %v5740_v13 }
0x2855   :  { %v3443_v1 = vpop.f32.mrf.mxu1 }
0x2856   :  { %v3449_v19 = vadd.f32 %v3443_v1, %v5746_v53  ;;  %v4390_v17 = vmul.f32 -1.442695, %v3448_v56  ;;  %v1323_v1 = vcombine.high %v5934_v20, %v5934_v20 }
0x2857   :  { %v3445_v45 = vpop.f32.mrf.mxu1 }
0x2858   :  { %4897 = vtanh.f32 %v3449_v19  ;;  %v4391_v27 = vmul.f32 -1.442695, %v3449_v19  ;;  %v2395_v19 = vrot.slane %v6152_v6, %v5772_v62  ;;  %v1328_v45 = vrot.slane %v1323_v1, %v5389_v44 }
0x2859   :  { %v3446_v22 = vpop.f32.mrf.mxu1  ;;  %4899 = vpow2.f32 %v4390_v17  ;;  %v2051_v17 = vcombine.high %v6083_v7, %v6083_v7 }
0x285a   :  { %v1687_v22 = vcombine.high %v6011_v61, %v6011_v61  ;;  %v3123_v61 = vrot.slane %v6353_v42, %v5772_v62 }
0x285c   :  { %v1692_v20 = vrot.slane %v1687_v22, %v5389_v44  ;;  %v6441_v7 = vrot.slane %v3123_v61, %v5772_v62  ;;  %v6510_v22 = vrot.slane %v6323_v38, %v5772_v62  ;;  %v1141_v38 = vcombine.high %v5827_v46, %v5827_v46 }
0x285e   :  { %v3143_v42 = vcombine.high %v6441_v7, %v6441_v7 }
0x2865   :  { %v4898_v59 = vpop.eup %4897 }
0x2866   :  { %3465 = vrot.lane.b32.xlu0 %v4898_v59, %s4978_s4  ;;  %v4900_v8 = vpop.eup %4899  ;;  %v2759_v59 = vrot.slane %v6223_v26, %v5772_v62 }
0x2867   :  { %v3456_v41 = vadd.f32 1.0, %v4900_v8  ;;  %v2056_v8 = vrot.slane %v2051_v17, %v5389_v44 }
0x2868   :  { %v6430_v6 = vrot.slane %v2759_v59, %v5772_v62 }
0x2869   :  { %4901 = vrcp.f32 %v3456_v41 }
0x286a   :  { %v2779_v26 = vcombine.high %v6430_v6, %v6430_v6 }
0x2876   :  { %v4902_v57 = vpop.eup %4901 }
0x2877   :  { %v3463_v13 = vmul.f32 %v4902_v57, %v3291_v54 }
0x28d8   :  { %v3466_v18 = vpop.permute.xlu0 %3465 }
0x28d9   :  { %v3468_v50 = vmul.f32 %v4902_v57, %v3466_v18 }
0x28db   :  { %3470 = vrot.lane.b32.xlu1 %v3468_v50, %s4978_s4 }
0x294d   :  { %v3471_v9 = vpop.permute.xlu1 %3470 }
0x294e   :  { %v6391_v25 = vadd.f32 %v3471_v9, %v3463_v13  ;;  %v2784_v13 = vrot.slane %v2779_v26, %v5389_v44 }
0x2950   :  { %4903 = vtanh.f32 %v6391_v25 }
0x2951   :  { %4905 = vpow2.f32 %v4391_v27 }
0x295d   :  { %v4904_v53 = vpop.eup %4903 }
0x295e   :  { %3476 = vrot.lane.b32.xlu0 %v4904_v53, %s4978_s4  ;;  %v4906_v30 = vpop.eup %4905  ;;  %v3148_v53 = vrot.slane %v3143_v42, %v5389_v44 }
0x295f   :  { %v3457_v32 = vadd.f32 1.0, %v4906_v30  ;;  %v958_v30 = vcombine.high %v5780_v23, %v5780_v23  ;;  %v2760_v23 = vcombine.high %v2759_v59, %v2759_v59 }
0x2961   :  { %4907 = vrcp.f32 %v3457_v32  ;;  %v966_v32 = vrot.slane %v958_v30, %v5389_v44 }
0x296e   :  { %v4908_v33 = vpop.eup %4907 }
0x29d0   :  { %v3477_v34 = vpop.permute.xlu0 %3476 }
0x29d1   :  { %v3479_v35 = vmul.f32 %v4908_v33, %v3477_v34  ;;  %v1324_v33 = vcombine.high %v5937_v11, %v5937_v11  ;;  %v2396_v34 = vcombine.high %v2395_v19, %v2395_v19  ;;  %v6477_v11 = vrot.slane %v2760_v23, %v5772_v62 }
0x29d3   :  { %3525 = vrot.lane.b32.xlu1 %v3479_v35, %s4978_s4  ;;  %v3487_v57 = vrot.slane %v3479_v35, %v5772_v62 }
0x29d5   :  { %v6449_v50 = vrot.slane %v3487_v57, %v5772_v62 }
0x29d7   :  { %v3507_v9 = vcombine.high %v6449_v50, %v6449_v50 }
0x29d9   :  { %v3512_v27 = vrot.slane %v3507_v9, %v5389_v44 }
0x2a45   :  { %v3526_v36 = vpop.permute.xlu1 %3525 }
0x2a46   :  { %v3528_v40 = vsel %vm979_vm10, %v3479_v35, %v3526_v36  ;;  %v1332_v35 = vrot.slane %v1324_v33, %v5389_v44  ;;  %v1688_v36 = vcombine.high %v6014_v0, %v6014_v0 }
0x2a47   :  { %v3529_v48 = vmul.f32 %v6190_v5, %v3528_v40  ;;  %v6470_v40 = vrot.slane %v2396_v34, %v5772_v62 }
0x2a49   :  { %v3530_v54 = vpack.c.bf16 %v3529_v48, %v3529_v48  ;;  %v1696_v48 = vrot.slane %v1688_v36, %v5389_v44  ;;  %v2416_v0 = vcombine.high %v6470_v40, %v6470_v40 }
0x2a4b   :  { %3622 = vmatmul.mubr.bf16.vlgmr.msra.gmra.mxu0 %v3530_v54  ;;  %v2052_v54 = vcombine.high %v6086_v49, %v6086_v49  ;;  %v2780_v49 = vcombine.high %v6477_v11, %v6477_v11 }
0x2b0b   :  { %v3623_v4 = vpop.f32.mrf.mxu0 }
0x2b0c   :  { %v3630_v60 = vadd.f32 %v3623_v4, %v5758_v12  ;;  %v3124_v4 = vcombine.high %v3123_v61, %v3123_v61 }
0x2b0d   :  { %v3625_v55 = vpop.f32.mrf.mxu0 }
0x2b0e   :  { %v6400_v31 = vadd.f32 %v3625_v55, %v5762_v3  ;;  %v4392_v28 = vmul.f32 -1.442695, %v3630_v60  ;;  %v957_v3 = vcombine.high %v5777_v63, %v5777_v63  ;;  %v6421_v63 = vrot.slane %v2395_v19, %v5772_v62 }
0x2b0f   :  { %v3627_v43 = vpop.f32.mrf.mxu0  ;;  %v2060_v60 = vrot.slane %v2052_v54, %v5389_v44  ;;  %v6484_v55 = vrot.slane %v3124_v4, %v5772_v62  ;;  %v3305_v19 = vrot.slane %v6380_v39, %v5772_v62  ;;  %v2949_v39 = vrot.slane %v6510_v22, %v5772_v62  ;;  %v4690_v54 = vld [vmem:[%s6828_s7 + $0xf8] sm:$0xff]  }
0x2b10   :  { %4909 = vtanh.f32 %v6400_v31  ;;  %v962_v56 = vrot.slane %v957_v3, %v5389_v44  ;;  %v2415_v41 = vcombine.high %v6421_v63, %v6421_v63  ;;  %v3488_v43 = vcombine.high %v3487_v57, %v3487_v57  ;;  %v4691_v4 = vld [vmem:[%s6828_s7 + $0x38] sm:$0xff]   ;;  %4501 = vmatprep.subr.bf16.mxu0 %v4690_v54 }
0x2b11   :  { %v3628_v37 = vpop.f32.mrf.mxu0  ;;  %4911 = vpow2.f32 %v4392_v28  ;;  %v2788_v28 = vrot.slane %v2780_v49, %v5389_v44  ;;  %v3313_v59 = vrot.slane %v3305_v19, %v5772_v62  ;;  %v1869_v57 = vcombine.high %v6047_v47, %v6047_v47 }
0x2b12   :  { %v2420_v18 = vrot.slane %v2415_v41, %v5389_v44  ;;  %v2424_v37 = vrot.slane %v2416_v0, %v5389_v44  ;;  %v1505_v41 = vcombine.high %v5975_v14, %v5975_v14  ;;  %v2233_v14 = vcombine.high %v6119_v2, %v6119_v2  ;;  %v4693_v0 = vld [vmem:[%s6828_s7 + $0x70] sm:$0xff]  }
0x2b13   :  { %v1874_v42 = vrot.slane %v1869_v57, %v5389_v44  ;;  %v2961_v30 = vcombine.high %v2949_v39, %v2949_v39  ;;  %v3325_v34 = vcombine.high %v3313_v59, %v3313_v59  ;;  %v1142_v49 = vcombine.high %v5832_v15, %v5832_v15  ;;  %v4697_v15 = vld [vmem:[%s6828_s7 + $0x68] sm:$0xff]  }
0x2b14   :  { %v1510_v46 = vrot.slane %v1505_v41, %v5389_v44  ;;  %v2238_v9 = vrot.slane %v2233_v14, %v5389_v44  ;;  %v4708_v41 = vld [vmem:[%s6828_s7 + $0x98] sm:$0xff]   ;;  %v4393_v57 = vmul.f32 -1.442695, %v6400_v31  ;;  %v4709_v14 = vld [vmem:[%s6828_s7 + $0x50] sm:$0xff]  }
0x2b15   :  { %v2966_v2 = vrot.slane %v2961_v30, %v5389_v44  ;;  %v4712_v31 = vld [vmem:[%s6828_s7 + $0x90] sm:$0xff]  }
0x2b1d   :  { %v4910_v29 = vpop.eup %4909 }
0x2b1e   :  { %3647 = vrot.lane.b32.xlu0 %v4910_v29, %s4978_s4  ;;  %v4912_v16 = vpop.eup %4911  ;;  %v6491_v29 = vrot.slane %v3488_v43, %v5772_v62  ;;  %v4694_v43 = vld [vmem:[%s6828_s7 + $0xf0] sm:$0xff]  }
0x2b1f   :  { %v3638_v5 = vadd.f32 1.0, %v4912_v16  ;;  %v3144_v16 = vcombine.high %v6484_v55, %v6484_v55 }
0x2b21   :  { %4913 = vrcp.f32 %v3638_v5  ;;  %v3152_v5 = vrot.slane %v3144_v16, %v5389_v44 }
0x2b2e   :  { %v6404_v10 = vpop.eup %4913 }
0x2b2f   :  { %v3645_v3 = vmul.f32 %v6404_v10, %v6391_v25  ;;  %v6517_v25 = vrot.slane %v6181_v51, %v5772_v62  ;;  %v1146_v51 = vrot.slane %v1141_v38, %v5389_v44  ;;  %v4704_v38 = vld [vmem:[%s6828_s7 + $0xa0] sm:$0xff]  }
0x2b31   :  { %v2585_v61 = vrot.slane %v6517_v25, %v5772_v62 }
0x2b90   :  { %v3648_v58 = vpop.permute.xlu0 %3647 }
0x2b91   :  { %v3650_v12 = vmul.f32 %v6404_v10, %v3648_v58  ;;  %v3508_v58 = vcombine.high %v6491_v29, %v6491_v29 }
0x2b93   :  { %3652 = vrot.lane.b32.xlu1 %v3650_v12, %s4978_s4  ;;  %v3516_v12 = vrot.slane %v3508_v58, %v5389_v44  ;;  %v4695_v58 = vld [vmem:[%s6828_s7 + $0x30] sm:$0xff]  }
0x2b97   :  { %967 = vrot.lane.b32.xlu1 %v962_v56, %s4978_s4 }
0x2b9b   :  { %1333 = vrot.lane.b32.xlu1 %v1328_v45, %s4978_s4 }
0x2b9f   :  { %1697 = vrot.lane.b32.xlu1 %v1692_v20, %s4978_s4 }
0x2ba3   :  { %2061 = vrot.lane.b32.xlu1 %v2056_v8, %s4978_s4 }
0x2ba7   :  { %2425 = vrot.lane.b32.xlu1 %v2420_v18, %s4978_s4 }
0x2bab   :  { %2789 = vrot.lane.b32.xlu1 %v2784_v13, %s4978_s4 }
0x2baf   :  { %3153 = vrot.lane.b32.xlu1 %v3148_v53, %s4978_s4  ;;  %v2597_v53 = vcombine.high %v2585_v61, %v2585_v61 }
0x2bb1   :  { %v2602_v47 = vrot.slane %v2597_v53, %v5389_v44 }
0x2bb3   :  { %3517 = vrot.lane.b32.xlu1 %v3512_v27, %s4978_s4 }
0x2bb7   :  { %969 = vrot.lane.b32.xlu1 %v966_v32, %s4978_s4  ;;  %v3306_v32 = vcombine.high %v3305_v19, %v3305_v19 }
0x2bb9   :  { %v6555_v36 = vrot.slane %v3306_v32, %v5772_v62  ;;  %v4713_v32 = vld [vmem:[%s6828_s7 + $0x48] sm:$0xff]  }
0x2bbb   :  { %1335 = vrot.lane.b32.xlu1 %v1332_v35, %s4978_s4  ;;  %v2942_v35 = vcombine.high %v6510_v22, %v6510_v22  ;;  %v4699_v22 = vld [vmem:[%s6828_s7 + $0x28] sm:$0xff]  }
0x2bbd   :  { %v6585_v16 = vrot.slane %v2942_v35, %v5772_v62  ;;  %v4716_v35 = vld [vmem:[%s6828_s7 + $0x88] sm:$0xff]  }
0x2bbf   :  { %1699 = vrot.lane.b32.xlu1 %v1696_v48, %s4978_s4  ;;  %v4689_v48 = vld [vmem:[%s6828_s7 + $0x78] sm:$0xff]  }
0x2bc0   :  { %4473 = vmatprep.subr.bf16.mxu1 %v4689_v48 }
0x2bc1   :  { %4474 = vmatpush3.bf16.msra.mxu1 %v4691_v4 }
0x2bc2   :  { %4475 = vmatprep.subr.bf16.mxu1 %v4693_v0  ;;  %v4718_v0 = vld [vmem:[%s6828_s7 + $0xc0] sm:$0xff]  }
0x2bc3   :  { %2063 = vrot.lane.b32.xlu1 %v2060_v60, %s4978_s4  ;;  %v4692_v60 = vld [vmem:[%s6828_s7 + $0xb8] sm:$0xff]  }
0x2bc4   :  { %4502 = vmatpush3.bf16.msra.mxu0 %v4692_v60  ;;  %v4717_v60 = vld [vmem:[%s6828_s7 + $0x40] sm:$0xff]  }
0x2bc5   :  { %4503 = vmatprep.subr.bf16.mxu0 %v4694_v43  ;;  %4476 = vmatpush3.bf16.msra.mxu1 %v4695_v58  ;;  %v4719_v43 = vld [vmem:[%s6828_s7] sm:$0xff]  }
0x2bc6   :  { %4477 = vmatprep.subr.bf16.mxu1 %v4697_v15 }
0x2bc7   :  { %2427 = vrot.lane.b32.xlu1 %v2424_v37, %s4978_s4  ;;  %v3330_v37 = vrot.slane %v3325_v34, %v5389_v44 }
0x2bc9   :  { %4478 = vmatpush3.bf16.msra.mxu1 %v4699_v22 }
0x2bcb   :  { %2791 = vrot.lane.b32.xlu1 %v2788_v28, %s4978_s4  ;;  %v2578_v28 = vcombine.high %v6517_v25, %v6517_v25 }
0x2bcd   :  { %v6607_v19 = vrot.slane %v2578_v28, %v5772_v62 }
0x2bcf   :  { %3155 = vrot.lane.b32.xlu1 %v3152_v5, %s4978_s4  ;;  %v2598_v15 = vcombine.high %v6607_v19, %v6607_v19 }
0x2bd3   :  { %3519 = vrot.lane.b32.xlu1 %v3516_v12, %s4978_s4  ;;  %v4696_v12 = vld [vmem:[%s6828_s7 + $0xb0] sm:$0xff]  }
0x2bd4   :  { %4504 = vmatpush3.bf16.msra.mxu0 %v4696_v12 }
0x2c05   :  { %v3653_v56 = vpop.permute.xlu1 %3652 }
0x2c06   :  { %v3655_v1 = vadd.f32 %v3653_v56, %v3645_v3  ;;  %v4698_v3 = vld [vmem:[%s6828_s7 + $0xe8] sm:$0xff]   ;;  %v1150_v56 = vrot.slane %v1142_v49, %v5389_v44  ;;  %v1870_v49 = vcombine.high %v6052_v52, %v6052_v52  ;;  %v2234_v52 = vcombine.high %v6124_v21, %v6124_v21 }
0x2c07   :  { %4505 = vmatprep.subr.bf16.mxu0 %v4698_v3  ;;  %v2962_v3 = vcombine.high %v6585_v16, %v6585_v16 }
0x2c08   :  { %4915 = vtanh.f32 %v3655_v1  ;;  %v1506_v1 = vcombine.high %v5980_v24, %v5980_v24  ;;  %v4701_v24 = vld [vmem:[%s6828_s7 + $0x60] sm:$0xff]   ;;  %v1878_v58 = vrot.slane %v1870_v49, %v5389_v44  ;;  %v2242_v12 = vrot.slane %v2234_v52, %v5389_v44  ;;  %v4727_v52 = vld [vmem:[%s6828_s7 + $0x108] sm:$0xff]  }
0x2c09   :  { %v968_v45 = vpop.permute.xlu1 %967  ;;  %4479 = vmatprep.subr.bf16.mxu1 %v4701_v24  ;;  %4917 = vpow2.f32 %v4393_v57 }
0x2c0a   :  { %974 = vst.msk [vmem:[#allocation3 + $0x11] sm:$0x1] %vm973_vm11, %v968_v45  ;;  %v1514_v25 = vrot.slane %v1506_v1, %v5389_v44  ;;  %v2970_v1 = vrot.slane %v2962_v3, %v5389_v44 }
0x2c0d   :  { %v1334_v20 = vpop.permute.xlu1 %1333 }
0x2c0e   :  { %1339 = vst.msk [vmem:[#allocation3 + $0xf] sm:$0x1] %vm973_vm11, %v1334_v20  ;;  %v4702_v20 = vld [vmem:[%s6828_s7 + $0xe0] sm:$0xff]  }
0x2c0f   :  { %3323 = vst.msk [vmem:[#allocation3 + $0xf] sm:$0x1] %vm954_vm9, %v3313_v59  ;;  %v4700_v59 = vld [vmem:[%s6828_s7 + $0xa8] sm:$0xff]  }
0x2c10   :  { %4506 = vmatpush3.bf16.msra.mxu0 %v4700_v59 }
0x2c11   :  { %v1698_v10 = vpop.permute.xlu1 %1697  ;;  %4507 = vmatprep.subr.bf16.mxu0 %v4702_v20 }
0x2c12   :  { %1703 = vst.msk [vmem:[#allocation3 + $0xd] sm:$0x1] %vm973_vm11, %v1698_v10  ;;  %v4703_v10 = vld [vmem:[%s6828_s7 + $0x20] sm:$0xff]  }
0x2c13   :  { %2959 = vst.msk [vmem:[#allocation3 + $0xd] sm:$0x1] %vm954_vm9, %v2949_v39  ;;  %4480 = vmatpush3.bf16.msra.mxu1 %v4703_v10 }
0x2c14   :  { %4508 = vmatpush3.bf16.msra.mxu0 %v4704_v38 }
0x2c15   :  { %v4916_v17 = vpop.eup %4915  ;;  %v2062_v8 = vpop.permute.xlu1 %2061 }
0x2c16   :  { %2067 = vst.msk [vmem:[#allocation3 + $0xb] sm:$0x1] %vm973_vm11, %v2062_v8  ;;  %3658 = vrot.lane.b32.xlu0 %v4916_v17, %s4978_s4  ;;  %v4705_v17 = vld [vmem:[%s6828_s7 + $0x58] sm:$0xff]  }
0x2c17   :  { %2595 = vst.msk [vmem:[#allocation3 + $0xb] sm:$0x1] %vm954_vm9, %v2585_v61  ;;  %v4706_v61 = vld [vmem:[%s6828_s7 + $0xd8] sm:$0xff]   ;;  %4481 = vmatprep.subr.bf16.mxu1 %v4705_v17 }
0x2c18   :  { %4509 = vmatprep.subr.bf16.mxu0 %v4706_v61 }
0x2c19   :  { %v2426_v26 = vpop.permute.xlu1 %2425  ;;  %4510 = vmatpush3.bf16.msra.mxu0 %v4708_v41 }
0x2c1a   :  { %2431 = vst.msk [vmem:[#allocation3 + $0x9] sm:$0x1] %vm973_vm11, %v2426_v26  ;;  %1151 = vrot.lane.b32.xlu0 %v1146_v51, %s4978_s4  ;;  %v4707_v51 = vld [vmem:[%s6828_s7 + $0x18] sm:$0xff]  }
0x2c1b   :  { %4482 = vmatpush3.bf16.msra.mxu1 %v4707_v51 }
0x2c1c   :  { %4483 = vmatprep.subr.bf16.mxu1 %v4709_v14 }
0x2c1d   :  { %v2790_v18 = vpop.permute.xlu1 %2789 }
0x2c1e   :  { %2795 = vst.msk [vmem:[#allocation3 + $0x7] sm:$0x1] %vm973_vm11, %v2790_v18  ;;  %1515 = vrot.lane.b32.xlu0 %v1510_v46, %s4978_s4  ;;  %v4918_v18 = vpop.eup %4917 }
0x2c21   :  { %v3154_v13 = vpop.permute.xlu1 %3153 }
0x2c22   :  { %3159 = vst.msk [vmem:[#allocation3 + $0x5] sm:$0x1] %vm973_vm11, %v3154_v13  ;;  %1879 = vrot.lane.b32.xlu0 %v1874_v42, %s4978_s4  ;;  %v3639_v42 = vadd.f32 1.0, %v4918_v18  ;;  %v4710_v13 = vld [vmem:[%s6828_s7 + $0xd0] sm:$0xff]  }
0x2c23   :  { %4511 = vmatprep.subr.bf16.mxu0 %v4710_v13 }
0x2c24   :  { %4919 = vrcp.f32 %v3639_v42  ;;  %4512 = vmatpush3.bf16.msra.mxu0 %v4712_v31 }
0x2c25   :  { %v3518_v27 = vpop.permute.xlu1 %3517 }
0x2c26   :  { %3523 = vst.msk [vmem:[#allocation3 + $0x3] sm:$0x1] %vm973_vm11, %v3518_v27  ;;  %2243 = vrot.lane.b32.xlu0 %v2238_v9, %s4978_s4  ;;  %v4711_v9 = vld [vmem:[%s6828_s7 + $0x10] sm:$0xff]  }
0x2c27   :  { %4484 = vmatpush3.bf16.msra.mxu1 %v4711_v9 }
0x2c28   :  { %4485 = vmatprep.subr.bf16.mxu1 %v4713_v32 }
0x2c29   :  { %v970_v33 = vpop.permute.xlu1 %969 }
0x2c2a   :  { %975 = vst.msk [vmem:[#allocation3 + $0x29] sm:$0x1] %vm973_vm11, %v970_v33  ;;  %2607 = vrot.lane.b32.xlu0 %v2602_v47, %s4978_s4  ;;  %v4714_v33 = vld [vmem:[%s6828_s7 + $0xc8] sm:$0xff]  }
0x2c2b   :  { %4513 = vmatprep.subr.bf16.mxu0 %v4714_v33  ;;  %v4724_v33 = vld [vmem:[%s6828_s7 + $0x120] sm:$0xff]  }
0x2c2c   :  { %4514 = vmatpush3.bf16.msra.mxu0 %v4716_v35 }
0x2c2d   :  { %v1336_v23 = vpop.permute.xlu1 %1335  ;;  %4515 = vmatprep.subr.bf16.mxu0 %v4718_v0 }
0x2c2e   :  { %1340 = vst.msk [vmem:[#allocation3 + $0x27] sm:$0x1] %vm973_vm11, %v1336_v23  ;;  %2971 = vrot.lane.b32.xlu0 %v2966_v2, %s4978_s4  ;;  %v4715_v2 = vld [vmem:[%s6828_s7 + $0x8] sm:$0xff]  }
0x2c2f   :  { %3324 = vst.msk [vmem:[#allocation3 + $0x27] sm:$0x1] %vm954_vm9, %v6555_v36  ;;  %4486 = vmatpush3.bf16.msra.mxu1 %v4715_v2 }
0x2c30   :  { %4487 = vmatprep.subr.bf16.mxu1 %v4717_v60 }
0x2c31   :  { %v1700_v5 = vpop.permute.xlu1 %1699  ;;  %v4920_v53 = vpop.eup %4919 }
0x2c32   :  { %1704 = vst.msk [vmem:[#allocation3 + $0x25] sm:$0x1] %vm973_vm11, %v1700_v5  ;;  %3335 = vrot.lane.b32.xlu0 %v3330_v37, %s4978_s4  ;;  %v6704_v5 = vld [vmem:[%s6828_s7 + $0x138] sm:$0xff]  }
0x2c33   :  { %2960 = vst.msk [vmem:[#allocation3 + $0x25] sm:$0x1] %vm954_vm9, %v6585_v16  ;;  %4488 = vmatpush3.bf16.msra.mxu1 %v4719_v43 }
0x2c34   :  { %4559 = vmatprep.subr.bf16.mxu1 %v6704_v5 }
0x2c35   :  { %v2064_v45 = vpop.permute.xlu1 %2063 }
0x2c36   :  { %2068 = vst.msk [vmem:[#allocation3 + $0x23] sm:$0x1] %vm973_vm11, %v2064_v45  ;;  %1153 = vrot.lane.b32.xlu0 %v1150_v56, %s4978_s4 }
0x2c37   :  { %2596 = vst.msk [vmem:[#allocation3 + $0x23] sm:$0x1] %vm954_vm9, %v6607_v19 }
0x2c39   :  { %v2428_v39 = vpop.permute.xlu1 %2427 }
0x2c3a   :  { %2432 = vst.msk [vmem:[#allocation3 + $0x21] sm:$0x1] %vm973_vm11, %v2428_v39  ;;  %1517 = vrot.lane.b32.xlu0 %v1514_v25, %s4978_s4 }
0x2c3d   :  { %v2792_v8 = vpop.permute.xlu1 %2791 }
0x2c3e   :  { %2796 = vst.msk [vmem:[#allocation3 + $0x1f] sm:$0x1] %vm973_vm11, %v2792_v8 }
0x2c41   :  { %v3156_v26 = vpop.permute.xlu1 %3155 }
0x2c42   :  { %3160 = vst.msk [vmem:[#allocation3 + $0x1d] sm:$0x1] %vm973_vm11, %v3156_v26 }
0x2c45   :  { %v3520_v46 = vpop.permute.xlu1 %3519 }
0x2c46   :  { %3524 = vst.msk [vmem:[#allocation3 + $0x1b] sm:$0x1] %vm973_vm11, %v3520_v46 }
0x2c88   :  { %v3659_v27 = vpop.permute.xlu0 %3658 }
0x2c89   :  { %v3661_v47 = vmul.f32 %v4920_v53, %v3659_v27  ;;  %v4722_v27 = vld [vmem:[%s6828_s7 + $0x130] sm:$0xff]  }
0x2c8b   :  { %v3669_v30 = vrot.slane %v3661_v47, %v5772_v62 }
0x2c8c   :  { %v1152_v34 = vpop.permute.xlu0 %1151 }
0x2c8d   :  { %v3670_v23 = vcombine.high %v3669_v30, %v3669_v30  ;;  %v3677_v48 = vrot.slane %v3669_v30, %v5772_v62  ;;  %1157 = vst.msk [vmem:[#allocation3 + $0x10] sm:$0x1] %vm973_vm11, %v1152_v34  ;;  %v4723_v30 = vld [vmem:[%s6828_s7 + $0x128] sm:$0xff]   ;;  %v4725_v34 = vld [vmem:[%s6828_s7 + $0x118] sm:$0xff]  }
0x2c8e   :  { %3505 = vst.msk [vmem:[#allocation3 + $0x10] sm:$0x1] %vm954_vm9, %v6449_v50 }
0x2c8f   :  { %v3684_v54 = vrot.slane %v3670_v23, %v5772_v62  ;;  %3687 = vst.msk [vmem:[#allocation3 + $0x11] sm:$0x1] %vm954_vm9, %v3677_v48  ;;  %v3689_v4 = vcombine.high %v3677_v48, %v3677_v48  ;;  %v4720_v62 = vld [vmem:[%s6828_s7 + $0x80] sm:$0xff]   ;;  %v4726_v23 = vld [vmem:[%s6828_s7 + $0x110] sm:$0xff]  }
0x2c90   :  { %v1516_v50 = vpop.permute.xlu0 %1515  ;;  %4516 = vmatpush3.bf16.msra.mxu0 %v4720_v62 }
0x2c91   :  { %3688 = vst.msk [vmem:[#allocation3 + $0x29] sm:$0x1] %vm954_vm9, %v3684_v54  ;;  %v3694_v37 = vrot.slane %v3689_v4, %v5389_v44  ;;  %v3690_v22 = vcombine.high %v3684_v54, %v3684_v54 }
0x2c92   :  { %1521 = vst.msk [vmem:[#allocation3 + $0xe] sm:$0x1] %vm973_vm11, %v1516_v50 }
0x2c93   :  { %3141 = vst.msk [vmem:[#allocation3 + $0xe] sm:$0x1] %vm954_vm9, %v6441_v7  ;;  %3699 = vrot.lane.b32.xlu0 %v3694_v37, %s4978_s4  ;;  %v3698_v59 = vrot.slane %v3690_v22, %v5389_v44 }
0x2c94   :  { %v1880_v28 = vpop.permute.xlu0 %1879 }
0x2c95   :  { %1885 = vst.msk [vmem:[#allocation3 + $0xc] sm:$0x1] %vm973_vm11, %v1880_v28 }
0x2c96   :  { %2777 = vst.msk [vmem:[#allocation3 + $0xc] sm:$0x1] %vm954_vm9, %v6430_v6  ;;  %v2606_v6 = vrot.slane %v2598_v15, %v5389_v44 }
0x2c97   :  { %1881 = vrot.lane.b32.xlu0 %v1878_v58, %s4978_s4 }
0x2c98   :  { %v2244_v7 = vpop.permute.xlu0 %2243 }
0x2c99   :  { %2249 = vst.msk [vmem:[#allocation3 + $0xa] sm:$0x1] %vm973_vm11, %v2244_v7 }
0x2c9a   :  { %2413 = vst.msk [vmem:[#allocation3 + $0xa] sm:$0x1] %vm954_vm9, %v6421_v63  ;;  %v3326_v63 = vcombine.high %v6555_v36, %v6555_v36 }
0x2c9b   :  { %2245 = vrot.lane.b32.xlu0 %v2242_v12, %s4978_s4 }
0x2c9c   :  { %v2608_v21 = vpop.permute.xlu0 %2607  ;;  %v3334_v45 = vrot.slane %v3326_v63, %v5389_v44  ;;  %v6746_v44 = vld [vmem:[#allocation3 + $0x10] sm:$0xf] }
0x2c9d   :  { %2613 = vst.msk [vmem:[#allocation3 + $0x8] sm:$0x1] %vm973_vm11, %v2608_v21  ;;  %v3719_v17 = vrot.slane %v6746_v44, 1  ;;  %v3734_v61 = vrot.slane %v6746_v44, 3  ;;  %v3726_v41 = vrot.slane %v6746_v44, 2  ;;  %v3742_v21 = vrot.slane %v6746_v44, 4 }
0x2c9f   :  { %2609 = vrot.lane.b32.xlu0 %v2606_v6, %s4978_s4 }
0x2ca0   :  { %v2972_v56 = vpop.permute.xlu0 %2971 }
0x2ca1   :  { %2977 = vst.msk [vmem:[#allocation3 + $0x6] sm:$0x1] %vm973_vm11, %v2972_v56 }
0x2ca3   :  { %2973 = vrot.lane.b32.xlu0 %v2970_v1, %s4978_s4 }
0x2ca4   :  { %v3336_v19 = vpop.permute.xlu0 %3335  ;;  %v6743_v20 = vld [vmem:[#allocation3 + $0x8] sm:$0xff] }
0x2ca5   :  { %3341 = vst.msk [vmem:[#allocation3 + $0x4] sm:$0x1] %vm973_vm11, %v3336_v19  ;;  %v3732_v39 = vrot.slane %v6743_v20, 3  ;;  %v3740_v37 = vrot.slane %v6743_v20, 4 }
0x2ca7   :  { %3337 = vrot.lane.b32.xlu0 %v3334_v45, %s4978_s4  ;;  %v3735_v46 = vsel %vm3730_vm12, %v3732_v39, %v3734_v61 }
0x2ca8   :  { %v1154_v16 = vpop.permute.xlu0 %1153 }
0x2ca9   :  { %1158 = vst.msk [vmem:[#allocation3 + $0x28] sm:$0x1] %vm973_vm11, %v1154_v16  ;;  %v3743_v16 = vsel %vm3738_vm13, %v3740_v37, %v3742_v21 }
0x2caa   :  { %3506 = vst.msk [vmem:[#allocation3 + $0x28] sm:$0x1] %vm954_vm9, %v6491_v29  ;;  %v3717_v29 = vrot.slane %v6743_v20, 1 }
0x2cab   :  { %3701 = vrot.lane.b32.xlu0 %v3698_v59, %s4978_s4  ;;  %v4728_v59 = vld [vmem:[%s6828_s7 + $0x100] sm:$0xff]  }
0x2cac   :  { %v1518_v36 = vpop.permute.xlu0 %1517  ;;  %v3720_v26 = vsel %vm95_vm1, %v3717_v29, %v3719_v17 }
0x2cad   :  { %1522 = vst.msk [vmem:[#allocation3 + $0x26] sm:$0x1] %vm973_vm11, %v1518_v36 }
0x2cae   :  { %3142 = vst.msk [vmem:[#allocation3 + $0x26] sm:$0x1] %vm954_vm9, %v6484_v55  ;;  %v3724_v55 = vrot.slane %v6743_v20, 2 }
0x2cb0   :  { %v3727_v14 = vsel %vm103_vm2, %v3724_v55, %v3726_v41 }
0x2cb1   :  { %v3712_v48 = vld [vmem:[#allocation3 + $0x28] sm:$0xf] }
0x2cb2   :  { %v3752_v50 = vrot.slane %v3712_v48, 1  ;;  %v3766_v62 = vrot.slane %v3712_v48, 3  ;;  %v3759_v58 = vrot.slane %v3712_v48, 2  ;;  %v3773_v44 = vrot.slane %v3712_v48, 4 }
0x2d05   :  { %v3700_v24 = vpop.permute.xlu0 %3699 }
0x2d06   :  { %3705 = vst.msk [vmem:[#allocation3 + $0x2] sm:$0x1] %vm973_vm11, %v3700_v24 }
0x2d09   :  { %v1882_v25 = vpop.permute.xlu0 %1881 }
0x2d0a   :  { %1886 = vst.msk [vmem:[#allocation3 + $0x24] sm:$0x1] %vm973_vm11, %v1882_v25 }
0x2d0b   :  { %2778 = vst.msk [vmem:[#allocation3 + $0x24] sm:$0x1] %vm954_vm9, %v6477_v11 }
0x2d0d   :  { %v2246_v10 = vpop.permute.xlu0 %2245  ;;  %v6753_v38 = vld [vmem:[#allocation3] sm:$0xff] }
0x2d0e   :  { %2250 = vst.msk [vmem:[#allocation3 + $0x22] sm:$0x1] %vm973_vm11, %v2246_v10  ;;  %v3716_v8 = vrot.slane %v6753_v38, 1  ;;  %v3731_v11 = vrot.slane %v6753_v38, 3  ;;  %v3723_v51 = vrot.slane %v6753_v38, 2  ;;  %v3739_v60 = vrot.slane %v6753_v38, 4 }
0x2d0f   :  { %2414 = vst.msk [vmem:[#allocation3 + $0x22] sm:$0x1] %vm954_vm9, %v6470_v40  ;;  %v3777_v40 = vpack.c.bf16 %v6743_v20, %v6753_v38 }
0x2d10   :  { %v3718_v57 = vsel %vm95_vm1, %v3716_v8, %v3717_v29  ;;  %v3733_v18 = vsel %vm3730_vm12, %v3731_v11, %v3732_v39  ;;  %v3725_v42 = vsel %vm103_vm2, %v3723_v51, %v3724_v55  ;;  %v3741_v15 = vsel %vm3738_vm13, %v3739_v60, %v3740_v37 }
0x2d11   :  { %v2610_v13 = vpop.permute.xlu0 %2609  ;;  %v3778_v9 = vpack.c.bf16 %v3720_v26, %v3718_v57  ;;  %v3780_v31 = vpack.c.bf16 %v3735_v46, %v3733_v18  ;;  %v3779_v53 = vpack.c.bf16 %v3727_v14, %v3725_v42  ;;  %v3781_v36 = vpack.c.bf16 %v3743_v16, %v3741_v15  ;;  %v4394_v57 = vld [vmem:[%s6829_s8] ss:$0 sm:$0xff]  ;;  %s4981_s8 = smov [#allocation4]  }
0x2d12   :  { %2614 = vst.msk [vmem:[#allocation3 + $0x20] sm:$0x1] %vm973_vm11, %v2610_v13  ;;  %s4274_s30 = sshll.u32 %s4981_s8, 4  ;;  %s4275_s30 = int_to_ptr.vmem [resolvable:$true] %s4274_s30 }
0x2d13   :  { %4146 = vmatprep.mubr.bf16.mxu1 %v3778_v9  ;;  %4195 = vmatprep.mubr.bf16.mxu0 %v3780_v31  ;;  %s4954_s5 = scalar_lea.vmem %s4275_s30, 512  ;;  %p4959_p1 = scmp.lt.s32.totalorder %s4275_s30, %s4275_s30 }
0x2d14   :  { %4147 = vmatmul.mubr.bf16.vlgmr.msra.gmra.mxu1 %v3777_v40  ;;  %4196 = vmatmul.mubr.bf16.vlgmr.msra.gmra.mxu0 %v3779_v53  ;;  %p4955_p0 = scmp.ne.s32.totalorder %s4275_s30, %s4954_s5  ;;  %p4960_p2 = scmp.lt.s32.totalorder %s4954_s5, %s4954_s5 }
0x2d15   :  { %v2974_v47 = vpop.permute.xlu0 %2973  ;;  %4560 = vmatpush3.bf16.msra.mxu1 %v6704_v5 }
0x2d16   :  { %2978 = vst.msk [vmem:[#allocation3 + $0x1e] sm:$0x1] %vm973_vm11, %v2974_v47  ;;  %4561 = vmatprep.subr.bf16.mxu1 %v4722_v27  ;;  %p4961_p3 = por %p4960_p2, %p4959_p1 }
0x2d18   :  { %p4962_p4 = pnand %p4961_p3, %p4955_p0 }
0x2d19   :  { %v3338_v32 = vpop.permute.xlu0 %3337  ;;  %4562 = vmatpush3.bf16.msra.mxu1 %v4722_v27  ;;  %v3711_v35 = vld [vmem:[#allocation3 + $0x20] sm:$0xff] }
0x2d1a   :  { %3342 = vst.msk [vmem:[#allocation3 + $0x1c] sm:$0x1] %vm973_vm11, %v3338_v32  ;;  %4563 = vmatprep.subr.bf16.mxu1 %v4723_v30  ;;  %v3750_v54 = vrot.slane %v3711_v35, 1  ;;  %v3764_v4 = vrot.slane %v3711_v35, 3  ;;  %v3757_v0 = vrot.slane %v3711_v35, 2  ;;  %v3771_v20 = vrot.slane %v3711_v35, 4 }
0x2d1c   :  { %v3753_v7 = vsel %vm95_vm1, %v3750_v54, %v3752_v50  ;;  %v3767_v12 = vsel %vm3730_vm12, %v3764_v4, %v3766_v62  ;;  %v3760_v1 = vsel %vm103_vm2, %v3757_v0, %v3759_v58  ;;  %v3774_v29 = vsel %vm3738_vm13, %v3771_v20, %v3773_v44 }
0x2d1d   :  { %v3702_v2 = vpop.permute.xlu0 %3701  ;;  %4564 = vmatpush3.bf16.msra.mxu1 %v4723_v30 }
0x2d1e   :  { %3706 = vst.msk [vmem:[#allocation3 + $0x1a] sm:$0x1] %vm973_vm11, %v3702_v2  ;;  %4565 = vmatprep.subr.bf16.mxu1 %v4724_v33 }
0x2d21   :  { %4566 = vmatpush3.bf16.msra.mxu1 %v4724_v33 }
0x2d22   :  { %4567 = vmatprep.subr.bf16.mxu1 %v4725_v34 }
0x2d25   :  { %4568 = vmatpush3.bf16.msra.mxu1 %v4725_v34  ;;  %v3710_v43 = vld [vmem:[#allocation3 + $0x18] sm:$0xff] }
0x2d26   :  { %4569 = vmatprep.subr.bf16.mxu1 %v4726_v23  ;;  %v3749_v49 = vrot.slane %v3710_v43, 1  ;;  %v3763_v28 = vrot.slane %v3710_v43, 3  ;;  %v3756_v5 = vrot.slane %v3710_v43, 2  ;;  %v3782_v22 = vpack.c.bf16 %v3711_v35, %v3710_v43 }
0x2d27   :  { %v3770_v24 = vrot.slane %v3710_v43, 4 }
0x2d28   :  { %v3751_v6 = vsel %vm95_vm1, %v3749_v49, %v3750_v54  ;;  %v3765_v3 = vsel %vm3730_vm12, %v3763_v28, %v3764_v4  ;;  %v3758_v56 = vsel %vm103_vm2, %v3756_v5, %v3757_v0 }
0x2d29   :  { %4570 = vmatpush3.bf16.msra.mxu1 %v4726_v23  ;;  %v3783_v63 = vpack.c.bf16 %v3753_v7, %v3751_v6  ;;  %v3785_v19 = vpack.c.bf16 %v3767_v12, %v3765_v3  ;;  %v3784_v45 = vpack.c.bf16 %v3760_v1, %v3758_v56  ;;  %v3772_v25 = vsel %vm3738_vm13, %v3770_v24, %v3771_v20 }
0x2d2a   :  { %4571 = vmatprep.subr.bf16.mxu1 %v4727_v52  ;;  %v3786_v39 = vpack.c.bf16 %v3774_v29, %v3772_v25 }
0x2d2b   :  { %4154 = vmatprep.mubr.bf16.mxu1 %v3783_v63  ;;  %4203 = vmatprep.mubr.bf16.mxu0 %v3785_v19 }
0x2d2c   :  { %4155 = vmatmul.mubr.bf16.gmra.mxu1 %v3782_v22  ;;  %4204 = vmatmul.mubr.bf16.gmra.mxu0 %v3784_v45 }
0x2d2d   :  { %4572 = vmatpush3.bf16.msra.mxu1 %v4727_v52  ;;  %4575 = vmatprep.mubr.bf16.mxu1 %v3781_v36 }
0x2d2e   :  { %4573 = vmatprep.subr.bf16.mxu1 %v4728_v59 }
0x2d31   :  { %4574 = vmatpush3.bf16.msra.mxu1 %v4728_v59 }
0x2d34   :  { %4576 = vmatmul.mubr.bf16.vlgmr.msra.gmra.mxu1 %v3786_v39 }
0x2dd4   :  { %v4489_v55 = vpop.f32.mrf.mxu1  ;;  %v4517_v10 = vpop.f32.mrf.mxu0 }
0x2dd6   :  { %v4490_v38 = vpop.f32.mrf.mxu1  ;;  %v4518_v17 = vpop.f32.mrf.mxu0 }
0x2dd7   :  { %v4491_v41 = vadd.f32 %v4490_v38, %v4489_v55  ;;  %v4519_v47 = vadd.f32 %v4518_v17, %v4517_v10 }
0x2dd8   :  { %v4492_v61 = vpop.f32.mrf.mxu1  ;;  %v4520_v8 = vpop.f32.mrf.mxu0 }
0x2dd9   :  { %v4149_v13 = vadd.f32 %v4491_v41, %v4394_v57 }
0x2dda   :  { %v4493_v11 = vpop.f32.mrf.mxu1  ;;  %v4521_v51 = vpop.f32.mrf.mxu0 }
0x2ddb   :  { %v4494_v53 = vadd.f32 %v4493_v11, %v4492_v61  ;;  %v4198_v35 = vadd.f32 %v4519_v47, %v4149_v13  ;;  %v4522_v0 = vadd.f32 %v4521_v51, %v4520_v8 }
0x2ddd   :  { %v4152_v23 = vadd.f32 %v4494_v53, %v4394_v57 }
0x2ddf   :  { %v4201_v5 = vadd.f32 %v4522_v0, %v4152_v23 }
0x2dec   :  { %v4495_v26 = vpop.f32.mrf.mxu1  ;;  %v4523_v46 = vpop.f32.mrf.mxu0 }
0x2dee   :  { %v4496_v18 = vpop.f32.mrf.mxu1  ;;  %v4524_v42 = vpop.f32.mrf.mxu0 }
0x2def   :  { %v4497_v14 = vadd.f32 %v4496_v18, %v4495_v26  ;;  %v4525_v27 = vadd.f32 %v4524_v42, %v4523_v46 }
0x2df0   :  { %v4498_v9 = vpop.f32.mrf.mxu1  ;;  %v4526_v31 = vpop.f32.mrf.mxu0 }
0x2df1   :  { %v4157_v40 = vadd.f32 %v4497_v14, %v4394_v57 }
0x2df2   :  { %v4499_v30 = vpop.f32.mrf.mxu1  ;;  %v4527_v32 = vpop.f32.mrf.mxu0 }
0x2df3   :  { %v4500_v33 = vadd.f32 %v4499_v30, %v4498_v9  ;;  %v4206_v2 = vadd.f32 %v4525_v27, %v4157_v40  ;;  %v4528_v54 = vadd.f32 %v4527_v32, %v4526_v31 }
0x2df4   :  { %v4577_v34 = vpop.f32.mrf.mxu1 }
0x2df5   :  { %v4160_v48 = vadd.f32 %v4500_v33, %v4394_v57  ;;  %v4255_v4 = vadd.f32 %v4577_v34, %v4206_v2 }
0x2df6   :  { %v4246_v60 = vpop.f32.mrf.mxu1 }
0x2df7   :  { %v4263_v43 = vmax.f32 %v4255_v4, 0.0  ;;  %v4247_v50 = vadd.f32 %v4246_v60, %v4198_v35  ;;  %v4209_v62 = vadd.f32 %v4528_v54, %v4160_v48 }
0x2df8   :  { %v4578_v37 = vpop.f32.mrf.mxu1 }
0x2df9   :  { %4267 = vst.msk [vmem:[#allocation4 + $0x10] sm:$0xff] %vm979_vm10, %v4263_v43  ;;  %v4261_v49 = vmax.f32 %v4247_v50, 0.0  ;;  %v4258_v28 = vadd.f32 %v4578_v37, %v4209_v62 }
0x2dfa   :  { %v4249_v58 = vpop.f32.mrf.mxu1 }
0x2dfb   :  { %4265 = vst.msk [vmem:[#allocation4] sm:$0xff] %vm979_vm10, %v4261_v49  ;;  %v4264_v52 = vmax.f32 %v4258_v28, 0.0  ;;  %v4250_v7 = vadd.f32 %v4249_v58, %v4201_v5 }
0x2dfd   :  { %4268 = vst.msk [vmem:[#allocation4 + $0x18] sm:$0xff] %vm979_vm10, %v4264_v52  ;;  %v4262_v12 = vmax.f32 %v4250_v7, 0.0 }
0x2dff   :  { %4266 = vst.msk [vmem:[#allocation4 + $0x8] sm:$0xff] %vm979_vm10, %v4262_v12 }
0x2e00   :  { %4965 = shalt.err (!%p4962_p4)
}
0x2e01   :  { %s4982_s3 = smov 128   ;;  %s4983_s10 = smov 8  }
0x2e02   :  { %4280 = dma.vmem_to_hbm [thread:$0]  %s4275_s30, 512, %s6830_s9, [#allocation5], %s4982_s3, %s4982_s3, %s4983_s10  }
0x2e03   :  { %4974 = dma.done.wait [#allocation5], 512  }
0x2e04   :  { %4975 = vsyncadd [#allocation5], 4294966784 }
0x2e05   :  { %4284 = vsyncpa [#allocation5], 1 }

</bundles_post_ra>
